<compile_context>
chip_gen: v6e
topology: v6e:2x2x1
jax: 0.10.0
libtpu: 0.0.40
codegen_flags: <defaults>
</compile_context>

<pallas_src>
import numpy as np
import jax
import jax.numpy as jnp
from jax.experimental import pallas as pl
from jax.experimental.pallas import tpu as pltpu


def _gru_submodel_kernel(
        obs_ref,                  # (T*B, F)  time-major rows: row = t*B + b
        Wemb, bemb,               # encoder embedding (F,E), (1,E)
        Wi1, bi1, Wh1, bh1,       # encoder GRU layer 1 (gates fused [r|z|n] -> 3H)
        Wi2, bi2, Wh2, bh2,       # encoder GRU layer 2
        Wid1, bid1, Whd1, bhd1,   # decoder GRU layer 1
        Wid2, bid2, Whd2, bhd2,   # decoder GRU layer 2
        Wout, bout,               # out2loc (H,2), (1,2)
        Wfold, bfold,             # Wout @ Wemb_dec fold (H,E), (1,E)
        out_ref,                  # (P, B, 2) time-major predictions
        enc1_ref):                # scratch (T*B, H): staged layer-1 outputs
    P, B, _ = out_ref.shape
    TB, _ = obs_ref.shape
    T = TB // B
    H = Wh1.shape[0]
    H3 = 3 * H
    E = Wfold.shape[1]

    def dot(a, b):
        # DEFAULT MXU precision (single-pass bf16 inputs, f32 accumulation).
        return jnp.dot(a, b, preferred_element_type=jnp.float32)

    def gru_gates(xi, hh, h):
        # xi = x @ Wi[r|z|n] + bi ; hh = h @ Wh[r|z|n] + bh ; PyTorch GRU cell.
        r = jax.nn.sigmoid(xi[:, :H] + hh[:, :H])
        z = jax.nn.sigmoid(xi[:, H:2 * H] + hh[:, H:2 * H])
        n = jnp.tanh(xi[:, 2 * H:] + r * hh[:, 2 * H:])
        return (1.0 - z) * n + z * h

    # Hoist recurrent bias broadcasts out of the unrolled loops (not CSE'd otherwise).
    bh1_b = jnp.broadcast_to(bh1[...], (B, H3))
    bh2_b = jnp.broadcast_to(bh2[...], (B, H3))
    bhd1_b = jnp.broadcast_to(bhd1[...], (B, H3))
    bhd2_b = jnp.broadcast_to(bhd2[...], (B, H3))
    bid1_b = jnp.broadcast_to(bid1[...], (B, H3))
    bid2_b = jnp.broadcast_to(bid2[...], (B, H3))
    bfold_b = jnp.broadcast_to(bfold[...], (B, E))
    bout_b = jnp.broadcast_to(bout[...], (B, Wout.shape[1]))

    # ---------------- encoder: batched input-side projections ----------------
    emb_all = jnp.tanh(dot(obs_ref[...], Wemb[...]) + bemb[...])      # (T*B, E)
    xi1_all = dot(emb_all, Wi1[...]) + bi1[...]                        # (T*B, 3H)

    # encoder GRU layer 1 — only the h-side dot remains in the serial recurrence
    h = jnp.zeros((B, H), jnp.float32)
    for t in range(T):                                 # static unroll, T small
        xi = xi1_all[t * B:(t + 1) * B, :]
        hh = dot(h, Wh1[...]) + bh1_b
        h = gru_gates(xi, hh, h)
        enc1_ref[t * B:(t + 1) * B, :] = h

    # encoder GRU layer 2 — batched input projection of the staged layer-1 outputs
    xi2_all = dot(enc1_ref[...], Wi2[...]) + bi2[...]                  # (T*B, 3H)
    h2 = h                            # layer-2 initial hidden = layer-1 final hidden
    h_seed = h2
    for t in range(T):
        xi = xi2_all[t * B:(t + 1) * B, :]
        hh = dot(h2, Wh2[...]) + bh2_b
        h2 = gru_gates(xi, hh, h2)
        if t == T - 2:
            h_seed = h2               # enc_out[:, -2, :] -> feeds out2loc for seed loc

    # ---------------- autoregressive decoder ----------------
    h = h2                            # decoder initial hidden = layer-2 final hidden
    h_src = h_seed                    # hidden feeding the folded out2loc∘embedding
    for p in range(P):                                # static unroll, P small
        # embd = tanh(loc_embedding_dec(out2loc(h_src))) with the two linears folded
        embd = jnp.tanh(dot(h_src, Wfold[...]) + bfold_b)              # (B, E)
        xi1d = dot(embd, Wid1[...]) + bid1_b
        hh1d = dot(h, Whd1[...]) + bhd1_b
        hd1 = gru_gates(xi1d, hh1d, h)
        # decoder GRU 2: input = hd1, initial hidden = hd1 (as in the PyTorch code)
        xi2d = dot(hd1, Wid2[...]) + bid2_b
        hh2d = dot(hd1, Whd2[...]) + bhd2_b
        hd2 = gru_gates(xi2d, hh2d, hd1)
        out_ref[p] = dot(hd2, Wout[...]) + bout_b                      # (B, 2)
        h = hd2
        h_src = hd2


def _fuse3(a, b, c):
    return jnp.concatenate([a, b, c], axis=1)


def pack_fused_params(p):
    """Fuse per-gate GRU weights into [r|z|n] blocks and fold out2loc into the
    decoder embedding (Wfold = Wout @ Wemb_dec)."""
    fused = {}
    for layer in ("1", "2", "d1", "d2"):
        fused[f"Wi_{layer}"] = _fuse3(p[f"Wir_{layer}"], p[f"Wiz_{layer}"], p[f"Win_{layer}"])
        fused[f"bi_{layer}"] = _fuse3(p[f"bir_{layer}"], p[f"biz_{layer}"], p[f"bin_{layer}"])
        fused[f"Wh_{layer}"] = _fuse3(p[f"Whr_{layer}"], p[f"Whz_{layer}"], p[f"Whn_{layer}"])
        fused[f"bh_{layer}"] = _fuse3(p[f"bhr_{layer}"], p[f"bhz_{layer}"], p[f"bhn_{layer}"])
    fused["Wfold"] = jnp.dot(p["Wout"], p["Wembd"])                    # (H, E)
    fused["bfold"] = jnp.dot(p["bout"], p["Wembd"]) + p["bembd"]       # (1, E)
    return fused


def gru_submodel_forward(obs, params, pred_len):
    """obs: (B, T, F) float32 (PyTorch batch_first). Returns (B, pred_len, 2)."""
    B, T, F = obs.shape
    p = params
    H = p["Whr_1"].shape[0]
    f = pack_fused_params(p)

    # Time-major flatten so per-step rows are contiguous sublane slices in-kernel.
    obs_flat = jnp.transpose(obs, (1, 0, 2)).reshape(T * B, F).astype(jnp.float32)

    inputs = [
        obs_flat, p["Wemb"], p["bemb"],
        f["Wi_1"], f["bi_1"], f["Wh_1"], f["bh_1"],
        f["Wi_2"], f["bi_2"], f["Wh_2"], f["bh_2"],
        f["Wi_d1"], f["bi_d1"], f["Wh_d1"], f["bh_d1"],
        f["Wi_d2"], f["bi_d2"], f["Wh_d2"], f["bh_d2"],
        p["Wout"], p["bout"], f["Wfold"], f["bfold"],
    ]

    out = pl.pallas_call(
        _gru_submodel_kernel,
        out_shape=jax.ShapeDtypeStruct((pred_len, B, 2), jnp.float32),
        in_specs=[pl.BlockSpec(memory_space=pltpu.MemorySpace.VMEM)] * len(inputs),
        out_specs=pl.BlockSpec(memory_space=pltpu.MemorySpace.VMEM),
        scratch_shapes=[pltpu.VMEM((T * B, H), jnp.float32)],          # staged enc1
    )(*inputs)
    return jnp.transpose(out, (1, 0, 2))                               # (B, pred_len, 2)


def init_params(key, F, E, H, dec_in=2):
    shapes = {"Wemb": (F, E), "bemb": (1, E),
              "Wembd": (dec_in, E), "bembd": (1, E),
              "Wout": (H, 2), "bout": (1, 2)}
    in_dims = {"1": E, "2": H, "d1": E, "d2": H}
    for layer, din in in_dims.items():
        for g in ("r", "z", "n"):
            shapes[f"Wi{g}_{layer}"] = (din, H)
            shapes[f"Wh{g}_{layer}"] = (H, H)
            shapes[f"bi{g}_{layer}"] = (1, H)
            shapes[f"bh{g}_{layer}"] = (1, H)
    names = sorted(shapes)
    keys = jax.random.split(key, len(names))
    params = {}
    for name, sub in zip(names, keys):
        shp = shapes[name]
        fan = shp[0] if shp[0] > 1 else max(shp[1], 1)
        params[name] = (jax.random.normal(sub, shp) / np.sqrt(fan)).astype(jnp.float32)
    return params


def reference_forward(obs, params, pred_len):
    """Pure-JAX mirror of GRU_submodel.forward (general=False, v2=False, eval mode)."""
    p = params
    B, T, F = obs.shape
    H = p["Whr_1"].shape[0]

    def cell(x, h, L):
        r = jax.nn.sigmoid(x @ p[f"Wir_{L}"] + p[f"bir_{L}"] + h @ p[f"Whr_{L}"] + p[f"bhr_{L}"])
        z = jax.nn.sigmoid(x @ p[f"Wiz_{L}"] + p[f"biz_{L}"] + h @ p[f"Whz_{L}"] + p[f"bhz_{L}"])
        n = jnp.tanh(x @ p[f"Win_{L}"] + p[f"bin_{L}"] + r * (h @ p[f"Whn_{L}"] + p[f"bhn_{L}"]))
        return (1.0 - z) * n + z * h

    emb = jnp.tanh(obs @ p["Wemb"] + p["bemb"])                        # (B, T, E)
    h1 = jnp.zeros((B, H), jnp.float32)
    enc1 = []
    for t in range(T):
        h1 = cell(emb[:, t, :], h1, "1")
        enc1.append(h1)
    h2 = h1                                   # layer-2 h0 = layer-1 final hidden
    enc2 = []
    for t in range(T):
        h2 = cell(enc1[t], h2, "2")
        enc2.append(h2)
    hidden = h2
    last_loc = enc2[T - 2] @ p["Wout"] + p["bout"]                     # out2loc(...)[:, -2, :]

    outs = []
    for _ in range(pred_len):
        embd = jnp.tanh(last_loc @ p["Wembd"] + p["bembd"])
        hd1 = cell(embd, hidden, "d1")
        hd2 = cell(hd1, hd1, "d2")
        out = hd2 @ p["Wout"] + p["bout"]
        outs.append(out)
        hidden = hd2
        last_loc = out
    return jnp.stack(outs, axis=1)                                     # (B, P, 2)


if __name__ == "__main__":
    # Small shapes consistent with the module: batch=2, seq=8, enc/dec input dim=2,
    # embedding_dim=16, hidden_dim=32, pred_len=4.
    B, T, F = 2, 8, 2
    E, H, PRED_LEN = 16, 32, 4

    key = jax.random.PRNGKey(0)
    k_obs, k_par = jax.random.split(key)
    obs = jax.random.normal(k_obs, (B, T, F), dtype=jnp.float32)
    params = init_params(k_par, F, E, H)

    out = gru_submodel_forward(obs, params, PRED_LEN)
    out = jax.block_until_ready(out)
    assert out.shape == (B, PRED_LEN, 2)

    ref = reference_forward(obs, params, PRED_LEN)
    # Kernel matmuls run at DEFAULT MXU precision (single-pass bf16 inputs) per the
    # perf review, and out2loc is algebraically folded into the decoder embedding;
    # tolerance is sized for that rounding vs. the reference (values are O(1)).
    np.testing.assert_allclose(np.asarray(out), np.asarray(ref), atol=5e-2, rtol=5e-2)

    print("KERNEL_OK")
</pallas_src>

<mosaic_0001>
module attributes {stable_mosaic.version = 11 : i64} {
  func.func @_gru_submodel_kernel(%arg0: memref<16x2xf32, #tpu.memory_space<vmem>>, %arg1: memref<2x16xf32, #tpu.memory_space<vmem>>, %arg2: memref<1x16xf32, #tpu.memory_space<vmem>>, %arg3: memref<16x96xf32, #tpu.memory_space<vmem>>, %arg4: memref<1x96xf32, #tpu.memory_space<vmem>>, %arg5: memref<32x96xf32, #tpu.memory_space<vmem>>, %arg6: memref<1x96xf32, #tpu.memory_space<vmem>>, %arg7: memref<32x96xf32, #tpu.memory_space<vmem>>, %arg8: memref<1x96xf32, #tpu.memory_space<vmem>>, %arg9: memref<32x96xf32, #tpu.memory_space<vmem>>, %arg10: memref<1x96xf32, #tpu.memory_space<vmem>>, %arg11: memref<16x96xf32, #tpu.memory_space<vmem>>, %arg12: memref<1x96xf32, #tpu.memory_space<vmem>>, %arg13: memref<32x96xf32, #tpu.memory_space<vmem>>, %arg14: memref<1x96xf32, #tpu.memory_space<vmem>>, %arg15: memref<32x96xf32, #tpu.memory_space<vmem>>, %arg16: memref<1x96xf32, #tpu.memory_space<vmem>>, %arg17: memref<32x96xf32, #tpu.memory_space<vmem>>, %arg18: memref<1x96xf32, #tpu.memory_space<vmem>>, %arg19: memref<32x2xf32, #tpu.memory_space<vmem>>, %arg20: memref<1x2xf32, #tpu.memory_space<vmem>>, %arg21: memref<32x16xf32, #tpu.memory_space<vmem>>, %arg22: memref<1x16xf32, #tpu.memory_space<vmem>>, %arg23: memref<4x2x2xf32, #tpu.memory_space<vmem>>, %arg24: memref<16x32xf32, #tpu.memory_space<vmem>>) attributes {dimension_semantics = [], scalar_prefetch = 0 : i64, scratch_operands = 1 : i64, tpu.core_type = #tpu.core_type<tc>} {
    %c0 = arith.constant 0 : index
    %c0_0 = arith.constant 0 : index
    %0 = vector.load %arg6[%c0, %c0_0] : memref<1x96xf32, #tpu.memory_space<vmem>>, vector<1x96xf32>
    %1 = vector.shape_cast %0 : vector<1x96xf32> to vector<1x96xf32>
    %2 = vector.broadcast %1 : vector<1x96xf32> to vector<2x96xf32>
    %c0_1 = arith.constant 0 : index
    %c0_2 = arith.constant 0 : index
    %3 = vector.load %arg10[%c0_1, %c0_2] : memref<1x96xf32, #tpu.memory_space<vmem>>, vector<1x96xf32>
    %4 = vector.shape_cast %3 : vector<1x96xf32> to vector<1x96xf32>
    %5 = vector.broadcast %4 : vector<1x96xf32> to vector<2x96xf32>
    %c0_3 = arith.constant 0 : index
    %c0_4 = arith.constant 0 : index
    %6 = vector.load %arg14[%c0_3, %c0_4] : memref<1x96xf32, #tpu.memory_space<vmem>>, vector<1x96xf32>
    %7 = vector.shape_cast %6 : vector<1x96xf32> to vector<1x96xf32>
    %8 = vector.broadcast %7 : vector<1x96xf32> to vector<2x96xf32>
    %c0_5 = arith.constant 0 : index
    %c0_6 = arith.constant 0 : index
    %9 = vector.load %arg18[%c0_5, %c0_6] : memref<1x96xf32, #tpu.memory_space<vmem>>, vector<1x96xf32>
    %10 = vector.shape_cast %9 : vector<1x96xf32> to vector<1x96xf32>
    %11 = vector.broadcast %10 : vector<1x96xf32> to vector<2x96xf32>
    %c0_7 = arith.constant 0 : index
    %c0_8 = arith.constant 0 : index
    %12 = vector.load %arg12[%c0_7, %c0_8] : memref<1x96xf32, #tpu.memory_space<vmem>>, vector<1x96xf32>
    %13 = vector.shape_cast %12 : vector<1x96xf32> to vector<1x96xf32>
    %14 = vector.broadcast %13 : vector<1x96xf32> to vector<2x96xf32>
    %c0_9 = arith.constant 0 : index
    %c0_10 = arith.constant 0 : index
    %15 = vector.load %arg16[%c0_9, %c0_10] : memref<1x96xf32, #tpu.memory_space<vmem>>, vector<1x96xf32>
    %16 = vector.shape_cast %15 : vector<1x96xf32> to vector<1x96xf32>
    %17 = vector.broadcast %16 : vector<1x96xf32> to vector<2x96xf32>
    %c0_11 = arith.constant 0 : index
    %c0_12 = arith.constant 0 : index
    %18 = vector.load %arg22[%c0_11, %c0_12] : memref<1x16xf32, #tpu.memory_space<vmem>>, vector<1x16xf32>
    %19 = vector.shape_cast %18 : vector<1x16xf32> to vector<1x16xf32>
    %20 = vector.broadcast %19 : vector<1x16xf32> to vector<2x16xf32>
    %c0_13 = arith.constant 0 : index
    %c0_14 = arith.constant 0 : index
    %21 = vector.load %arg20[%c0_13, %c0_14] : memref<1x2xf32, #tpu.memory_space<vmem>>, vector<1x2xf32>
    %22 = vector.shape_cast %21 : vector<1x2xf32> to vector<1x2xf32>
    %23 = vector.broadcast %22 : vector<1x2xf32> to vector<2x2xf32>
    %c0_15 = arith.constant 0 : index
    %c0_16 = arith.constant 0 : index
    %24 = vector.load %arg0[%c0_15, %c0_16] : memref<16x2xf32, #tpu.memory_space<vmem>>, vector<16x2xf32>
    %c0_17 = arith.constant 0 : index
    %c0_18 = arith.constant 0 : index
    %25 = vector.load %arg1[%c0_17, %c0_18] : memref<2x16xf32, #tpu.memory_space<vmem>>, vector<2x16xf32>
    %cst = arith.constant dense<0.000000e+00> : vector<16x16xf32>
    %26 = tpu.matmul %24, %25, %cst {dimension_numbers = #tpu.dot_dimension_numbers<[1], [0], [0], [1], [0, 0, 1, 1], [], []>} : vector<16x2xf32>, vector<2x16xf32>, vector<16x16xf32> -> vector<16x16xf32>
    %c0_19 = arith.constant 0 : index
    %c0_20 = arith.constant 0 : index
    %27 = vector.load %arg2[%c0_19, %c0_20] : memref<1x16xf32, #tpu.memory_space<vmem>>, vector<1x16xf32>
    %28 = vector.broadcast %27 : vector<1x16xf32> to vector<16x16xf32>
    %29 = arith.addf %26, %28 : vector<16x16xf32>
    %30 = math.tanh %29 : vector<16x16xf32>
    %c0_21 = arith.constant 0 : index
    %c0_22 = arith.constant 0 : index
    %31 = vector.load %arg3[%c0_21, %c0_22] : memref<16x96xf32, #tpu.memory_space<vmem>>, vector<16x96xf32>
    %cst_23 = arith.constant dense<0.000000e+00> : vector<16x96xf32>
    %32 = tpu.matmul %30, %31, %cst_23 {dimension_numbers = #tpu.dot_dimension_numbers<[1], [0], [0], [1], [0, 0, 1, 1], [], []>} : vector<16x16xf32>, vector<16x96xf32>, vector<16x96xf32> -> vector<16x96xf32>
    %c0_24 = arith.constant 0 : index
    %c0_25 = arith.constant 0 : index
    %33 = vector.load %arg4[%c0_24, %c0_25] : memref<1x96xf32, #tpu.memory_space<vmem>>, vector<1x96xf32>
    %34 = vector.broadcast %33 : vector<1x96xf32> to vector<16x96xf32>
    %35 = arith.addf %32, %34 : vector<16x96xf32>
    %cst_26 = arith.constant 0.000000e+00 : f32
    %36 = vector.broadcast %cst_26 : f32 to vector<2x32xf32>
    %37 = vector.extract_strided_slice %35 {offsets = [0, 0], sizes = [2, 96], strides = [1, 1]} : vector<16x96xf32> to vector<2x96xf32>
    %c0_27 = arith.constant 0 : index
    %c0_28 = arith.constant 0 : index
    %38 = vector.load %arg5[%c0_27, %c0_28] : memref<32x96xf32, #tpu.memory_space<vmem>>, vector<32x96xf32>
    %cst_29 = arith.constant dense<0.000000e+00> : vector<2x96xf32>
    %39 = tpu.matmul %36, %38, %cst_29 {dimension_numbers = #tpu.dot_dimension_numbers<[1], [0], [0], [1], [0, 0, 1, 1], [], []>} : vector<2x32xf32>, vector<32x96xf32>, vector<2x96xf32> -> vector<2x96xf32>
    %40 = arith.addf %39, %2 : vector<2x96xf32>
    %41 = vector.extract_strided_slice %37 {offsets = [0, 0], sizes = [2, 32], strides = [1, 1]} : vector<2x96xf32> to vector<2x32xf32>
    %42 = vector.extract_strided_slice %40 {offsets = [0, 0], sizes = [2, 32], strides = [1, 1]} : vector<2x96xf32> to vector<2x32xf32>
    %43 = arith.addf %41, %42 : vector<2x32xf32>
    %44 = arith.negf %43 : vector<2x32xf32>
    %45 = math.exp %44 : vector<2x32xf32>
    %cst_30 = arith.constant 1.000000e+00 : f32
    %46 = vector.broadcast %cst_30 : f32 to vector<2x32xf32>
    %47 = arith.addf %46, %45 : vector<2x32xf32>
    %48 = arith.divf %46, %47 : vector<2x32xf32>
    %49 = vector.extract_strided_slice %37 {offsets = [0, 32], sizes = [2, 32], strides = [1, 1]} : vector<2x96xf32> to vector<2x32xf32>
    %50 = vector.extract_strided_slice %40 {offsets = [0, 32], sizes = [2, 32], strides = [1, 1]} : vector<2x96xf32> to vector<2x32xf32>
    %51 = arith.addf %49, %50 : vector<2x32xf32>
    %52 = arith.negf %51 : vector<2x32xf32>
    %53 = math.exp %52 : vector<2x32xf32>
    %cst_31 = arith.constant 1.000000e+00 : f32
    %54 = vector.broadcast %cst_31 : f32 to vector<2x32xf32>
    %55 = arith.addf %54, %53 : vector<2x32xf32>
    %56 = arith.divf %54, %55 : vector<2x32xf32>
    %57 = vector.extract_strided_slice %37 {offsets = [0, 64], sizes = [2, 32], strides = [1, 1]} : vector<2x96xf32> to vector<2x32xf32>
    %58 = vector.extract_strided_slice %40 {offsets = [0, 64], sizes = [2, 32], strides = [1, 1]} : vector<2x96xf32> to vector<2x32xf32>
    %59 = arith.mulf %48, %58 : vector<2x32xf32>
    %60 = arith.addf %57, %59 : vector<2x32xf32>
    %61 = math.tanh %60 : vector<2x32xf32>
    %cst_32 = arith.constant 1.000000e+00 : f32
    %62 = vector.broadcast %cst_32 : f32 to vector<2x32xf32>
    %63 = arith.subf %62, %56 : vector<2x32xf32>
    %64 = arith.mulf %63, %61 : vector<2x32xf32>
    %65 = arith.mulf %56, %36 : vector<2x32xf32>
    %66 = arith.addf %64, %65 : vector<2x32xf32>
    %c0_33 = arith.constant 0 : index
    %c0_34 = arith.constant 0 : index
    %67 = vector.load %arg24[%c0_33, %c0_34] : memref<16x32xf32, #tpu.memory_space<vmem>>, vector<2x32xf32>
    tpu.vector_store %arg24[%c0_33, %c0_34], %66 {strides = array<i32>} : memref<16x32xf32, #tpu.memory_space<vmem>>, vector<2x32xf32>,
    %68 = vector.extract_strided_slice %35 {offsets = [2, 0], sizes = [2, 96], strides = [1, 1]} : vector<16x96xf32> to vector<2x96xf32>
    %c0_35 = arith.constant 0 : index
    %c0_36 = arith.constant 0 : index
    %69 = vector.load %arg5[%c0_35, %c0_36] : memref<32x96xf32, #tpu.memory_space<vmem>>, vector<32x96xf32>
    %cst_37 = arith.constant dense<0.000000e+00> : vector<2x96xf32>
    %70 = tpu.matmul %66, %69, %cst_37 {dimension_numbers = #tpu.dot_dimension_numbers<[1], [0], [0], [1], [0, 0, 1, 1], [], []>} : vector<2x32xf32>, vector<32x96xf32>, vector<2x96xf32> -> vector<2x96xf32>
    %71 = arith.addf %70, %2 : vector<2x96xf32>
    %72 = vector.extract_strided_slice %68 {offsets = [0, 0], sizes = [2, 32], strides = [1, 1]} : vector<2x96xf32> to vector<2x32xf32>
    %73 = vector.extract_strided_slice %71 {offsets = [0, 0], sizes = [2, 32], strides = [1, 1]} : vector<2x96xf32> to vector<2x32xf32>
    %74 = arith.addf %72, %73 : vector<2x32xf32>
    %75 = arith.negf %74 : vector<2x32xf32>
    %76 = math.exp %75 : vector<2x32xf32>
    %cst_38 = arith.constant 1.000000e+00 : f32
    %77 = vector.broadcast %cst_38 : f32 to vector<2x32xf32>
    %78 = arith.addf %77, %76 : vector<2x32xf32>
    %79 = arith.divf %77, %78 : vector<2x32xf32>
    %80 = vector.extract_strided_slice %68 {offsets = [0, 32], sizes = [2, 32], strides = [1, 1]} : vector<2x96xf32> to vector<2x32xf32>
    %81 = vector.extract_strided_slice %71 {offsets = [0, 32], sizes = [2, 32], strides = [1, 1]} : vector<2x96xf32> to vector<2x32xf32>
    %82 = arith.addf %80, %81 : vector<2x32xf32>
    %83 = arith.negf %82 : vector<2x32xf32>
    %84 = math.exp %83 : vector<2x32xf32>
    %cst_39 = arith.constant 1.000000e+00 : f32
    %85 = vector.broadcast %cst_39 : f32 to vector<2x32xf32>
    %86 = arith.addf %85, %84 : vector<2x32xf32>
    %87 = arith.divf %85, %86 : vector<2x32xf32>
    %88 = vector.extract_strided_slice %68 {offsets = [0, 64], sizes = [2, 32], strides = [1, 1]} : vector<2x96xf32> to vector<2x32xf32>
    %89 = vector.extract_strided_slice %71 {offsets = [0, 64], sizes = [2, 32], strides = [1, 1]} : vector<2x96xf32> to vector<2x32xf32>
    %90 = arith.mulf %79, %89 : vector<2x32xf32>
    %91 = arith.addf %88, %90 : vector<2x32xf32>
    %92 = math.tanh %91 : vector<2x32xf32>
    %cst_40 = arith.constant 1.000000e+00 : f32
    %93 = vector.broadcast %cst_40 : f32 to vector<2x32xf32>
    %94 = arith.subf %93, %87 : vector<2x32xf32>
    %95 = arith.mulf %94, %92 : vector<2x32xf32>
    %96 = arith.mulf %87, %66 : vector<2x32xf32>
    %97 = arith.addf %95, %96 : vector<2x32xf32>
    %c2 = arith.constant 2 : index
    %c0_41 = arith.constant 0 : index
    %98 = vector.load %arg24[%c2, %c0_41] : memref<16x32xf32, #tpu.memory_space<vmem>>, vector<2x32xf32>
    tpu.vector_store %arg24[%c2, %c0_41], %97 {strides = array<i32>} : memref<16x32xf32, #tpu.memory_space<vmem>>, vector<2x32xf32>,
    %99 = vector.extract_strided_slice %35 {offsets = [4, 0], sizes = [2, 96], strides = [1, 1]} : vector<16x96xf32> to vector<2x96xf32>
    %c0_42 = arith.constant 0 : index
    %c0_43 = arith.constant 0 : index
    %100 = vector.load %arg5[%c0_42, %c0_43] : memref<32x96xf32, #tpu.memory_space<vmem>>, vector<32x96xf32>
    %cst_44 = arith.constant dense<0.000000e+00> : vector<2x96xf32>
    %101 = tpu.matmul %97, %100, %cst_44 {dimension_numbers = #tpu.dot_dimension_numbers<[1], [0], [0], [1], [0, 0, 1, 1], [], []>} : vector<2x32xf32>, vector<32x96xf32>, vector<2x96xf32> -> vector<2x96xf32>
    %102 = arith.addf %101, %2 : vector<2x96xf32>
    %103 = vector.extract_strided_slice %99 {offsets = [0, 0], sizes = [2, 32], strides = [1, 1]} : vector<2x96xf32> to vector<2x32xf32>
    %104 = vector.extract_strided_slice %102 {offsets = [0, 0], sizes = [2, 32], strides = [1, 1]} : vector<2x96xf32> to vector<2x32xf32>
    %105 = arith.addf %103, %104 : vector<2x32xf32>
    %106 = arith.negf %105 : vector<2x32xf32>
    %107 = math.exp %106 : vector<2x32xf32>
    %cst_45 = arith.constant 1.000000e+00 : f32
    %108 = vector.broadcast %cst_45 : f32 to vector<2x32xf32>
    %109 = arith.addf %108, %107 : vector<2x32xf32>
    %110 = arith.divf %108, %109 : vector<2x32xf32>
    %111 = vector.extract_strided_slice %99 {offsets = [0, 32], sizes = [2, 32], strides = [1, 1]} : vector<2x96xf32> to vector<2x32xf32>
    %112 = vector.extract_strided_slice %102 {offsets = [0, 32], sizes = [2, 32], strides = [1, 1]} : vector<2x96xf32> to vector<2x32xf32>
    %113 = arith.addf %111, %112 : vector<2x32xf32>
    %114 = arith.negf %113 : vector<2x32xf32>
    %115 = math.exp %114 : vector<2x32xf32>
    %cst_46 = arith.constant 1.000000e+00 : f32
    %116 = vector.broadcast %cst_46 : f32 to vector<2x32xf32>
    %117 = arith.addf %116, %115 : vector<2x32xf32>
    %118 = arith.divf %116, %117 : vector<2x32xf32>
    %119 = vector.extract_strided_slice %99 {offsets = [0, 64], sizes = [2, 32], strides = [1, 1]} : vector<2x96xf32> to vector<2x32xf32>
    %120 = vector.extract_strided_slice %102 {offsets = [0, 64], sizes = [2, 32], strides = [1, 1]} : vector<2x96xf32> to vector<2x32xf32>
    %121 = arith.mulf %110, %120 : vector<2x32xf32>
    %122 = arith.addf %119, %121 : vector<2x32xf32>
    %123 = math.tanh %122 : vector<2x32xf32>
    %cst_47 = arith.constant 1.000000e+00 : f32
    %124 = vector.broadcast %cst_47 : f32 to vector<2x32xf32>
    %125 = arith.subf %124, %118 : vector<2x32xf32>
    %126 = arith.mulf %125, %123 : vector<2x32xf32>
    %127 = arith.mulf %118, %97 : vector<2x32xf32>
    %128 = arith.addf %126, %127 : vector<2x32xf32>
    %c4 = arith.constant 4 : index
    %c0_48 = arith.constant 0 : index
    %129 = vector.load %arg24[%c4, %c0_48] : memref<16x32xf32, #tpu.memory_space<vmem>>, vector<2x32xf32>
    tpu.vector_store %arg24[%c4, %c0_48], %128 {strides = array<i32>} : memref<16x32xf32, #tpu.memory_space<vmem>>, vector<2x32xf32>,
    %130 = vector.extract_strided_slice %35 {offsets = [6, 0], sizes = [2, 96], strides = [1, 1]} : vector<16x96xf32> to vector<2x96xf32>
    %c0_49 = arith.constant 0 : index
    %c0_50 = arith.constant 0 : index
    %131 = vector.load %arg5[%c0_49, %c0_50] : memref<32x96xf32, #tpu.memory_space<vmem>>, vector<32x96xf32>
    %cst_51 = arith.constant dense<0.000000e+00> : vector<2x96xf32>
    %132 = tpu.matmul %128, %131, %cst_51 {dimension_numbers = #tpu.dot_dimension_numbers<[1], [0], [0], [1], [0, 0, 1, 1], [], []>} : vector<2x32xf32>, vector<32x96xf32>, vector<2x96xf32> -> vector<2x96xf32>
    %133 = arith.addf %132, %2 : vector<2x96xf32>
    %134 = vector.extract_strided_slice %130 {offsets = [0, 0], sizes = [2, 32], strides = [1, 1]} : vector<2x96xf32> to vector<2x32xf32>
    %135 = vector.extract_strided_slice %133 {offsets = [0, 0], sizes = [2, 32], strides = [1, 1]} : vector<2x96xf32> to vector<2x32xf32>
    %136 = arith.addf %134, %135 : vector<2x32xf32>
    %137 = arith.negf %136 : vector<2x32xf32>
    %138 = math.exp %137 : vector<2x32xf32>
    %cst_52 = arith.constant 1.000000e+00 : f32
    %139 = vector.broadcast %cst_52 : f32 to vector<2x32xf32>
    %140 = arith.addf %139, %138 : vector<2x32xf32>
    %141 = arith.divf %139, %140 : vector<2x32xf32>
    %142 = vector.extract_strided_slice %130 {offsets = [0, 32], sizes = [2, 32], strides = [1, 1]} : vector<2x96xf32> to vector<2x32xf32>
    %143 = vector.extract_strided_slice %133 {offsets = [0, 32], sizes = [2, 32], strides = [1, 1]} : vector<2x96xf32> to vector<2x32xf32>
    %144 = arith.addf %142, %143 : vector<2x32xf32>
    %145 = arith.negf %144 : vector<2x32xf32>
    %146 = math.exp %145 : vector<2x32xf32>
    %cst_53 = arith.constant 1.000000e+00 : f32
    %147 = vector.broadcast %cst_53 : f32 to vector<2x32xf32>
    %148 = arith.addf %147, %146 : vector<2x32xf32>
    %149 = arith.divf %147, %148 : vector<2x32xf32>
    %150 = vector.extract_strided_slice %130 {offsets = [0, 64], sizes = [2, 32], strides = [1, 1]} : vector<2x96xf32> to vector<2x32xf32>
    %151 = vector.extract_strided_slice %133 {offsets = [0, 64], sizes = [2, 32], strides = [1, 1]} : vector<2x96xf32> to vector<2x32xf32>
    %152 = arith.mulf %141, %151 : vector<2x32xf32>
    %153 = arith.addf %150, %152 : vector<2x32xf32>
    %154 = math.tanh %153 : vector<2x32xf32>
    %cst_54 = arith.constant 1.000000e+00 : f32
    %155 = vector.broadcast %cst_54 : f32 to vector<2x32xf32>
    %156 = arith.subf %155, %149 : vector<2x32xf32>
    %157 = arith.mulf %156, %154 : vector<2x32xf32>
    %158 = arith.mulf %149, %128 : vector<2x32xf32>
    %159 = arith.addf %157, %158 : vector<2x32xf32>
    %c6 = arith.constant 6 : index
    %c0_55 = arith.constant 0 : index
    %160 = vector.load %arg24[%c6, %c0_55] : memref<16x32xf32, #tpu.memory_space<vmem>>, vector<2x32xf32>
    tpu.vector_store %arg24[%c6, %c0_55], %159 {strides = array<i32>} : memref<16x32xf32, #tpu.memory_space<vmem>>, vector<2x32xf32>,
    %161 = vector.extract_strided_slice %35 {offsets = [8, 0], sizes = [2, 96], strides = [1, 1]} : vector<16x96xf32> to vector<2x96xf32>
    %c0_56 = arith.constant 0 : index
    %c0_57 = arith.constant 0 : index
    %162 = vector.load %arg5[%c0_56, %c0_57] : memref<32x96xf32, #tpu.memory_space<vmem>>, vector<32x96xf32>
    %cst_58 = arith.constant dense<0.000000e+00> : vector<2x96xf32>
    %163 = tpu.matmul %159, %162, %cst_58 {dimension_numbers = #tpu.dot_dimension_numbers<[1], [0], [0], [1], [0, 0, 1, 1], [], []>} : vector<2x32xf32>, vector<32x96xf32>, vector<2x96xf32> -> vector<2x96xf32>
    %164 = arith.addf %163, %2 : vector<2x96xf32>
    %165 = vector.extract_strided_slice %161 {offsets = [0, 0], sizes = [2, 32], strides = [1, 1]} : vector<2x96xf32> to vector<2x32xf32>
    %166 = vector.extract_strided_slice %164 {offsets = [0, 0], sizes = [2, 32], strides = [1, 1]} : vector<2x96xf32> to vector<2x32xf32>
    %167 = arith.addf %165, %166 : vector<2x32xf32>
    %168 = arith.negf %167 : vector<2x32xf32>
    %169 = math.exp %168 : vector<2x32xf32>
    %cst_59 = arith.constant 1.000000e+00 : f32
    %170 = vector.broadcast %cst_59 : f32 to vector<2x32xf32>
    %171 = arith.addf %170, %169 : vector<2x32xf32>
    %172 = arith.divf %170, %171 : vector<2x32xf32>
    %173 = vector.extract_strided_slice %161 {offsets = [0, 32], sizes = [2, 32], strides = [1, 1]} : vector<2x96xf32> to vector<2x32xf32>
    %174 = vector.extract_strided_slice %164 {offsets = [0, 32], sizes = [2, 32], strides = [1, 1]} : vector<2x96xf32> to vector<2x32xf32>
    %175 = arith.addf %173, %174 : vector<2x32xf32>
    %176 = arith.negf %175 : vector<2x32xf32>
    %177 = math.exp %176 : vector<2x32xf32>
    %cst_60 = arith.constant 1.000000e+00 : f32
    %178 = vector.broadcast %cst_60 : f32 to vector<2x32xf32>
    %179 = arith.addf %178, %177 : vector<2x32xf32>
    %180 = arith.divf %178, %179 : vector<2x32xf32>
    %181 = vector.extract_strided_slice %161 {offsets = [0, 64], sizes = [2, 32], strides = [1, 1]} : vector<2x96xf32> to vector<2x32xf32>
    %182 = vector.extract_strided_slice %164 {offsets = [0, 64], sizes = [2, 32], strides = [1, 1]} : vector<2x96xf32> to vector<2x32xf32>
    %183 = arith.mulf %172, %182 : vector<2x32xf32>
    %184 = arith.addf %181, %183 : vector<2x32xf32>
    %185 = math.tanh %184 : vector<2x32xf32>
    %cst_61 = arith.constant 1.000000e+00 : f32
    %186 = vector.broadcast %cst_61 : f32 to vector<2x32xf32>
    %187 = arith.subf %186, %180 : vector<2x32xf32>
    %188 = arith.mulf %187, %185 : vector<2x32xf32>
    %189 = arith.mulf %180, %159 : vector<2x32xf32>
    %190 = arith.addf %188, %189 : vector<2x32xf32>
    %c8 = arith.constant 8 : index
    %c0_62 = arith.constant 0 : index
    %191 = vector.load %arg24[%c8, %c0_62] : memref<16x32xf32, #tpu.memory_space<vmem>>, vector<2x32xf32>
    tpu.vector_store %arg24[%c8, %c0_62], %190 {strides = array<i32>} : memref<16x32xf32, #tpu.memory_space<vmem>>, vector<2x32xf32>,
    %192 = vector.extract_strided_slice %35 {offsets = [10, 0], sizes = [2, 96], strides = [1, 1]} : vector<16x96xf32> to vector<2x96xf32>
    %c0_63 = arith.constant 0 : index
    %c0_64 = arith.constant 0 : index
    %193 = vector.load %arg5[%c0_63, %c0_64] : memref<32x96xf32, #tpu.memory_space<vmem>>, vector<32x96xf32>
    %cst_65 = arith.constant dense<0.000000e+00> : vector<2x96xf32>
    %194 = tpu.matmul %190, %193, %cst_65 {dimension_numbers = #tpu.dot_dimension_numbers<[1], [0], [0], [1], [0, 0, 1, 1], [], []>} : vector<2x32xf32>, vector<32x96xf32>, vector<2x96xf32> -> vector<2x96xf32>
    %195 = arith.addf %194, %2 : vector<2x96xf32>
    %196 = vector.extract_strided_slice %192 {offsets = [0, 0], sizes = [2, 32], strides = [1, 1]} : vector<2x96xf32> to vector<2x32xf32>
    %197 = vector.extract_strided_slice %195 {offsets = [0, 0], sizes = [2, 32], strides = [1, 1]} : vector<2x96xf32> to vector<2x32xf32>
    %198 = arith.addf %196, %197 : vector<2x32xf32>
    %199 = arith.negf %198 : vector<2x32xf32>
    %200 = math.exp %199 : vector<2x32xf32>
    %cst_66 = arith.constant 1.000000e+00 : f32
    %201 = vector.broadcast %cst_66 : f32 to vector<2x32xf32>
    %202 = arith.addf %201, %200 : vector<2x32xf32>
    %203 = arith.divf %201, %202 : vector<2x32xf32>
    %204 = vector.extract_strided_slice %192 {offsets = [0, 32], sizes = [2, 32], strides = [1, 1]} : vector<2x96xf32> to vector<2x32xf32>
    %205 = vector.extract_strided_slice %195 {offsets = [0, 32], sizes = [2, 32], strides = [1, 1]} : vector<2x96xf32> to vector<2x32xf32>
    %206 = arith.addf %204, %205 : vector<2x32xf32>
    %207 = arith.negf %206 : vector<2x32xf32>
    %208 = math.exp %207 : vector<2x32xf32>
    %cst_67 = arith.constant 1.000000e+00 : f32
    %209 = vector.broadcast %cst_67 : f32 to vector<2x32xf32>
    %210 = arith.addf %209, %208 : vector<2x32xf32>
    %211 = arith.divf %209, %210 : vector<2x32xf32>
    %212 = vector.extract_strided_slice %192 {offsets = [0, 64], sizes = [2, 32], strides = [1, 1]} : vector<2x96xf32> to vector<2x32xf32>
    %213 = vector.extract_strided_slice %195 {offsets = [0, 64], sizes = [2, 32], strides = [1, 1]} : vector<2x96xf32> to vector<2x32xf32>
    %214 = arith.mulf %203, %213 : vector<2x32xf32>
    %215 = arith.addf %212, %214 : vector<2x32xf32>
    %216 = math.tanh %215 : vector<2x32xf32>
    %cst_68 = arith.constant 1.000000e+00 : f32
    %217 = vector.broadcast %cst_68 : f32 to vector<2x32xf32>
    %218 = arith.subf %217, %211 : vector<2x32xf32>
    %219 = arith.mulf %218, %216 : vector<2x32xf32>
    %220 = arith.mulf %211, %190 : vector<2x32xf32>
    %221 = arith.addf %219, %220 : vector<2x32xf32>
    %c10 = arith.constant 10 : index
    %c0_69 = arith.constant 0 : index
    %222 = vector.load %arg24[%c10, %c0_69] : memref<16x32xf32, #tpu.memory_space<vmem>>, vector<2x32xf32>
    tpu.vector_store %arg24[%c10, %c0_69], %221 {strides = array<i32>} : memref<16x32xf32, #tpu.memory_space<vmem>>, vector<2x32xf32>,
    %223 = vector.extract_strided_slice %35 {offsets = [12, 0], sizes = [2, 96], strides = [1, 1]} : vector<16x96xf32> to vector<2x96xf32>
    %c0_70 = arith.constant 0 : index
    %c0_71 = arith.constant 0 : index
    %224 = vector.load %arg5[%c0_70, %c0_71] : memref<32x96xf32, #tpu.memory_space<vmem>>, vector<32x96xf32>
    %cst_72 = arith.constant dense<0.000000e+00> : vector<2x96xf32>
    %225 = tpu.matmul %221, %224, %cst_72 {dimension_numbers = #tpu.dot_dimension_numbers<[1], [0], [0], [1], [0, 0, 1, 1], [], []>} : vector<2x32xf32>, vector<32x96xf32>, vector<2x96xf32> -> vector<2x96xf32>
    %226 = arith.addf %225, %2 : vector<2x96xf32>
    %227 = vector.extract_strided_slice %223 {offsets = [0, 0], sizes = [2, 32], strides = [1, 1]} : vector<2x96xf32> to vector<2x32xf32>
    %228 = vector.extract_strided_slice %226 {offsets = [0, 0], sizes = [2, 32], strides = [1, 1]} : vector<2x96xf32> to vector<2x32xf32>
    %229 = arith.addf %227, %228 : vector<2x32xf32>
    %230 = arith.negf %229 : vector<2x32xf32>
    %231 = math.exp %230 : vector<2x32xf32>
    %cst_73 = arith.constant 1.000000e+00 : f32
    %232 = vector.broadcast %cst_73 : f32 to vector<2x32xf32>
    %233 = arith.addf %232, %231 : vector<2x32xf32>
    %234 = arith.divf %232, %233 : vector<2x32xf32>
    %235 = vector.extract_strided_slice %223 {offsets = [0, 32], sizes = [2, 32], strides = [1, 1]} : vector<2x96xf32> to vector<2x32xf32>
    %236 = vector.extract_strided_slice %226 {offsets = [0, 32], sizes = [2, 32], strides = [1, 1]} : vector<2x96xf32> to vector<2x32xf32>
    %237 = arith.addf %235, %236 : vector<2x32xf32>
    %238 = arith.negf %237 : vector<2x32xf32>
    %239 = math.exp %238 : vector<2x32xf32>
    %cst_74 = arith.constant 1.000000e+00 : f32
    %240 = vector.broadcast %cst_74 : f32 to vector<2x32xf32>
    %241 = arith.addf %240, %239 : vector<2x32xf32>
    %242 = arith.divf %240, %241 : vector<2x32xf32>
    %243 = vector.extract_strided_slice %223 {offsets = [0, 64], sizes = [2, 32], strides = [1, 1]} : vector<2x96xf32> to vector<2x32xf32>
    %244 = vector.extract_strided_slice %226 {offsets = [0, 64], sizes = [2, 32], strides = [1, 1]} : vector<2x96xf32> to vector<2x32xf32>
    %245 = arith.mulf %234, %244 : vector<2x32xf32>
    %246 = arith.addf %243, %245 : vector<2x32xf32>
    %247 = math.tanh %246 : vector<2x32xf32>
    %cst_75 = arith.constant 1.000000e+00 : f32
    %248 = vector.broadcast %cst_75 : f32 to vector<2x32xf32>
    %249 = arith.subf %248, %242 : vector<2x32xf32>
    %250 = arith.mulf %249, %247 : vector<2x32xf32>
    %251 = arith.mulf %242, %221 : vector<2x32xf32>
    %252 = arith.addf %250, %251 : vector<2x32xf32>
    %c12 = arith.constant 12 : index
    %c0_76 = arith.constant 0 : index
    %253 = vector.load %arg24[%c12, %c0_76] : memref<16x32xf32, #tpu.memory_space<vmem>>, vector<2x32xf32>
    tpu.vector_store %arg24[%c12, %c0_76], %252 {strides = array<i32>} : memref<16x32xf32, #tpu.memory_space<vmem>>, vector<2x32xf32>,
    %254 = vector.extract_strided_slice %35 {offsets = [14, 0], sizes = [2, 96], strides = [1, 1]} : vector<16x96xf32> to vector<2x96xf32>
    %c0_77 = arith.constant 0 : index
    %c0_78 = arith.constant 0 : index
    %255 = vector.load %arg5[%c0_77, %c0_78] : memref<32x96xf32, #tpu.memory_space<vmem>>, vector<32x96xf32>
    %cst_79 = arith.constant dense<0.000000e+00> : vector<2x96xf32>
    %256 = tpu.matmul %252, %255, %cst_79 {dimension_numbers = #tpu.dot_dimension_numbers<[1], [0], [0], [1], [0, 0, 1, 1], [], []>} : vector<2x32xf32>, vector<32x96xf32>, vector<2x96xf32> -> vector<2x96xf32>
    %257 = arith.addf %256, %2 : vector<2x96xf32>
    %258 = vector.extract_strided_slice %254 {offsets = [0, 0], sizes = [2, 32], strides = [1, 1]} : vector<2x96xf32> to vector<2x32xf32>
    %259 = vector.extract_strided_slice %257 {offsets = [0, 0], sizes = [2, 32], strides = [1, 1]} : vector<2x96xf32> to vector<2x32xf32>
    %260 = arith.addf %258, %259 : vector<2x32xf32>
    %261 = arith.negf %260 : vector<2x32xf32>
    %262 = math.exp %261 : vector<2x32xf32>
    %cst_80 = arith.constant 1.000000e+00 : f32
    %263 = vector.broadcast %cst_80 : f32 to vector<2x32xf32>
    %264 = arith.addf %263, %262 : vector<2x32xf32>
    %265 = arith.divf %263, %264 : vector<2x32xf32>
    %266 = vector.extract_strided_slice %254 {offsets = [0, 32], sizes = [2, 32], strides = [1, 1]} : vector<2x96xf32> to vector<2x32xf32>
    %267 = vector.extract_strided_slice %257 {offsets = [0, 32], sizes = [2, 32], strides = [1, 1]} : vector<2x96xf32> to vector<2x32xf32>
    %268 = arith.addf %266, %267 : vector<2x32xf32>
    %269 = arith.negf %268 : vector<2x32xf32>
    %270 = math.exp %269 : vector<2x32xf32>
    %cst_81 = arith.constant 1.000000e+00 : f32
    %271 = vector.broadcast %cst_81 : f32 to vector<2x32xf32>
    %272 = arith.addf %271, %270 : vector<2x32xf32>
    %273 = arith.divf %271, %272 : vector<2x32xf32>
    %274 = vector.extract_strided_slice %254 {offsets = [0, 64], sizes = [2, 32], strides = [1, 1]} : vector<2x96xf32> to vector<2x32xf32>
    %275 = vector.extract_strided_slice %257 {offsets = [0, 64], sizes = [2, 32], strides = [1, 1]} : vector<2x96xf32> to vector<2x32xf32>
    %276 = arith.mulf %265, %275 : vector<2x32xf32>
    %277 = arith.addf %274, %276 : vector<2x32xf32>
    %278 = math.tanh %277 : vector<2x32xf32>
    %cst_82 = arith.constant 1.000000e+00 : f32
    %279 = vector.broadcast %cst_82 : f32 to vector<2x32xf32>
    %280 = arith.subf %279, %273 : vector<2x32xf32>
    %281 = arith.mulf %280, %278 : vector<2x32xf32>
    %282 = arith.mulf %273, %252 : vector<2x32xf32>
    %283 = arith.addf %281, %282 : vector<2x32xf32>
    %c14 = arith.constant 14 : index
    %c0_83 = arith.constant 0 : index
    %284 = vector.load %arg24[%c14, %c0_83] : memref<16x32xf32, #tpu.memory_space<vmem>>, vector<2x32xf32>
    tpu.vector_store %arg24[%c14, %c0_83], %283 {strides = array<i32>} : memref<16x32xf32, #tpu.memory_space<vmem>>, vector<2x32xf32>,
    %c0_84 = arith.constant 0 : index
    %c0_85 = arith.constant 0 : index
    %285 = vector.load %arg24[%c0_84, %c0_85] : memref<16x32xf32, #tpu.memory_space<vmem>>, vector<16x32xf32>
    %c0_86 = arith.constant 0 : index
    %c0_87 = arith.constant 0 : index
    %286 = vector.load %arg7[%c0_86, %c0_87] : memref<32x96xf32, #tpu.memory_space<vmem>>, vector<32x96xf32>
    %cst_88 = arith.constant dense<0.000000e+00> : vector<16x96xf32>
    %287 = tpu.matmul %285, %286, %cst_88 {dimension_numbers = #tpu.dot_dimension_numbers<[1], [0], [0], [1], [0, 0, 1, 1], [], []>} : vector<16x32xf32>, vector<32x96xf32>, vector<16x96xf32> -> vector<16x96xf32>
    %c0_89 = arith.constant 0 : index
    %c0_90 = arith.constant 0 : index
    %288 = vector.load %arg8[%c0_89, %c0_90] : memref<1x96xf32, #tpu.memory_space<vmem>>, vector<1x96xf32>
    %289 = vector.broadcast %288 : vector<1x96xf32> to vector<16x96xf32>
    %290 = arith.addf %287, %289 : vector<16x96xf32>
    %291 = vector.extract_strided_slice %290 {offsets = [0, 0], sizes = [2, 96], strides = [1, 1]} : vector<16x96xf32> to vector<2x96xf32>
    %c0_91 = arith.constant 0 : index
    %c0_92 = arith.constant 0 : index
    %292 = vector.load %arg9[%c0_91, %c0_92] : memref<32x96xf32, #tpu.memory_space<vmem>>, vector<32x96xf32>
    %cst_93 = arith.constant dense<0.000000e+00> : vector<2x96xf32>
    %293 = tpu.matmul %283, %292, %cst_93 {dimension_numbers = #tpu.dot_dimension_numbers<[1], [0], [0], [1], [0, 0, 1, 1], [], []>} : vector<2x32xf32>, vector<32x96xf32>, vector<2x96xf32> -> vector<2x96xf32>
    %294 = arith.addf %293, %5 : vector<2x96xf32>
    %295 = vector.extract_strided_slice %291 {offsets = [0, 0], sizes = [2, 32], strides = [1, 1]} : vector<2x96xf32> to vector<2x32xf32>
    %296 = vector.extract_strided_slice %294 {offsets = [0, 0], sizes = [2, 32], strides = [1, 1]} : vector<2x96xf32> to vector<2x32xf32>
    %297 = arith.addf %295, %296 : vector<2x32xf32>
    %298 = arith.negf %297 : vector<2x32xf32>
    %299 = math.exp %298 : vector<2x32xf32>
    %cst_94 = arith.constant 1.000000e+00 : f32
    %300 = vector.broadcast %cst_94 : f32 to vector<2x32xf32>
    %301 = arith.addf %300, %299 : vector<2x32xf32>
    %302 = arith.divf %300, %301 : vector<2x32xf32>
    %303 = vector.extract_strided_slice %291 {offsets = [0, 32], sizes = [2, 32], strides = [1, 1]} : vector<2x96xf32> to vector<2x32xf32>
    %304 = vector.extract_strided_slice %294 {offsets = [0, 32], sizes = [2, 32], strides = [1, 1]} : vector<2x96xf32> to vector<2x32xf32>
    %305 = arith.addf %303, %304 : vector<2x32xf32>
    %306 = arith.negf %305 : vector<2x32xf32>
    %307 = math.exp %306 : vector<2x32xf32>
    %cst_95 = arith.constant 1.000000e+00 : f32
    %308 = vector.broadcast %cst_95 : f32 to vector<2x32xf32>
    %309 = arith.addf %308, %307 : vector<2x32xf32>
    %310 = arith.divf %308, %309 : vector<2x32xf32>
    %311 = vector.extract_strided_slice %291 {offsets = [0, 64], sizes = [2, 32], strides = [1, 1]} : vector<2x96xf32> to vector<2x32xf32>
    %312 = vector.extract_strided_slice %294 {offsets = [0, 64], sizes = [2, 32], strides = [1, 1]} : vector<2x96xf32> to vector<2x32xf32>
    %313 = arith.mulf %302, %312 : vector<2x32xf32>
    %314 = arith.addf %311, %313 : vector<2x32xf32>
    %315 = math.tanh %314 : vector<2x32xf32>
    %cst_96 = arith.constant 1.000000e+00 : f32
    %316 = vector.broadcast %cst_96 : f32 to vector<2x32xf32>
    %317 = arith.subf %316, %310 : vector<2x32xf32>
    %318 = arith.mulf %317, %315 : vector<2x32xf32>
    %319 = arith.mulf %310, %283 : vector<2x32xf32>
    %320 = arith.addf %318, %319 : vector<2x32xf32>
    %321 = vector.extract_strided_slice %290 {offsets = [2, 0], sizes = [2, 96], strides = [1, 1]} : vector<16x96xf32> to vector<2x96xf32>
    %c0_97 = arith.constant 0 : index
    %c0_98 = arith.constant 0 : index
    %322 = vector.load %arg9[%c0_97, %c0_98] : memref<32x96xf32, #tpu.memory_space<vmem>>, vector<32x96xf32>
    %cst_99 = arith.constant dense<0.000000e+00> : vector<2x96xf32>
    %323 = tpu.matmul %320, %322, %cst_99 {dimension_numbers = #tpu.dot_dimension_numbers<[1], [0], [0], [1], [0, 0, 1, 1], [], []>} : vector<2x32xf32>, vector<32x96xf32>, vector<2x96xf32> -> vector<2x96xf32>
    %324 = arith.addf %323, %5 : vector<2x96xf32>
    %325 = vector.extract_strided_slice %321 {offsets = [0, 0], sizes = [2, 32], strides = [1, 1]} : vector<2x96xf32> to vector<2x32xf32>
    %326 = vector.extract_strided_slice %324 {offsets = [0, 0], sizes = [2, 32], strides = [1, 1]} : vector<2x96xf32> to vector<2x32xf32>
    %327 = arith.addf %325, %326 : vector<2x32xf32>
    %328 = arith.negf %327 : vector<2x32xf32>
    %329 = math.exp %328 : vector<2x32xf32>
    %cst_100 = arith.constant 1.000000e+00 : f32
    %330 = vector.broadcast %cst_100 : f32 to vector<2x32xf32>
    %331 = arith.addf %330, %329 : vector<2x32xf32>
    %332 = arith.divf %330, %331 : vector<2x32xf32>
    %333 = vector.extract_strided_slice %321 {offsets = [0, 32], sizes = [2, 32], strides = [1, 1]} : vector<2x96xf32> to vector<2x32xf32>
    %334 = vector.extract_strided_slice %324 {offsets = [0, 32], sizes = [2, 32], strides = [1, 1]} : vector<2x96xf32> to vector<2x32xf32>
    %335 = arith.addf %333, %334 : vector<2x32xf32>
    %336 = arith.negf %335 : vector<2x32xf32>
    %337 = math.exp %336 : vector<2x32xf32>
    %cst_101 = arith.constant 1.000000e+00 : f32
    %338 = vector.broadcast %cst_101 : f32 to vector<2x32xf32>
    %339 = arith.addf %338, %337 : vector<2x32xf32>
    %340 = arith.divf %338, %339 : vector<2x32xf32>
    %341 = vector.extract_strided_slice %321 {offsets = [0, 64], sizes = [2, 32], strides = [1, 1]} : vector<2x96xf32> to vector<2x32xf32>
    %342 = vector.extract_strided_slice %324 {offsets = [0, 64], sizes = [2, 32], strides = [1, 1]} : vector<2x96xf32> to vector<2x32xf32>
    %343 = arith.mulf %332, %342 : vector<2x32xf32>
    %344 = arith.addf %341, %343 : vector<2x32xf32>
    %345 = math.tanh %344 : vector<2x32xf32>
    %cst_102 = arith.constant 1.000000e+00 : f32
    %346 = vector.broadcast %cst_102 : f32 to vector<2x32xf32>
    %347 = arith.subf %346, %340 : vector<2x32xf32>
    %348 = arith.mulf %347, %345 : vector<2x32xf32>
    %349 = arith.mulf %340, %320 : vector<2x32xf32>
    %350 = arith.addf %348, %349 : vector<2x32xf32>
    %351 = vector.extract_strided_slice %290 {offsets = [4, 0], sizes = [2, 96], strides = [1, 1]} : vector<16x96xf32> to vector<2x96xf32>
    %c0_103 = arith.constant 0 : index
    %c0_104 = arith.constant 0 : index
    %352 = vector.load %arg9[%c0_103, %c0_104] : memref<32x96xf32, #tpu.memory_space<vmem>>, vector<32x96xf32>
    %cst_105 = arith.constant dense<0.000000e+00> : vector<2x96xf32>
    %353 = tpu.matmul %350, %352, %cst_105 {dimension_numbers = #tpu.dot_dimension_numbers<[1], [0], [0], [1], [0, 0, 1, 1], [], []>} : vector<2x32xf32>, vector<32x96xf32>, vector<2x96xf32> -> vector<2x96xf32>
    %354 = arith.addf %353, %5 : vector<2x96xf32>
    %355 = vector.extract_strided_slice %351 {offsets = [0, 0], sizes = [2, 32], strides = [1, 1]} : vector<2x96xf32> to vector<2x32xf32>
    %356 = vector.extract_strided_slice %354 {offsets = [0, 0], sizes = [2, 32], strides = [1, 1]} : vector<2x96xf32> to vector<2x32xf32>
    %357 = arith.addf %355, %356 : vector<2x32xf32>
    %358 = arith.negf %357 : vector<2x32xf32>
    %359 = math.exp %358 : vector<2x32xf32>
    %cst_106 = arith.constant 1.000000e+00 : f32
    %360 = vector.broadcast %cst_106 : f32 to vector<2x32xf32>
    %361 = arith.addf %360, %359 : vector<2x32xf32>
    %362 = arith.divf %360, %361 : vector<2x32xf32>
    %363 = vector.extract_strided_slice %351 {offsets = [0, 32], sizes = [2, 32], strides = [1, 1]} : vector<2x96xf32> to vector<2x32xf32>
    %364 = vector.extract_strided_slice %354 {offsets = [0, 32], sizes = [2, 32], strides = [1, 1]} : vector<2x96xf32> to vector<2x32xf32>
    %365 = arith.addf %363, %364 : vector<2x32xf32>
    %366 = arith.negf %365 : vector<2x32xf32>
    %367 = math.exp %366 : vector<2x32xf32>
    %cst_107 = arith.constant 1.000000e+00 : f32
    %368 = vector.broadcast %cst_107 : f32 to vector<2x32xf32>
    %369 = arith.addf %368, %367 : vector<2x32xf32>
    %370 = arith.divf %368, %369 : vector<2x32xf32>
    %371 = vector.extract_strided_slice %351 {offsets = [0, 64], sizes = [2, 32], strides = [1, 1]} : vector<2x96xf32> to vector<2x32xf32>
    %372 = vector.extract_strided_slice %354 {offsets = [0, 64], sizes = [2, 32], strides = [1, 1]} : vector<2x96xf32> to vector<2x32xf32>
    %373 = arith.mulf %362, %372 : vector<2x32xf32>
    %374 = arith.addf %371, %373 : vector<2x32xf32>
    %375 = math.tanh %374 : vector<2x32xf32>
    %cst_108 = arith.constant 1.000000e+00 : f32
    %376 = vector.broadcast %cst_108 : f32 to vector<2x32xf32>
    %377 = arith.subf %376, %370 : vector<2x32xf32>
    %378 = arith.mulf %377, %375 : vector<2x32xf32>
    %379 = arith.mulf %370, %350 : vector<2x32xf32>
    %380 = arith.addf %378, %379 : vector<2x32xf32>
    %381 = vector.extract_strided_slice %290 {offsets = [6, 0], sizes = [2, 96], strides = [1, 1]} : vector<16x96xf32> to vector<2x96xf32>
    %c0_109 = arith.constant 0 : index
    %c0_110 = arith.constant 0 : index
    %382 = vector.load %arg9[%c0_109, %c0_110] : memref<32x96xf32, #tpu.memory_space<vmem>>, vector<32x96xf32>
    %cst_111 = arith.constant dense<0.000000e+00> : vector<2x96xf32>
    %383 = tpu.matmul %380, %382, %cst_111 {dimension_numbers = #tpu.dot_dimension_numbers<[1], [0], [0], [1], [0, 0, 1, 1], [], []>} : vector<2x32xf32>, vector<32x96xf32>, vector<2x96xf32> -> vector<2x96xf32>
    %384 = arith.addf %383, %5 : vector<2x96xf32>
    %385 = vector.extract_strided_slice %381 {offsets = [0, 0], sizes = [2, 32], strides = [1, 1]} : vector<2x96xf32> to vector<2x32xf32>
    %386 = vector.extract_strided_slice %384 {offsets = [0, 0], sizes = [2, 32], strides = [1, 1]} : vector<2x96xf32> to vector<2x32xf32>
    %387 = arith.addf %385, %386 : vector<2x32xf32>
    %388 = arith.negf %387 : vector<2x32xf32>
    %389 = math.exp %388 : vector<2x32xf32>
    %cst_112 = arith.constant 1.000000e+00 : f32
    %390 = vector.broadcast %cst_112 : f32 to vector<2x32xf32>
    %391 = arith.addf %390, %389 : vector<2x32xf32>
    %392 = arith.divf %390, %391 : vector<2x32xf32>
    %393 = vector.extract_strided_slice %381 {offsets = [0, 32], sizes = [2, 32], strides = [1, 1]} : vector<2x96xf32> to vector<2x32xf32>
    %394 = vector.extract_strided_slice %384 {offsets = [0, 32], sizes = [2, 32], strides = [1, 1]} : vector<2x96xf32> to vector<2x32xf32>
    %395 = arith.addf %393, %394 : vector<2x32xf32>
    %396 = arith.negf %395 : vector<2x32xf32>
    %397 = math.exp %396 : vector<2x32xf32>
    %cst_113 = arith.constant 1.000000e+00 : f32
    %398 = vector.broadcast %cst_113 : f32 to vector<2x32xf32>
    %399 = arith.addf %398, %397 : vector<2x32xf32>
    %400 = arith.divf %398, %399 : vector<2x32xf32>
    %401 = vector.extract_strided_slice %381 {offsets = [0, 64], sizes = [2, 32], strides = [1, 1]} : vector<2x96xf32> to vector<2x32xf32>
    %402 = vector.extract_strided_slice %384 {offsets = [0, 64], sizes = [2, 32], strides = [1, 1]} : vector<2x96xf32> to vector<2x32xf32>
    %403 = arith.mulf %392, %402 : vector<2x32xf32>
    %404 = arith.addf %401, %403 : vector<2x32xf32>
    %405 = math.tanh %404 : vector<2x32xf32>
    %cst_114 = arith.constant 1.000000e+00 : f32
    %406 = vector.broadcast %cst_114 : f32 to vector<2x32xf32>
    %407 = arith.subf %406, %400 : vector<2x32xf32>
    %408 = arith.mulf %407, %405 : vector<2x32xf32>
    %409 = arith.mulf %400, %380 : vector<2x32xf32>
    %410 = arith.addf %408, %409 : vector<2x32xf32>
    %411 = vector.extract_strided_slice %290 {offsets = [8, 0], sizes = [2, 96], strides = [1, 1]} : vector<16x96xf32> to vector<2x96xf32>
    %c0_115 = arith.constant 0 : index
    %c0_116 = arith.constant 0 : index
    %412 = vector.load %arg9[%c0_115, %c0_116] : memref<32x96xf32, #tpu.memory_space<vmem>>, vector<32x96xf32>
    %cst_117 = arith.constant dense<0.000000e+00> : vector<2x96xf32>
    %413 = tpu.matmul %410, %412, %cst_117 {dimension_numbers = #tpu.dot_dimension_numbers<[1], [0], [0], [1], [0, 0, 1, 1], [], []>} : vector<2x32xf32>, vector<32x96xf32>, vector<2x96xf32> -> vector<2x96xf32>
    %414 = arith.addf %413, %5 : vector<2x96xf32>
    %415 = vector.extract_strided_slice %411 {offsets = [0, 0], sizes = [2, 32], strides = [1, 1]} : vector<2x96xf32> to vector<2x32xf32>
    %416 = vector.extract_strided_slice %414 {offsets = [0, 0], sizes = [2, 32], strides = [1, 1]} : vector<2x96xf32> to vector<2x32xf32>
    %417 = arith.addf %415, %416 : vector<2x32xf32>
    %418 = arith.negf %417 : vector<2x32xf32>
    %419 = math.exp %418 : vector<2x32xf32>
    %cst_118 = arith.constant 1.000000e+00 : f32
    %420 = vector.broadcast %cst_118 : f32 to vector<2x32xf32>
    %421 = arith.addf %420, %419 : vector<2x32xf32>
    %422 = arith.divf %420, %421 : vector<2x32xf32>
    %423 = vector.extract_strided_slice %411 {offsets = [0, 32], sizes = [2, 32], strides = [1, 1]} : vector<2x96xf32> to vector<2x32xf32>
    %424 = vector.extract_strided_slice %414 {offsets = [0, 32], sizes = [2, 32], strides = [1, 1]} : vector<2x96xf32> to vector<2x32xf32>
    %425 = arith.addf %423, %424 : vector<2x32xf32>
    %426 = arith.negf %425 : vector<2x32xf32>
    %427 = math.exp %426 : vector<2x32xf32>
    %cst_119 = arith.constant 1.000000e+00 : f32
    %428 = vector.broadcast %cst_119 : f32 to vector<2x32xf32>
    %429 = arith.addf %428, %427 : vector<2x32xf32>
    %430 = arith.divf %428, %429 : vector<2x32xf32>
    %431 = vector.extract_strided_slice %411 {offsets = [0, 64], sizes = [2, 32], strides = [1, 1]} : vector<2x96xf32> to vector<2x32xf32>
    %432 = vector.extract_strided_slice %414 {offsets = [0, 64], sizes = [2, 32], strides = [1, 1]} : vector<2x96xf32> to vector<2x32xf32>
    %433 = arith.mulf %422, %432 : vector<2x32xf32>
    %434 = arith.addf %431, %433 : vector<2x32xf32>
    %435 = math.tanh %434 : vector<2x32xf32>
    %cst_120 = arith.constant 1.000000e+00 : f32
    %436 = vector.broadcast %cst_120 : f32 to vector<2x32xf32>
    %437 = arith.subf %436, %430 : vector<2x32xf32>
    %438 = arith.mulf %437, %435 : vector<2x32xf32>
    %439 = arith.mulf %430, %410 : vector<2x32xf32>
    %440 = arith.addf %438, %439 : vector<2x32xf32>
    %441 = vector.extract_strided_slice %290 {offsets = [10, 0], sizes = [2, 96], strides = [1, 1]} : vector<16x96xf32> to vector<2x96xf32>
    %c0_121 = arith.constant 0 : index
    %c0_122 = arith.constant 0 : index
    %442 = vector.load %arg9[%c0_121, %c0_122] : memref<32x96xf32, #tpu.memory_space<vmem>>, vector<32x96xf32>
    %cst_123 = arith.constant dense<0.000000e+00> : vector<2x96xf32>
    %443 = tpu.matmul %440, %442, %cst_123 {dimension_numbers = #tpu.dot_dimension_numbers<[1], [0], [0], [1], [0, 0, 1, 1], [], []>} : vector<2x32xf32>, vector<32x96xf32>, vector<2x96xf32> -> vector<2x96xf32>
    %444 = arith.addf %443, %5 : vector<2x96xf32>
    %445 = vector.extract_strided_slice %441 {offsets = [0, 0], sizes = [2, 32], strides = [1, 1]} : vector<2x96xf32> to vector<2x32xf32>
    %446 = vector.extract_strided_slice %444 {offsets = [0, 0], sizes = [2, 32], strides = [1, 1]} : vector<2x96xf32> to vector<2x32xf32>
    %447 = arith.addf %445, %446 : vector<2x32xf32>
    %448 = arith.negf %447 : vector<2x32xf32>
    %449 = math.exp %448 : vector<2x32xf32>
    %cst_124 = arith.constant 1.000000e+00 : f32
    %450 = vector.broadcast %cst_124 : f32 to vector<2x32xf32>
    %451 = arith.addf %450, %449 : vector<2x32xf32>
    %452 = arith.divf %450, %451 : vector<2x32xf32>
    %453 = vector.extract_strided_slice %441 {offsets = [0, 32], sizes = [2, 32], strides = [1, 1]} : vector<2x96xf32> to vector<2x32xf32>
    %454 = vector.extract_strided_slice %444 {offsets = [0, 32], sizes = [2, 32], strides = [1, 1]} : vector<2x96xf32> to vector<2x32xf32>
    %455 = arith.addf %453, %454 : vector<2x32xf32>
    %456 = arith.negf %455 : vector<2x32xf32>
    %457 = math.exp %456 : vector<2x32xf32>
    %cst_125 = arith.constant 1.000000e+00 : f32
    %458 = vector.broadcast %cst_125 : f32 to vector<2x32xf32>
    %459 = arith.addf %458, %457 : vector<2x32xf32>
    %460 = arith.divf %458, %459 : vector<2x32xf32>
    %461 = vector.extract_strided_slice %441 {offsets = [0, 64], sizes = [2, 32], strides = [1, 1]} : vector<2x96xf32> to vector<2x32xf32>
    %462 = vector.extract_strided_slice %444 {offsets = [0, 64], sizes = [2, 32], strides = [1, 1]} : vector<2x96xf32> to vector<2x32xf32>
    %463 = arith.mulf %452, %462 : vector<2x32xf32>
    %464 = arith.addf %461, %463 : vector<2x32xf32>
    %465 = math.tanh %464 : vector<2x32xf32>
    %cst_126 = arith.constant 1.000000e+00 : f32
    %466 = vector.broadcast %cst_126 : f32 to vector<2x32xf32>
    %467 = arith.subf %466, %460 : vector<2x32xf32>
    %468 = arith.mulf %467, %465 : vector<2x32xf32>
    %469 = arith.mulf %460, %440 : vector<2x32xf32>
    %470 = arith.addf %468, %469 : vector<2x32xf32>
    %471 = vector.extract_strided_slice %290 {offsets = [12, 0], sizes = [2, 96], strides = [1, 1]} : vector<16x96xf32> to vector<2x96xf32>
    %c0_127 = arith.constant 0 : index
    %c0_128 = arith.constant 0 : index
    %472 = vector.load %arg9[%c0_127, %c0_128] : memref<32x96xf32, #tpu.memory_space<vmem>>, vector<32x96xf32>
    %cst_129 = arith.constant dense<0.000000e+00> : vector<2x96xf32>
    %473 = tpu.matmul %470, %472, %cst_129 {dimension_numbers = #tpu.dot_dimension_numbers<[1], [0], [0], [1], [0, 0, 1, 1], [], []>} : vector<2x32xf32>, vector<32x96xf32>, vector<2x96xf32> -> vector<2x96xf32>
    %474 = arith.addf %473, %5 : vector<2x96xf32>
    %475 = vector.extract_strided_slice %471 {offsets = [0, 0], sizes = [2, 32], strides = [1, 1]} : vector<2x96xf32> to vector<2x32xf32>
    %476 = vector.extract_strided_slice %474 {offsets = [0, 0], sizes = [2, 32], strides = [1, 1]} : vector<2x96xf32> to vector<2x32xf32>
    %477 = arith.addf %475, %476 : vector<2x32xf32>
    %478 = arith.negf %477 : vector<2x32xf32>
    %479 = math.exp %478 : vector<2x32xf32>
    %cst_130 = arith.constant 1.000000e+00 : f32
    %480 = vector.broadcast %cst_130 : f32 to vector<2x32xf32>
    %481 = arith.addf %480, %479 : vector<2x32xf32>
    %482 = arith.divf %480, %481 : vector<2x32xf32>
    %483 = vector.extract_strided_slice %471 {offsets = [0, 32], sizes = [2, 32], strides = [1, 1]} : vector<2x96xf32> to vector<2x32xf32>
    %484 = vector.extract_strided_slice %474 {offsets = [0, 32], sizes = [2, 32], strides = [1, 1]} : vector<2x96xf32> to vector<2x32xf32>
    %485 = arith.addf %483, %484 : vector<2x32xf32>
    %486 = arith.negf %485 : vector<2x32xf32>
    %487 = math.exp %486 : vector<2x32xf32>
    %cst_131 = arith.constant 1.000000e+00 : f32
    %488 = vector.broadcast %cst_131 : f32 to vector<2x32xf32>
    %489 = arith.addf %488, %487 : vector<2x32xf32>
    %490 = arith.divf %488, %489 : vector<2x32xf32>
    %491 = vector.extract_strided_slice %471 {offsets = [0, 64], sizes = [2, 32], strides = [1, 1]} : vector<2x96xf32> to vector<2x32xf32>
    %492 = vector.extract_strided_slice %474 {offsets = [0, 64], sizes = [2, 32], strides = [1, 1]} : vector<2x96xf32> to vector<2x32xf32>
    %493 = arith.mulf %482, %492 : vector<2x32xf32>
    %494 = arith.addf %491, %493 : vector<2x32xf32>
    %495 = math.tanh %494 : vector<2x32xf32>
    %cst_132 = arith.constant 1.000000e+00 : f32
    %496 = vector.broadcast %cst_132 : f32 to vector<2x32xf32>
    %497 = arith.subf %496, %490 : vector<2x32xf32>
    %498 = arith.mulf %497, %495 : vector<2x32xf32>
    %499 = arith.mulf %490, %470 : vector<2x32xf32>
    %500 = arith.addf %498, %499 : vector<2x32xf32>
    %501 = vector.extract_strided_slice %290 {offsets = [14, 0], sizes = [2, 96], strides = [1, 1]} : vector<16x96xf32> to vector<2x96xf32>
    %c0_133 = arith.constant 0 : index
    %c0_134 = arith.constant 0 : index
    %502 = vector.load %arg9[%c0_133, %c0_134] : memref<32x96xf32, #tpu.memory_space<vmem>>, vector<32x96xf32>
    %cst_135 = arith.constant dense<0.000000e+00> : vector<2x96xf32>
    %503 = tpu.matmul %500, %502, %cst_135 {dimension_numbers = #tpu.dot_dimension_numbers<[1], [0], [0], [1], [0, 0, 1, 1], [], []>} : vector<2x32xf32>, vector<32x96xf32>, vector<2x96xf32> -> vector<2x96xf32>
    %504 = arith.addf %503, %5 : vector<2x96xf32>
    %505 = vector.extract_strided_slice %501 {offsets = [0, 0], sizes = [2, 32], strides = [1, 1]} : vector<2x96xf32> to vector<2x32xf32>
    %506 = vector.extract_strided_slice %504 {offsets = [0, 0], sizes = [2, 32], strides = [1, 1]} : vector<2x96xf32> to vector<2x32xf32>
    %507 = arith.addf %505, %506 : vector<2x32xf32>
    %508 = arith.negf %507 : vector<2x32xf32>
    %509 = math.exp %508 : vector<2x32xf32>
    %cst_136 = arith.constant 1.000000e+00 : f32
    %510 = vector.broadcast %cst_136 : f32 to vector<2x32xf32>
    %511 = arith.addf %510, %509 : vector<2x32xf32>
    %512 = arith.divf %510, %511 : vector<2x32xf32>
    %513 = vector.extract_strided_slice %501 {offsets = [0, 32], sizes = [2, 32], strides = [1, 1]} : vector<2x96xf32> to vector<2x32xf32>
    %514 = vector.extract_strided_slice %504 {offsets = [0, 32], sizes = [2, 32], strides = [1, 1]} : vector<2x96xf32> to vector<2x32xf32>
    %515 = arith.addf %513, %514 : vector<2x32xf32>
    %516 = arith.negf %515 : vector<2x32xf32>
    %517 = math.exp %516 : vector<2x32xf32>
    %cst_137 = arith.constant 1.000000e+00 : f32
    %518 = vector.broadcast %cst_137 : f32 to vector<2x32xf32>
    %519 = arith.addf %518, %517 : vector<2x32xf32>
    %520 = arith.divf %518, %519 : vector<2x32xf32>
    %521 = vector.extract_strided_slice %501 {offsets = [0, 64], sizes = [2, 32], strides = [1, 1]} : vector<2x96xf32> to vector<2x32xf32>
    %522 = vector.extract_strided_slice %504 {offsets = [0, 64], sizes = [2, 32], strides = [1, 1]} : vector<2x96xf32> to vector<2x32xf32>
    %523 = arith.mulf %512, %522 : vector<2x32xf32>
    %524 = arith.addf %521, %523 : vector<2x32xf32>
    %525 = math.tanh %524 : vector<2x32xf32>
    %cst_138 = arith.constant 1.000000e+00 : f32
    %526 = vector.broadcast %cst_138 : f32 to vector<2x32xf32>
    %527 = arith.subf %526, %520 : vector<2x32xf32>
    %528 = arith.mulf %527, %525 : vector<2x32xf32>
    %529 = arith.mulf %520, %500 : vector<2x32xf32>
    %530 = arith.addf %528, %529 : vector<2x32xf32>
    %c0_139 = arith.constant 0 : index
    %c0_140 = arith.constant 0 : index
    %531 = vector.load %arg21[%c0_139, %c0_140] : memref<32x16xf32, #tpu.memory_space<vmem>>, vector<32x16xf32>
    %cst_141 = arith.constant dense<0.000000e+00> : vector<2x16xf32>
    %532 = tpu.matmul %500, %531, %cst_141 {dimension_numbers = #tpu.dot_dimension_numbers<[1], [0], [0], [1], [0, 0, 1, 1], [], []>} : vector<2x32xf32>, vector<32x16xf32>, vector<2x16xf32> -> vector<2x16xf32>
    %533 = arith.addf %532, %20 : vector<2x16xf32>
    %534 = math.tanh %533 : vector<2x16xf32>
    %c0_142 = arith.constant 0 : index
    %c0_143 = arith.constant 0 : index
    %535 = vector.load %arg11[%c0_142, %c0_143] : memref<16x96xf32, #tpu.memory_space<vmem>>, vector<16x96xf32>
    %cst_144 = arith.constant dense<0.000000e+00> : vector<2x96xf32>
    %536 = tpu.matmul %534, %535, %cst_144 {dimension_numbers = #tpu.dot_dimension_numbers<[1], [0], [0], [1], [0, 0, 1, 1], [], []>} : vector<2x16xf32>, vector<16x96xf32>, vector<2x96xf32> -> vector<2x96xf32>
    %537 = arith.addf %536, %14 : vector<2x96xf32>
    %c0_145 = arith.constant 0 : index
    %c0_146 = arith.constant 0 : index
    %538 = vector.load %arg13[%c0_145, %c0_146] : memref<32x96xf32, #tpu.memory_space<vmem>>, vector<32x96xf32>
    %cst_147 = arith.constant dense<0.000000e+00> : vector<2x96xf32>
    %539 = tpu.matmul %530, %538, %cst_147 {dimension_numbers = #tpu.dot_dimension_numbers<[1], [0], [0], [1], [0, 0, 1, 1], [], []>} : vector<2x32xf32>, vector<32x96xf32>, vector<2x96xf32> -> vector<2x96xf32>
    %540 = arith.addf %539, %8 : vector<2x96xf32>
    %541 = vector.extract_strided_slice %537 {offsets = [0, 0], sizes = [2, 32], strides = [1, 1]} : vector<2x96xf32> to vector<2x32xf32>
    %542 = vector.extract_strided_slice %540 {offsets = [0, 0], sizes = [2, 32], strides = [1, 1]} : vector<2x96xf32> to vector<2x32xf32>
    %543 = arith.addf %541, %542 : vector<2x32xf32>
    %544 = arith.negf %543 : vector<2x32xf32>
    %545 = math.exp %544 : vector<2x32xf32>
    %cst_148 = arith.constant 1.000000e+00 : f32
    %546 = vector.broadcast %cst_148 : f32 to vector<2x32xf32>
    %547 = arith.addf %546, %545 : vector<2x32xf32>
    %548 = arith.divf %546, %547 : vector<2x32xf32>
    %549 = vector.extract_strided_slice %537 {offsets = [0, 32], sizes = [2, 32], strides = [1, 1]} : vector<2x96xf32> to vector<2x32xf32>
    %550 = vector.extract_strided_slice %540 {offsets = [0, 32], sizes = [2, 32], strides = [1, 1]} : vector<2x96xf32> to vector<2x32xf32>
    %551 = arith.addf %549, %550 : vector<2x32xf32>
    %552 = arith.negf %551 : vector<2x32xf32>
    %553 = math.exp %552 : vector<2x32xf32>
    %cst_149 = arith.constant 1.000000e+00 : f32
    %554 = vector.broadcast %cst_149 : f32 to vector<2x32xf32>
    %555 = arith.addf %554, %553 : vector<2x32xf32>
    %556 = arith.divf %554, %555 : vector<2x32xf32>
    %557 = vector.extract_strided_slice %537 {offsets = [0, 64], sizes = [2, 32], strides = [1, 1]} : vector<2x96xf32> to vector<2x32xf32>
    %558 = vector.extract_strided_slice %540 {offsets = [0, 64], sizes = [2, 32], strides = [1, 1]} : vector<2x96xf32> to vector<2x32xf32>
    %559 = arith.mulf %548, %558 : vector<2x32xf32>
    %560 = arith.addf %557, %559 : vector<2x32xf32>
    %561 = math.tanh %560 : vector<2x32xf32>
    %cst_150 = arith.constant 1.000000e+00 : f32
    %562 = vector.broadcast %cst_150 : f32 to vector<2x32xf32>
    %563 = arith.subf %562, %556 : vector<2x32xf32>
    %564 = arith.mulf %563, %561 : vector<2x32xf32>
    %565 = arith.mulf %556, %530 : vector<2x32xf32>
    %566 = arith.addf %564, %565 : vector<2x32xf32>
    %c0_151 = arith.constant 0 : index
    %c0_152 = arith.constant 0 : index
    %567 = vector.load %arg15[%c0_151, %c0_152] : memref<32x96xf32, #tpu.memory_space<vmem>>, vector<32x96xf32>
    %cst_153 = arith.constant dense<0.000000e+00> : vector<2x96xf32>
    %568 = tpu.matmul %566, %567, %cst_153 {dimension_numbers = #tpu.dot_dimension_numbers<[1], [0], [0], [1], [0, 0, 1, 1], [], []>} : vector<2x32xf32>, vector<32x96xf32>, vector<2x96xf32> -> vector<2x96xf32>
    %569 = arith.addf %568, %17 : vector<2x96xf32>
    %c0_154 = arith.constant 0 : index
    %c0_155 = arith.constant 0 : index
    %570 = vector.load %arg17[%c0_154, %c0_155] : memref<32x96xf32, #tpu.memory_space<vmem>>, vector<32x96xf32>
    %cst_156 = arith.constant dense<0.000000e+00> : vector<2x96xf32>
    %571 = tpu.matmul %566, %570, %cst_156 {dimension_numbers = #tpu.dot_dimension_numbers<[1], [0], [0], [1], [0, 0, 1, 1], [], []>} : vector<2x32xf32>, vector<32x96xf32>, vector<2x96xf32> -> vector<2x96xf32>
    %572 = arith.addf %571, %11 : vector<2x96xf32>
    %573 = vector.extract_strided_slice %569 {offsets = [0, 0], sizes = [2, 32], strides = [1, 1]} : vector<2x96xf32> to vector<2x32xf32>
    %574 = vector.extract_strided_slice %572 {offsets = [0, 0], sizes = [2, 32], strides = [1, 1]} : vector<2x96xf32> to vector<2x32xf32>
    %575 = arith.addf %573, %574 : vector<2x32xf32>
    %576 = arith.negf %575 : vector<2x32xf32>
    %577 = math.exp %576 : vector<2x32xf32>
    %cst_157 = arith.constant 1.000000e+00 : f32
    %578 = vector.broadcast %cst_157 : f32 to vector<2x32xf32>
    %579 = arith.addf %578, %577 : vector<2x32xf32>
    %580 = arith.divf %578, %579 : vector<2x32xf32>
    %581 = vector.extract_strided_slice %569 {offsets = [0, 32], sizes = [2, 32], strides = [1, 1]} : vector<2x96xf32> to vector<2x32xf32>
    %582 = vector.extract_strided_slice %572 {offsets = [0, 32], sizes = [2, 32], strides = [1, 1]} : vector<2x96xf32> to vector<2x32xf32>
    %583 = arith.addf %581, %582 : vector<2x32xf32>
    %584 = arith.negf %583 : vector<2x32xf32>
    %585 = math.exp %584 : vector<2x32xf32>
    %cst_158 = arith.constant 1.000000e+00 : f32
    %586 = vector.broadcast %cst_158 : f32 to vector<2x32xf32>
    %587 = arith.addf %586, %585 : vector<2x32xf32>
    %588 = arith.divf %586, %587 : vector<2x32xf32>
    %589 = vector.extract_strided_slice %569 {offsets = [0, 64], sizes = [2, 32], strides = [1, 1]} : vector<2x96xf32> to vector<2x32xf32>
    %590 = vector.extract_strided_slice %572 {offsets = [0, 64], sizes = [2, 32], strides = [1, 1]} : vector<2x96xf32> to vector<2x32xf32>
    %591 = arith.mulf %580, %590 : vector<2x32xf32>
    %592 = arith.addf %589, %591 : vector<2x32xf32>
    %593 = math.tanh %592 : vector<2x32xf32>
    %cst_159 = arith.constant 1.000000e+00 : f32
    %594 = vector.broadcast %cst_159 : f32 to vector<2x32xf32>
    %595 = arith.subf %594, %588 : vector<2x32xf32>
    %596 = arith.mulf %595, %593 : vector<2x32xf32>
    %597 = arith.mulf %588, %566 : vector<2x32xf32>
    %598 = arith.addf %596, %597 : vector<2x32xf32>
    %c0_160 = arith.constant 0 : index
    %c0_161 = arith.constant 0 : index
    %599 = vector.load %arg19[%c0_160, %c0_161] : memref<32x2xf32, #tpu.memory_space<vmem>>, vector<32x2xf32>
    %cst_162 = arith.constant dense<0.000000e+00> : vector<2x2xf32>
    %600 = tpu.matmul %598, %599, %cst_162 {dimension_numbers = #tpu.dot_dimension_numbers<[1], [0], [0], [1], [0, 0, 1, 1], [], []>} : vector<2x32xf32>, vector<32x2xf32>, vector<2x2xf32> -> vector<2x2xf32>
    %601 = arith.addf %600, %23 : vector<2x2xf32>
    %c0_163 = arith.constant 0 : index
    %c0_164 = arith.constant 0 : index
    %c0_165 = arith.constant 0 : index
    %602 = vector.load %arg23[%c0_163, %c0_164, %c0_165] : memref<4x2x2xf32, #tpu.memory_space<vmem>>, vector<1x2x2xf32>
    %603 = vector.shape_cast %602 : vector<1x2x2xf32> to vector<2x2xf32>
    %604 = vector.shape_cast %601 : vector<2x2xf32> to vector<1x2x2xf32>
    tpu.vector_store %arg23[%c0_163, %c0_164, %c0_165], %604 {strides = array<i32>} : memref<4x2x2xf32, #tpu.memory_space<vmem>>, vector<1x2x2xf32>,
    %c0_166 = arith.constant 0 : index
    %c0_167 = arith.constant 0 : index
    %605 = vector.load %arg21[%c0_166, %c0_167] : memref<32x16xf32, #tpu.memory_space<vmem>>, vector<32x16xf32>
    %cst_168 = arith.constant dense<0.000000e+00> : vector<2x16xf32>
    %606 = tpu.matmul %598, %605, %cst_168 {dimension_numbers = #tpu.dot_dimension_numbers<[1], [0], [0], [1], [0, 0, 1, 1], [], []>} : vector<2x32xf32>, vector<32x16xf32>, vector<2x16xf32> -> vector<2x16xf32>
    %607 = arith.addf %606, %20 : vector<2x16xf32>
    %608 = math.tanh %607 : vector<2x16xf32>
    %c0_169 = arith.constant 0 : index
    %c0_170 = arith.constant 0 : index
    %609 = vector.load %arg11[%c0_169, %c0_170] : memref<16x96xf32, #tpu.memory_space<vmem>>, vector<16x96xf32>
    %cst_171 = arith.constant dense<0.000000e+00> : vector<2x96xf32>
    %610 = tpu.matmul %608, %609, %cst_171 {dimension_numbers = #tpu.dot_dimension_numbers<[1], [0], [0], [1], [0, 0, 1, 1], [], []>} : vector<2x16xf32>, vector<16x96xf32>, vector<2x96xf32> -> vector<2x96xf32>
    %611 = arith.addf %610, %14 : vector<2x96xf32>
    %c0_172 = arith.constant 0 : index
    %c0_173 = arith.constant 0 : index
    %612 = vector.load %arg13[%c0_172, %c0_173] : memref<32x96xf32, #tpu.memory_space<vmem>>, vector<32x96xf32>
    %cst_174 = arith.constant dense<0.000000e+00> : vector<2x96xf32>
    %613 = tpu.matmul %598, %612, %cst_174 {dimension_numbers = #tpu.dot_dimension_numbers<[1], [0], [0], [1], [0, 0, 1, 1], [], []>} : vector<2x32xf32>, vector<32x96xf32>, vector<2x96xf32> -> vector<2x96xf32>
    %614 = arith.addf %613, %8 : vector<2x96xf32>
    %615 = vector.extract_strided_slice %611 {offsets = [0, 0], sizes = [2, 32], strides = [1, 1]} : vector<2x96xf32> to vector<2x32xf32>
    %616 = vector.extract_strided_slice %614 {offsets = [0, 0], sizes = [2, 32], strides = [1, 1]} : vector<2x96xf32> to vector<2x32xf32>
    %617 = arith.addf %615, %616 : vector<2x32xf32>
    %618 = arith.negf %617 : vector<2x32xf32>
    %619 = math.exp %618 : vector<2x32xf32>
    %cst_175 = arith.constant 1.000000e+00 : f32
    %620 = vector.broadcast %cst_175 : f32 to vector<2x32xf32>
    %621 = arith.addf %620, %619 : vector<2x32xf32>
    %622 = arith.divf %620, %621 : vector<2x32xf32>
    %623 = vector.extract_strided_slice %611 {offsets = [0, 32], sizes = [2, 32], strides = [1, 1]} : vector<2x96xf32> to vector<2x32xf32>
    %624 = vector.extract_strided_slice %614 {offsets = [0, 32], sizes = [2, 32], strides = [1, 1]} : vector<2x96xf32> to vector<2x32xf32>
    %625 = arith.addf %623, %624 : vector<2x32xf32>
    %626 = arith.negf %625 : vector<2x32xf32>
    %627 = math.exp %626 : vector<2x32xf32>
    %cst_176 = arith.constant 1.000000e+00 : f32
    %628 = vector.broadcast %cst_176 : f32 to vector<2x32xf32>
    %629 = arith.addf %628, %627 : vector<2x32xf32>
    %630 = arith.divf %628, %629 : vector<2x32xf32>
    %631 = vector.extract_strided_slice %611 {offsets = [0, 64], sizes = [2, 32], strides = [1, 1]} : vector<2x96xf32> to vector<2x32xf32>
    %632 = vector.extract_strided_slice %614 {offsets = [0, 64], sizes = [2, 32], strides = [1, 1]} : vector<2x96xf32> to vector<2x32xf32>
    %633 = arith.mulf %622, %632 : vector<2x32xf32>
    %634 = arith.addf %631, %633 : vector<2x32xf32>
    %635 = math.tanh %634 : vector<2x32xf32>
    %cst_177 = arith.constant 1.000000e+00 : f32
    %636 = vector.broadcast %cst_177 : f32 to vector<2x32xf32>
    %637 = arith.subf %636, %630 : vector<2x32xf32>
    %638 = arith.mulf %637, %635 : vector<2x32xf32>
    %639 = arith.mulf %630, %598 : vector<2x32xf32>
    %640 = arith.addf %638, %639 : vector<2x32xf32>
    %c0_178 = arith.constant 0 : index
    %c0_179 = arith.constant 0 : index
    %641 = vector.load %arg15[%c0_178, %c0_179] : memref<32x96xf32, #tpu.memory_space<vmem>>, vector<32x96xf32>
    %cst_180 = arith.constant dense<0.000000e+00> : vector<2x96xf32>
    %642 = tpu.matmul %640, %641, %cst_180 {dimension_numbers = #tpu.dot_dimension_numbers<[1], [0], [0], [1], [0, 0, 1, 1], [], []>} : vector<2x32xf32>, vector<32x96xf32>, vector<2x96xf32> -> vector<2x96xf32>
    %643 = arith.addf %642, %17 : vector<2x96xf32>
    %c0_181 = arith.constant 0 : index
    %c0_182 = arith.constant 0 : index
    %644 = vector.load %arg17[%c0_181, %c0_182] : memref<32x96xf32, #tpu.memory_space<vmem>>, vector<32x96xf32>
    %cst_183 = arith.constant dense<0.000000e+00> : vector<2x96xf32>
    %645 = tpu.matmul %640, %644, %cst_183 {dimension_numbers = #tpu.dot_dimension_numbers<[1], [0], [0], [1], [0, 0, 1, 1], [], []>} : vector<2x32xf32>, vector<32x96xf32>, vector<2x96xf32> -> vector<2x96xf32>
    %646 = arith.addf %645, %11 : vector<2x96xf32>
    %647 = vector.extract_strided_slice %643 {offsets = [0, 0], sizes = [2, 32], strides = [1, 1]} : vector<2x96xf32> to vector<2x32xf32>
    %648 = vector.extract_strided_slice %646 {offsets = [0, 0], sizes = [2, 32], strides = [1, 1]} : vector<2x96xf32> to vector<2x32xf32>
    %649 = arith.addf %647, %648 : vector<2x32xf32>
    %650 = arith.negf %649 : vector<2x32xf32>
    %651 = math.exp %650 : vector<2x32xf32>
    %cst_184 = arith.constant 1.000000e+00 : f32
    %652 = vector.broadcast %cst_184 : f32 to vector<2x32xf32>
    %653 = arith.addf %652, %651 : vector<2x32xf32>
    %654 = arith.divf %652, %653 : vector<2x32xf32>
    %655 = vector.extract_strided_slice %643 {offsets = [0, 32], sizes = [2, 32], strides = [1, 1]} : vector<2x96xf32> to vector<2x32xf32>
    %656 = vector.extract_strided_slice %646 {offsets = [0, 32], sizes = [2, 32], strides = [1, 1]} : vector<2x96xf32> to vector<2x32xf32>
    %657 = arith.addf %655, %656 : vector<2x32xf32>
    %658 = arith.negf %657 : vector<2x32xf32>
    %659 = math.exp %658 : vector<2x32xf32>
    %cst_185 = arith.constant 1.000000e+00 : f32
    %660 = vector.broadcast %cst_185 : f32 to vector<2x32xf32>
    %661 = arith.addf %660, %659 : vector<2x32xf32>
    %662 = arith.divf %660, %661 : vector<2x32xf32>
    %663 = vector.extract_strided_slice %643 {offsets = [0, 64], sizes = [2, 32], strides = [1, 1]} : vector<2x96xf32> to vector<2x32xf32>
    %664 = vector.extract_strided_slice %646 {offsets = [0, 64], sizes = [2, 32], strides = [1, 1]} : vector<2x96xf32> to vector<2x32xf32>
    %665 = arith.mulf %654, %664 : vector<2x32xf32>
    %666 = arith.addf %663, %665 : vector<2x32xf32>
    %667 = math.tanh %666 : vector<2x32xf32>
    %cst_186 = arith.constant 1.000000e+00 : f32
    %668 = vector.broadcast %cst_186 : f32 to vector<2x32xf32>
    %669 = arith.subf %668, %662 : vector<2x32xf32>
    %670 = arith.mulf %669, %667 : vector<2x32xf32>
    %671 = arith.mulf %662, %640 : vector<2x32xf32>
    %672 = arith.addf %670, %671 : vector<2x32xf32>
    %c0_187 = arith.constant 0 : index
    %c0_188 = arith.constant 0 : index
    %673 = vector.load %arg19[%c0_187, %c0_188] : memref<32x2xf32, #tpu.memory_space<vmem>>, vector<32x2xf32>
    %cst_189 = arith.constant dense<0.000000e+00> : vector<2x2xf32>
    %674 = tpu.matmul %672, %673, %cst_189 {dimension_numbers = #tpu.dot_dimension_numbers<[1], [0], [0], [1], [0, 0, 1, 1], [], []>} : vector<2x32xf32>, vector<32x2xf32>, vector<2x2xf32> -> vector<2x2xf32>
    %675 = arith.addf %674, %23 : vector<2x2xf32>
    %c1 = arith.constant 1 : index
    %c0_190 = arith.constant 0 : index
    %c0_191 = arith.constant 0 : index
    %676 = vector.load %arg23[%c1, %c0_190, %c0_191] : memref<4x2x2xf32, #tpu.memory_space<vmem>>, vector<1x2x2xf32>
    %677 = vector.shape_cast %676 : vector<1x2x2xf32> to vector<2x2xf32>
    %678 = vector.shape_cast %675 : vector<2x2xf32> to vector<1x2x2xf32>
    tpu.vector_store %arg23[%c1, %c0_190, %c0_191], %678 {strides = array<i32>} : memref<4x2x2xf32, #tpu.memory_space<vmem>>, vector<1x2x2xf32>,
    %c0_192 = arith.constant 0 : index
    %c0_193 = arith.constant 0 : index
    %679 = vector.load %arg21[%c0_192, %c0_193] : memref<32x16xf32, #tpu.memory_space<vmem>>, vector<32x16xf32>
    %cst_194 = arith.constant dense<0.000000e+00> : vector<2x16xf32>
    %680 = tpu.matmul %672, %679, %cst_194 {dimension_numbers = #tpu.dot_dimension_numbers<[1], [0], [0], [1], [0, 0, 1, 1], [], []>} : vector<2x32xf32>, vector<32x16xf32>, vector<2x16xf32> -> vector<2x16xf32>
    %681 = arith.addf %680, %20 : vector<2x16xf32>
    %682 = math.tanh %681 : vector<2x16xf32>
    %c0_195 = arith.constant 0 : index
    %c0_196 = arith.constant 0 : index
    %683 = vector.load %arg11[%c0_195, %c0_196] : memref<16x96xf32, #tpu.memory_space<vmem>>, vector<16x96xf32>
    %cst_197 = arith.constant dense<0.000000e+00> : vector<2x96xf32>
    %684 = tpu.matmul %682, %683, %cst_197 {dimension_numbers = #tpu.dot_dimension_numbers<[1], [0], [0], [1], [0, 0, 1, 1], [], []>} : vector<2x16xf32>, vector<16x96xf32>, vector<2x96xf32> -> vector<2x96xf32>
    %685 = arith.addf %684, %14 : vector<2x96xf32>
    %c0_198 = arith.constant 0 : index
    %c0_199 = arith.constant 0 : index
    %686 = vector.load %arg13[%c0_198, %c0_199] : memref<32x96xf32, #tpu.memory_space<vmem>>, vector<32x96xf32>
    %cst_200 = arith.constant dense<0.000000e+00> : vector<2x96xf32>
    %687 = tpu.matmul %672, %686, %cst_200 {dimension_numbers = #tpu.dot_dimension_numbers<[1], [0], [0], [1], [0, 0, 1, 1], [], []>} : vector<2x32xf32>, vector<32x96xf32>, vector<2x96xf32> -> vector<2x96xf32>
    %688 = arith.addf %687, %8 : vector<2x96xf32>
    %689 = vector.extract_strided_slice %685 {offsets = [0, 0], sizes = [2, 32], strides = [1, 1]} : vector<2x96xf32> to vector<2x32xf32>
    %690 = vector.extract_strided_slice %688 {offsets = [0, 0], sizes = [2, 32], strides = [1, 1]} : vector<2x96xf32> to vector<2x32xf32>
    %691 = arith.addf %689, %690 : vector<2x32xf32>
    %692 = arith.negf %691 : vector<2x32xf32>
    %693 = math.exp %692 : vector<2x32xf32>
    %cst_201 = arith.constant 1.000000e+00 : f32
    %694 = vector.broadcast %cst_201 : f32 to vector<2x32xf32>
    %695 = arith.addf %694, %693 : vector<2x32xf32>
    %696 = arith.divf %694, %695 : vector<2x32xf32>
    %697 = vector.extract_strided_slice %685 {offsets = [0, 32], sizes = [2, 32], strides = [1, 1]} : vector<2x96xf32> to vector<2x32xf32>
    %698 = vector.extract_strided_slice %688 {offsets = [0, 32], sizes = [2, 32], strides = [1, 1]} : vector<2x96xf32> to vector<2x32xf32>
    %699 = arith.addf %697, %698 : vector<2x32xf32>
    %700 = arith.negf %699 : vector<2x32xf32>
    %701 = math.exp %700 : vector<2x32xf32>
    %cst_202 = arith.constant 1.000000e+00 : f32
    %702 = vector.broadcast %cst_202 : f32 to vector<2x32xf32>
    %703 = arith.addf %702, %701 : vector<2x32xf32>
    %704 = arith.divf %702, %703 : vector<2x32xf32>
    %705 = vector.extract_strided_slice %685 {offsets = [0, 64], sizes = [2, 32], strides = [1, 1]} : vector<2x96xf32> to vector<2x32xf32>
    %706 = vector.extract_strided_slice %688 {offsets = [0, 64], sizes = [2, 32], strides = [1, 1]} : vector<2x96xf32> to vector<2x32xf32>
    %707 = arith.mulf %696, %706 : vector<2x32xf32>
    %708 = arith.addf %705, %707 : vector<2x32xf32>
    %709 = math.tanh %708 : vector<2x32xf32>
    %cst_203 = arith.constant 1.000000e+00 : f32
    %710 = vector.broadcast %cst_203 : f32 to vector<2x32xf32>
    %711 = arith.subf %710, %704 : vector<2x32xf32>
    %712 = arith.mulf %711, %709 : vector<2x32xf32>
    %713 = arith.mulf %704, %672 : vector<2x32xf32>
    %714 = arith.addf %712, %713 : vector<2x32xf32>
    %c0_204 = arith.constant 0 : index
    %c0_205 = arith.constant 0 : index
    %715 = vector.load %arg15[%c0_204, %c0_205] : memref<32x96xf32, #tpu.memory_space<vmem>>, vector<32x96xf32>
    %cst_206 = arith.constant dense<0.000000e+00> : vector<2x96xf32>
    %716 = tpu.matmul %714, %715, %cst_206 {dimension_numbers = #tpu.dot_dimension_numbers<[1], [0], [0], [1], [0, 0, 1, 1], [], []>} : vector<2x32xf32>, vector<32x96xf32>, vector<2x96xf32> -> vector<2x96xf32>
    %717 = arith.addf %716, %17 : vector<2x96xf32>
    %c0_207 = arith.constant 0 : index
    %c0_208 = arith.constant 0 : index
    %718 = vector.load %arg17[%c0_207, %c0_208] : memref<32x96xf32, #tpu.memory_space<vmem>>, vector<32x96xf32>
    %cst_209 = arith.constant dense<0.000000e+00> : vector<2x96xf32>
    %719 = tpu.matmul %714, %718, %cst_209 {dimension_numbers = #tpu.dot_dimension_numbers<[1], [0], [0], [1], [0, 0, 1, 1], [], []>} : vector<2x32xf32>, vector<32x96xf32>, vector<2x96xf32> -> vector<2x96xf32>
    %720 = arith.addf %719, %11 : vector<2x96xf32>
    %721 = vector.extract_strided_slice %717 {offsets = [0, 0], sizes = [2, 32], strides = [1, 1]} : vector<2x96xf32> to vector<2x32xf32>
    %722 = vector.extract_strided_slice %720 {offsets = [0, 0], sizes = [2, 32], strides = [1, 1]} : vector<2x96xf32> to vector<2x32xf32>
    %723 = arith.addf %721, %722 : vector<2x32xf32>
    %724 = arith.negf %723 : vector<2x32xf32>
    %725 = math.exp %724 : vector<2x32xf32>
    %cst_210 = arith.constant 1.000000e+00 : f32
    %726 = vector.broadcast %cst_210 : f32 to vector<2x32xf32>
    %727 = arith.addf %726, %725 : vector<2x32xf32>
    %728 = arith.divf %726, %727 : vector<2x32xf32>
    %729 = vector.extract_strided_slice %717 {offsets = [0, 32], sizes = [2, 32], strides = [1, 1]} : vector<2x96xf32> to vector<2x32xf32>
    %730 = vector.extract_strided_slice %720 {offsets = [0, 32], sizes = [2, 32], strides = [1, 1]} : vector<2x96xf32> to vector<2x32xf32>
    %731 = arith.addf %729, %730 : vector<2x32xf32>
    %732 = arith.negf %731 : vector<2x32xf32>
    %733 = math.exp %732 : vector<2x32xf32>
    %cst_211 = arith.constant 1.000000e+00 : f32
    %734 = vector.broadcast %cst_211 : f32 to vector<2x32xf32>
    %735 = arith.addf %734, %733 : vector<2x32xf32>
    %736 = arith.divf %734, %735 : vector<2x32xf32>
    %737 = vector.extract_strided_slice %717 {offsets = [0, 64], sizes = [2, 32], strides = [1, 1]} : vector<2x96xf32> to vector<2x32xf32>
    %738 = vector.extract_strided_slice %720 {offsets = [0, 64], sizes = [2, 32], strides = [1, 1]} : vector<2x96xf32> to vector<2x32xf32>
    %739 = arith.mulf %728, %738 : vector<2x32xf32>
    %740 = arith.addf %737, %739 : vector<2x32xf32>
    %741 = math.tanh %740 : vector<2x32xf32>
    %cst_212 = arith.constant 1.000000e+00 : f32
    %742 = vector.broadcast %cst_212 : f32 to vector<2x32xf32>
    %743 = arith.subf %742, %736 : vector<2x32xf32>
    %744 = arith.mulf %743, %741 : vector<2x32xf32>
    %745 = arith.mulf %736, %714 : vector<2x32xf32>
    %746 = arith.addf %744, %745 : vector<2x32xf32>
    %c0_213 = arith.constant 0 : index
    %c0_214 = arith.constant 0 : index
    %747 = vector.load %arg19[%c0_213, %c0_214] : memref<32x2xf32, #tpu.memory_space<vmem>>, vector<32x2xf32>
    %cst_215 = arith.constant dense<0.000000e+00> : vector<2x2xf32>
    %748 = tpu.matmul %746, %747, %cst_215 {dimension_numbers = #tpu.dot_dimension_numbers<[1], [0], [0], [1], [0, 0, 1, 1], [], []>} : vector<2x32xf32>, vector<32x2xf32>, vector<2x2xf32> -> vector<2x2xf32>
    %749 = arith.addf %748, %23 : vector<2x2xf32>
    %c2_216 = arith.constant 2 : index
    %c0_217 = arith.constant 0 : index
    %c0_218 = arith.constant 0 : index
    %750 = vector.load %arg23[%c2_216, %c0_217, %c0_218] : memref<4x2x2xf32, #tpu.memory_space<vmem>>, vector<1x2x2xf32>
    %751 = vector.shape_cast %750 : vector<1x2x2xf32> to vector<2x2xf32>
    %752 = vector.shape_cast %749 : vector<2x2xf32> to vector<1x2x2xf32>
    tpu.vector_store %arg23[%c2_216, %c0_217, %c0_218], %752 {strides = array<i32>} : memref<4x2x2xf32, #tpu.memory_space<vmem>>, vector<1x2x2xf32>,
    %c0_219 = arith.constant 0 : index
    %c0_220 = arith.constant 0 : index
    %753 = vector.load %arg21[%c0_219, %c0_220] : memref<32x16xf32, #tpu.memory_space<vmem>>, vector<32x16xf32>
    %cst_221 = arith.constant dense<0.000000e+00> : vector<2x16xf32>
    %754 = tpu.matmul %746, %753, %cst_221 {dimension_numbers = #tpu.dot_dimension_numbers<[1], [0], [0], [1], [0, 0, 1, 1], [], []>} : vector<2x32xf32>, vector<32x16xf32>, vector<2x16xf32> -> vector<2x16xf32>
    %755 = arith.addf %754, %20 : vector<2x16xf32>
    %756 = math.tanh %755 : vector<2x16xf32>
    %c0_222 = arith.constant 0 : index
    %c0_223 = arith.constant 0 : index
    %757 = vector.load %arg11[%c0_222, %c0_223] : memref<16x96xf32, #tpu.memory_space<vmem>>, vector<16x96xf32>
    %cst_224 = arith.constant dense<0.000000e+00> : vector<2x96xf32>
    %758 = tpu.matmul %756, %757, %cst_224 {dimension_numbers = #tpu.dot_dimension_numbers<[1], [0], [0], [1], [0, 0, 1, 1], [], []>} : vector<2x16xf32>, vector<16x96xf32>, vector<2x96xf32> -> vector<2x96xf32>
    %759 = arith.addf %758, %14 : vector<2x96xf32>
    %c0_225 = arith.constant 0 : index
    %c0_226 = arith.constant 0 : index
    %760 = vector.load %arg13[%c0_225, %c0_226] : memref<32x96xf32, #tpu.memory_space<vmem>>, vector<32x96xf32>
    %cst_227 = arith.constant dense<0.000000e+00> : vector<2x96xf32>
    %761 = tpu.matmul %746, %760, %cst_227 {dimension_numbers = #tpu.dot_dimension_numbers<[1], [0], [0], [1], [0, 0, 1, 1], [], []>} : vector<2x32xf32>, vector<32x96xf32>, vector<2x96xf32> -> vector<2x96xf32>
    %762 = arith.addf %761, %8 : vector<2x96xf32>
    %763 = vector.extract_strided_slice %759 {offsets = [0, 0], sizes = [2, 32], strides = [1, 1]} : vector<2x96xf32> to vector<2x32xf32>
    %764 = vector.extract_strided_slice %762 {offsets = [0, 0], sizes = [2, 32], strides = [1, 1]} : vector<2x96xf32> to vector<2x32xf32>
    %765 = arith.addf %763, %764 : vector<2x32xf32>
    %766 = arith.negf %765 : vector<2x32xf32>
    %767 = math.exp %766 : vector<2x32xf32>
    %cst_228 = arith.constant 1.000000e+00 : f32
    %768 = vector.broadcast %cst_228 : f32 to vector<2x32xf32>
    %769 = arith.addf %768, %767 : vector<2x32xf32>
    %770 = arith.divf %768, %769 : vector<2x32xf32>
    %771 = vector.extract_strided_slice %759 {offsets = [0, 32], sizes = [2, 32], strides = [1, 1]} : vector<2x96xf32> to vector<2x32xf32>
    %772 = vector.extract_strided_slice %762 {offsets = [0, 32], sizes = [2, 32], strides = [1, 1]} : vector<2x96xf32> to vector<2x32xf32>
    %773 = arith.addf %771, %772 : vector<2x32xf32>
    %774 = arith.negf %773 : vector<2x32xf32>
    %775 = math.exp %774 : vector<2x32xf32>
    %cst_229 = arith.constant 1.000000e+00 : f32
    %776 = vector.broadcast %cst_229 : f32 to vector<2x32xf32>
    %777 = arith.addf %776, %775 : vector<2x32xf32>
    %778 = arith.divf %776, %777 : vector<2x32xf32>
    %779 = vector.extract_strided_slice %759 {offsets = [0, 64], sizes = [2, 32], strides = [1, 1]} : vector<2x96xf32> to vector<2x32xf32>
    %780 = vector.extract_strided_slice %762 {offsets = [0, 64], sizes = [2, 32], strides = [1, 1]} : vector<2x96xf32> to vector<2x32xf32>
    %781 = arith.mulf %770, %780 : vector<2x32xf32>
    %782 = arith.addf %779, %781 : vector<2x32xf32>
    %783 = math.tanh %782 : vector<2x32xf32>
    %cst_230 = arith.constant 1.000000e+00 : f32
    %784 = vector.broadcast %cst_230 : f32 to vector<2x32xf32>
    %785 = arith.subf %784, %778 : vector<2x32xf32>
    %786 = arith.mulf %785, %783 : vector<2x32xf32>
    %787 = arith.mulf %778, %746 : vector<2x32xf32>
    %788 = arith.addf %786, %787 : vector<2x32xf32>
    %c0_231 = arith.constant 0 : index
    %c0_232 = arith.constant 0 : index
    %789 = vector.load %arg15[%c0_231, %c0_232] : memref<32x96xf32, #tpu.memory_space<vmem>>, vector<32x96xf32>
    %cst_233 = arith.constant dense<0.000000e+00> : vector<2x96xf32>
    %790 = tpu.matmul %788, %789, %cst_233 {dimension_numbers = #tpu.dot_dimension_numbers<[1], [0], [0], [1], [0, 0, 1, 1], [], []>} : vector<2x32xf32>, vector<32x96xf32>, vector<2x96xf32> -> vector<2x96xf32>
    %791 = arith.addf %790, %17 : vector<2x96xf32>
    %c0_234 = arith.constant 0 : index
    %c0_235 = arith.constant 0 : index
    %792 = vector.load %arg17[%c0_234, %c0_235] : memref<32x96xf32, #tpu.memory_space<vmem>>, vector<32x96xf32>
    %cst_236 = arith.constant dense<0.000000e+00> : vector<2x96xf32>
    %793 = tpu.matmul %788, %792, %cst_236 {dimension_numbers = #tpu.dot_dimension_numbers<[1], [0], [0], [1], [0, 0, 1, 1], [], []>} : vector<2x32xf32>, vector<32x96xf32>, vector<2x96xf32> -> vector<2x96xf32>
    %794 = arith.addf %793, %11 : vector<2x96xf32>
    %795 = vector.extract_strided_slice %791 {offsets = [0, 0], sizes = [2, 32], strides = [1, 1]} : vector<2x96xf32> to vector<2x32xf32>
    %796 = vector.extract_strided_slice %794 {offsets = [0, 0], sizes = [2, 32], strides = [1, 1]} : vector<2x96xf32> to vector<2x32xf32>
    %797 = arith.addf %795, %796 : vector<2x32xf32>
    %798 = arith.negf %797 : vector<2x32xf32>
    %799 = math.exp %798 : vector<2x32xf32>
    %cst_237 = arith.constant 1.000000e+00 : f32
    %800 = vector.broadcast %cst_237 : f32 to vector<2x32xf32>
    %801 = arith.addf %800, %799 : vector<2x32xf32>
    %802 = arith.divf %800, %801 : vector<2x32xf32>
    %803 = vector.extract_strided_slice %791 {offsets = [0, 32], sizes = [2, 32], strides = [1, 1]} : vector<2x96xf32> to vector<2x32xf32>
    %804 = vector.extract_strided_slice %794 {offsets = [0, 32], sizes = [2, 32], strides = [1, 1]} : vector<2x96xf32> to vector<2x32xf32>
    %805 = arith.addf %803, %804 : vector<2x32xf32>
    %806 = arith.negf %805 : vector<2x32xf32>
    %807 = math.exp %806 : vector<2x32xf32>
    %cst_238 = arith.constant 1.000000e+00 : f32
    %808 = vector.broadcast %cst_238 : f32 to vector<2x32xf32>
    %809 = arith.addf %808, %807 : vector<2x32xf32>
    %810 = arith.divf %808, %809 : vector<2x32xf32>
    %811 = vector.extract_strided_slice %791 {offsets = [0, 64], sizes = [2, 32], strides = [1, 1]} : vector<2x96xf32> to vector<2x32xf32>
    %812 = vector.extract_strided_slice %794 {offsets = [0, 64], sizes = [2, 32], strides = [1, 1]} : vector<2x96xf32> to vector<2x32xf32>
    %813 = arith.mulf %802, %812 : vector<2x32xf32>
    %814 = arith.addf %811, %813 : vector<2x32xf32>
    %815 = math.tanh %814 : vector<2x32xf32>
    %cst_239 = arith.constant 1.000000e+00 : f32
    %816 = vector.broadcast %cst_239 : f32 to vector<2x32xf32>
    %817 = arith.subf %816, %810 : vector<2x32xf32>
    %818 = arith.mulf %817, %815 : vector<2x32xf32>
    %819 = arith.mulf %810, %788 : vector<2x32xf32>
    %820 = arith.addf %818, %819 : vector<2x32xf32>
    %c0_240 = arith.constant 0 : index
    %c0_241 = arith.constant 0 : index
    %821 = vector.load %arg19[%c0_240, %c0_241] : memref<32x2xf32, #tpu.memory_space<vmem>>, vector<32x2xf32>
    %cst_242 = arith.constant dense<0.000000e+00> : vector<2x2xf32>
    %822 = tpu.matmul %820, %821, %cst_242 {dimension_numbers = #tpu.dot_dimension_numbers<[1], [0], [0], [1], [0, 0, 1, 1], [], []>} : vector<2x32xf32>, vector<32x2xf32>, vector<2x2xf32> -> vector<2x2xf32>
    %823 = arith.addf %822, %23 : vector<2x2xf32>
    %c3 = arith.constant 3 : index
    %c0_243 = arith.constant 0 : index
    %c0_244 = arith.constant 0 : index
    %824 = vector.load %arg23[%c3, %c0_243, %c0_244] : memref<4x2x2xf32, #tpu.memory_space<vmem>>, vector<1x2x2xf32>
    %825 = vector.shape_cast %824 : vector<1x2x2xf32> to vector<2x2xf32>
    %826 = vector.shape_cast %823 : vector<2x2xf32> to vector<1x2x2xf32>
    tpu.vector_store %arg23[%c3, %c0_243, %c0_244], %826 {strides = array<i32>} : memref<4x2x2xf32, #tpu.memory_space<vmem>>, vector<1x2x2xf32>,
    return
  }
}

</mosaic_0001>

<bundles_post_ra>
// kernel: tpu_custom_call.1
= control target key start
LH: loop header
LB: loop body
LE: loop exit
PB: predicated region body
PF: predicated region fallthrough
CT: control target
= control target key end

     0   :  { %s6552_s0 = inlined_call_operand.vmem [shape: f32[16,2], index: 0, kind: input, shape index: {}]   ;;  %s6553_s1 = inlined_call_operand.hbm [shape: f32[2,16], index: 1, kind: input, shape index: {}]   ;;  %s6554_s2 = inlined_call_operand.vmem [shape: f32[1,16], index: 2, kind: input, shape index: {}]   ;;  %s6555_s3 = inlined_call_operand.hbm [shape: f32[16,96], index: 3, kind: input, shape index: {}]   ;;  %s6556_s4 = inlined_call_operand.hbm [shape: f32[1,96], index: 4, kind: input, shape index: {}]   ;;  %s6557_s5 = inlined_call_operand.vmem [shape: f32[32,96], index: 5, kind: input, shape index: {}]   ;;  %s6558_s6 = inlined_call_operand.hbm [shape: f32[1,96], index: 6, kind: input, shape index: {}]   ;;  %s6559_s7 = inlined_call_operand.vmem [shape: f32[32,96], index: 7, kind: input, shape index: {}]   ;;  %s6560_s8 = inlined_call_operand.hbm [shape: f32[1,96], index: 8, kind: input, shape index: {}]   ;;  %s6561_s9 = inlined_call_operand.vmem [shape: f32[32,96], index: 9, kind: input, shape index: {}]   ;;  %s6562_s10 = inlined_call_operand.hbm [shape: f32[1,96], index: 10, kind: input, shape index: {}]   ;;  %s6563_s11 = inlined_call_operand.hbm [shape: f32[16,96], index: 11, kind: input, shape index: {}]   ;;  %s6564_s12 = inlined_call_operand.hbm [shape: f32[1,96], index: 12, kind: input, shape index: {}]   ;;  %s6565_s13 = inlined_call_operand.hbm [shape: f32[32,96], index: 13, kind: input, shape index: {}]   ;;  %s6566_s14 = inlined_call_operand.hbm [shape: f32[1,96], index: 14, kind: input, shape index: {}]   ;;  %s6567_s15 = inlined_call_operand.hbm [shape: f32[32,96], index: 15, kind: input, shape index: {}]   ;;  %s6568_s16 = inlined_call_operand.hbm [shape: f32[1,96], index: 16, kind: input, shape index: {}]   ;;  %s6569_s17 = inlined_call_operand.vmem [shape: f32[32,96], index: 17, kind: input, shape index: {}]   ;;  %s6570_s18 = inlined_call_operand.vmem [shape: f32[1,96], index: 18, kind: input, shape index: {}]   ;;  %s6571_s19 = inlined_call_operand.vmem [shape: f32[32,2], index: 19, kind: input, shape index: {}]   ;;  %s6572_s20 = inlined_call_operand.vmem [shape: f32[1,2], index: 20, kind: input, shape index: {}]   ;;  %s6573_s21 = inlined_call_operand.vmem [shape: f32[32,16], index: 21, kind: input, shape index: {}]   ;;  %s6574_s22 = inlined_call_operand.vmem [shape: f32[1,16], index: 22, kind: input, shape index: {}]   ;;  %s6575_s23 = inlined_call_operand.vmem [shape: f32[4,2,2], index: 23, kind: output, shape index: {}]  }
   0x1   :  { %6579 = sst [smem:[#allocation29_spill]] %s6552_s0 }
   0x2   :  { %6580 = sst [smem:[#allocation30_spill]] %s6553_s1 }
   0x3   :  { %6581 = sst [smem:[#allocation31_spill]] %s6554_s2 }
   0x4   :  { %6582 = sst [smem:[#allocation32_spill]] %s6555_s3 }
   0x5   :  { %6583 = sst [smem:[#allocation33_spill]] %s6556_s4 }
   0x6   :  { %6584 = sst [smem:[#allocation34_spill]] %s6557_s5 }
   0x7   :  { %6585 = sst [smem:[#allocation35_spill]] %s6558_s6 }
   0x8   :  { %6586 = sst [smem:[#allocation36_spill]] %s6559_s7 }
   0x9   :  { %28 = vsyncpa [#allocation4], 0 }
   0xa   :  { %29 = vsyncpa [#allocation6], 0 }
   0xb   :  { %30 = vsyncpa [#allocation9], 0 }
   0xc   :  { %31 = vsyncpa [#allocation12], 0 }
   0xd   :  { %32 = vsyncpa [#allocation15], 0 }
   0xe   :  { %33 = vsyncpa [#allocation18], 0 }
   0xf   :  { %34 = vsyncpa [#allocation21], 0  ;;  %s5527_s4 = smov [#allocation5]  }
  0x10   :  { %s54_s30 = sshll.u32 %s5527_s4, 4  ;;  %s55_s30 = int_to_ptr.vmem [resolvable:$true] %s54_s30 }
  0x11   :  { %s5281_s24 = scalar_lea.vmem %s55_s30, 256  ;;  %p5286_p1 = scmp.lt.s32.totalorder %s55_s30, %s55_s30 }
  0x12   :  { %p5282_p0 = scmp.ne.s32.totalorder %s55_s30, %s5281_s24  ;;  %p5287_p2 = scmp.lt.s32.totalorder %s5281_s24, %s5281_s24 }
  0x14   :  { %p5288_p3 = por %p5287_p2, %p5286_p1 }
  0x16   :  { %p5289_p4 = pnand %p5288_p3, %p5282_p0 }
  0x18   :  { %5292 = shalt.err (!%p5289_p4)
}
  0x19   :  { %s5528_s25 = smov 128   ;;  %s5529_s5 = smov 8  }
  0x1a   :  { %s6587_s2 = sld [smem:[#allocation32_spill]]  ;;  %s5530_s6 = smov [#allocation8]  }
  0x1b   :  { %s79_s27 = sshll.u32 %s5530_s6, 4  ;;  %s5531_s7 = smov [#allocation11]   ;;  %s80_s27 = int_to_ptr.vmem [resolvable:$true] %s79_s27 }
  0x1c   :  { %s103_s28 = sshll.u32 %s5531_s7, 4  ;;  %s5301_s29 = scalar_lea.vmem %s80_s27, 16  ;;  %s104_s28 = int_to_ptr.vmem [resolvable:$true] %s103_s28 }
  0x1d   :  { %p5302_p5 = scmp.ne.s32.totalorder %s80_s27, %s5301_s29  ;;  %s5305_s3 = scalar_lea.vmem %s80_s27, 32 }
  0x1e   :  { %p5306_p6 = scmp.lt.s32.totalorder %s80_s27, %s80_s27  ;;  %p5307_p7 = scmp.lt.s32.totalorder %s5305_s3, %s5301_s29 }
  0x20   :  { %60 = dma.hbm_to_vmem [thread:$0]  %s6587_s2, 256, %s55_s30, [#allocation6], %s5528_s25, %s5528_s25, %s5529_s5  }
  0x21   :  { %p5308_p8 = por %p5307_p7, %p5306_p6 }
  0x23   :  { %p5309_p9 = pnand %p5308_p8, %p5302_p5 }
  0x25   :  { %5312 = shalt.err (!%p5309_p9)
}
  0x26   :  { %s6588_s24 = sld [smem:[#allocation35_spill]]  ;;  %s5321_s1 = scalar_lea.vmem %s104_s28, 16 }
  0x27   :  { %p5322_p10 = scmp.ne.s32.totalorder %s104_s28, %s5321_s1  ;;  %s5325_s30 = scalar_lea.vmem %s104_s28, 32 }
  0x28   :  { %p5326_p11 = scmp.lt.s32.totalorder %s104_s28, %s104_s28  ;;  %p5327_p12 = scmp.lt.s32.totalorder %s5325_s30, %s5321_s1 }
  0x2a   :  { %p5328_p13 = por %p5327_p12, %p5326_p11 }
  0x2c   :  { %82 = dma.hbm_to_vmem [thread:$0]  %s6588_s24, 16, %s80_s27, [#allocation9]  }
  0x2d   :  { %p5329_p0 = pnand %p5328_p13, %p5322_p10 }
  0x2f   :  { %5332 = shalt.err (!%p5329_p0)
}
  0x30   :  { %106 = dma.hbm_to_vmem [thread:$0]  %s6562_s10, 16, %s104_s28, [#allocation12]  }
  0x31   :  { %s5532_s6 = smov [#allocation14]   ;;  %s5533_s29 = smov [#allocation17]  }
  0x32   :  { %s125_s7 = sshll.u32 %s5532_s6, 4  ;;  %s147_s3 = sshll.u32 %s5533_s29, 4  ;;  %s126_s7 = int_to_ptr.vmem [resolvable:$true] %s125_s7  ;;  %s148_s3 = int_to_ptr.vmem [resolvable:$true] %s147_s3 }
  0x33   :  { %s5341_s0 = scalar_lea.vmem %s126_s7, 16  ;;  %s5345_s27 = scalar_lea.vmem %s126_s7, 32 }
  0x34   :  { %p5342_p1 = scmp.ne.s32.totalorder %s126_s7, %s5341_s0  ;;  %p5346_p2 = scmp.lt.s32.totalorder %s126_s7, %s126_s7 }
  0x35   :  { %p5347_p3 = scmp.lt.s32.totalorder %s5345_s27, %s5341_s0 }
  0x37   :  { %p5348_p4 = por %p5347_p3, %p5346_p2 }
  0x39   :  { %p5349_p5 = pnand %p5348_p4, %p5342_p1 }
  0x3b   :  { %5352 = shalt.err (!%p5349_p5)
}
  0x3c   :  { %128 = dma.hbm_to_vmem [thread:$0]  %s6564_s12, 16, %s126_s7, [#allocation15]  }
  0x3d   :  { %s5361_s1 = scalar_lea.vmem %s148_s3, 16  ;;  %s5365_s10 = scalar_lea.vmem %s148_s3, 32 }
  0x3e   :  { %p5362_p6 = scmp.ne.s32.totalorder %s148_s3, %s5361_s1  ;;  %p5366_p7 = scmp.lt.s32.totalorder %s148_s3, %s148_s3 }
  0x3f   :  { %p5367_p8 = scmp.lt.s32.totalorder %s5365_s10, %s5361_s1 }
  0x41   :  { %p5368_p9 = por %p5367_p8, %p5366_p7 }
  0x43   :  { %p5369_p10 = pnand %p5368_p9, %p5362_p6 }
  0x45   :  { %5372 = shalt.err (!%p5369_p10)
}
  0x46   :  { %150 = dma.hbm_to_vmem [thread:$0]  %s6566_s14, 16, %s148_s3, [#allocation18]  }
  0x47   :  { %s5534_s26 = smov [#allocation3]   ;;  %s5535_s6 = smov [#allocation7]  }
  0x48   :  { %s43_s2 = sshll.u32 %s5534_s26, 4  ;;  %s67_s29 = sshll.u32 %s5535_s6, 4  ;;  %s44_s2 = int_to_ptr.vmem [resolvable:$true] %s43_s2  ;;  %s68_s29 = int_to_ptr.vmem [resolvable:$true] %s67_s29 }
  0x49   :  { %s5381_s0 = scalar_lea.vmem %s44_s2, 32  ;;  %p5386_p12 = scmp.lt.s32.totalorder %s44_s2, %s44_s2 }
  0x4a   :  { %p5382_p11 = scmp.ne.s32.totalorder %s44_s2, %s5381_s0  ;;  %p5387_p13 = scmp.lt.s32.totalorder %s5381_s0, %s5381_s0 }
  0x4c   :  { %p5388_p0 = por %p5387_p13, %p5386_p12 }
  0x4e   :  { %p5389_p1 = pnand %p5388_p0, %p5382_p11 }
  0x50   :  { %5392 = shalt.err (!%p5389_p1)
}
  0x51   :  { %s6589_s27 = sld [smem:[#allocation30_spill]]  ;;  %s5401_s4 = scalar_lea.vmem %s68_s29, 16 }
  0x52   :  { %p5402_p2 = scmp.ne.s32.totalorder %s68_s29, %s5401_s4  ;;  %s5405_s14 = scalar_lea.vmem %s68_s29, 32 }
  0x53   :  { %p5406_p3 = scmp.lt.s32.totalorder %s68_s29, %s68_s29  ;;  %p5407_p4 = scmp.lt.s32.totalorder %s5405_s14, %s5401_s4 }
  0x55   :  { %p5408_p5 = por %p5407_p4, %p5406_p3 }
  0x57   :  { %46 = dma.hbm_to_vmem [thread:$0]  %s6589_s27, 32, %s44_s2, [#allocation4]  }
  0x58   :  { %p5409_p6 = pnand %p5408_p5, %p5402_p2 }
  0x5a   :  { %5412 = shalt.err (!%p5409_p6)
}
  0x5b   :  { %s6590_s1 = sld [smem:[#allocation33_spill]]  ;;  %s5536_s10 = smov [#allocation10]  }
  0x5c   :  { %s91_s28 = sshll.u32 %s5536_s10, 4  ;;  %s5537_s30 = smov [#allocation13]   ;;  %s92_s28 = int_to_ptr.vmem [resolvable:$true] %s91_s28 }
  0x5d   :  { %s112_s26 = sshll.u32 %s5537_s30, 4  ;;  %s5421_s6 = scalar_lea.vmem %s92_s28, 16  ;;  %s113_s26 = int_to_ptr.vmem [resolvable:$true] %s112_s26 }
  0x5e   :  { %p5422_p7 = scmp.ne.s32.totalorder %s92_s28, %s5421_s6  ;;  %s5425_s2 = scalar_lea.vmem %s92_s28, 32 }
  0x5f   :  { %p5426_p8 = scmp.lt.s32.totalorder %s92_s28, %s92_s28  ;;  %p5427_p9 = scmp.lt.s32.totalorder %s5425_s2, %s5421_s6 }
  0x61   :  { %70 = dma.hbm_to_vmem [thread:$0]  %s6590_s1, 16, %s68_s29, [#allocation6]  }
  0x62   :  { %p5428_p10 = por %p5427_p9, %p5426_p8 }
  0x64   :  { %p5429_p11 = pnand %p5428_p10, %p5422_p7 }
  0x66   :  { %5432 = shalt.err (!%p5429_p11)
}
  0x67   :  { %94 = dma.hbm_to_vmem [thread:$0]  %s6560_s8, 16, %s92_s28, [#allocation9]  }
  0x68   :  { %s5441_s7 = scalar_lea.vmem %s113_s26, 256  ;;  %p5446_p13 = scmp.lt.s32.totalorder %s113_s26, %s113_s26 }
  0x69   :  { %p5442_p12 = scmp.ne.s32.totalorder %s113_s26, %s5441_s7  ;;  %p5447_p0 = scmp.lt.s32.totalorder %s5441_s7, %s5441_s7 }
  0x6b   :  { %p5448_p1 = por %p5447_p0, %p5446_p13 }
  0x6d   :  { %p5449_p2 = pnand %p5448_p1, %p5442_p12 }
  0x6f   :  { %5452 = shalt.err (!%p5449_p2)
}
  0x70   :  { %118 = dma.hbm_to_vmem [thread:$0]  %s6563_s11, 256, %s113_s26, [#allocation12], %s5528_s25, %s5528_s25, %s5529_s5  }
  0x71   :  { %s5538_s4 = smov [#allocation16]   ;;  %s5539_s3 = smov [#allocation19]  }
  0x72   :  { %s134_s14 = sshll.u32 %s5538_s4, 4  ;;  %s156_s8 = sshll.u32 %s5539_s3, 4  ;;  %s135_s14 = int_to_ptr.vmem [resolvable:$true] %s134_s14  ;;  %s157_s8 = int_to_ptr.vmem [resolvable:$true] %s156_s8 }
  0x73   :  { %s5461_s24 = scalar_lea.vmem %s135_s14, 512  ;;  %p5466_p4 = scmp.lt.s32.totalorder %s135_s14, %s135_s14 }
  0x74   :  { %p5462_p3 = scmp.ne.s32.totalorder %s135_s14, %s5461_s24  ;;  %p5467_p5 = scmp.lt.s32.totalorder %s5461_s24, %s5461_s24 }
  0x76   :  { %p5468_p6 = por %p5467_p5, %p5466_p4 }
  0x78   :  { %p5469_p7 = pnand %p5468_p6, %p5462_p3 }
  0x7a   :  { %5472 = shalt.err (!%p5469_p7)
}
  0x7b   :  { %140 = dma.hbm_to_vmem [thread:$0]  %s6565_s13, 512, %s135_s14, [#allocation15], %s5528_s25, %s5528_s25, %s5529_s5  }
  0x7c   :  { %s5481_s11 = scalar_lea.vmem %s157_s8, 512  ;;  %p5486_p9 = scmp.lt.s32.totalorder %s157_s8, %s157_s8 }
  0x7d   :  { %p5482_p8 = scmp.ne.s32.totalorder %s157_s8, %s5481_s11  ;;  %p5487_p10 = scmp.lt.s32.totalorder %s5481_s11, %s5481_s11 }
  0x7f   :  { %p5488_p11 = por %p5487_p10, %p5486_p9 }
  0x81   :  { %p5489_p12 = pnand %p5488_p11, %p5482_p8 }
  0x83   :  { %5492 = shalt.err (!%p5489_p12)
}
  0x84   :  { %162 = dma.hbm_to_vmem [thread:$0]  %s6567_s15, 512, %s157_s8, [#allocation18], %s5528_s25, %s5528_s25, %s5529_s5  }
  0x85   :  { %s5540_s26 = smov [#allocation20]  }
  0x86   :  { %s169_s6 = sshll.u32 %s5540_s26, 4  ;;  %s170_s6 = int_to_ptr.vmem [resolvable:$true] %s169_s6 }
  0x87   :  { %s5501_s2 = scalar_lea.vmem %s170_s6, 16  ;;  %s5505_s13 = scalar_lea.vmem %s170_s6, 32 }
  0x88   :  { %p5502_p13 = scmp.ne.s32.totalorder %s170_s6, %s5501_s2  ;;  %p5506_p0 = scmp.lt.s32.totalorder %s170_s6, %s170_s6 }
  0x89   :  { %p5507_p1 = scmp.lt.s32.totalorder %s5505_s13, %s5501_s2 }
  0x8b   :  { %p5508_p2 = por %p5507_p1, %p5506_p0 }
  0x8d   :  { %p5509_p3 = pnand %p5508_p2, %p5502_p13 }
  0x8f   :  { %5512 = shalt.err (!%p5509_p3)
}
  0x90   :  { %172 = dma.hbm_to_vmem [thread:$0]  %s6568_s16, 16, %s170_s6, [#allocation21]  }
  0x91   :  { %5513 = dma.done.wait [#allocation4], 32  }
  0x92   :  { %5514 = vsyncadd [#allocation4], 4294967264 }
  0x93   :  { %5515 = dma.done.wait [#allocation6], 272  }
  0x94   :  { %5516 = vsyncadd [#allocation6], 4294967024 }
  0x95   :  { %5517 = dma.done.wait [#allocation9], 32  }
  0x96   :  { %5518 = vsyncadd [#allocation9], 4294967264 }
  0x97   :  { %5519 = dma.done.wait [#allocation12], 272  }
  0x98   :  { %5520 = vsyncadd [#allocation12], 4294967024 }
  0x99   :  { %5521 = dma.done.wait [#allocation15], 528  }
  0x9a   :  { %5522 = vsyncadd [#allocation15], 4294966768 }
  0x9b   :  { %5523 = dma.done.wait [#allocation18], 528  }
  0x9c   :  { %5524 = vsyncadd [#allocation18], 4294966768 }
  0x9d   :  { %5525 = dma.done.wait [#allocation21], 16  }
  0x9e   :  { %5526 = vsyncadd [#allocation21], 4294967280  ;;  %vm294_vm0 = vcmask 1041408   ;;  %vm287_vm1 = vcmask 15360   ;;  %v279_v0 = vld [vmem:[#allocation3] sm:$0x3] }
  0x9f   :  { %s6591_s16 = sld [smem:[#allocation29_spill]]  ;;  %4652 = vmatprep.subr.msk.mxu0 %vm294_vm0, %v279_v0  ;;  %v5541_v4 = vmov 0.0   ;;  %vm5542_vm2 = vmmov 0   ;;  %v376_v8 = vld [vmem:[#allocation5 + $0x8] sm:$0xff]  ;;  %v375_v9 = vld [vmem:[#allocation5] sm:$0xff]  ;;  %s5543_s26 = smov 64  }
  0xa0   :  { %s6592_s4 = sld [smem:[#allocation34_spill]]  ;;  %4653 = vmatpush3.msk.msra.mxu0 %vm294_vm0, %v279_v0  ;;  %4657 = vmatprep.subr.mxu1 %v376_v8  ;;  %v5765_v15 = vld [vmem:[#allocation8] ss:$0 sm:$0xff]  ;;  %vm384_vm3 = vcmask 130048   ;;  %v4375_v21 = vld [vmem:[#allocation7] ss:$0 sm:$0xff] }
  0xa1   :  { %4664 = vmatprep.subr.mxu0 %v5541_v4  ;;  %4658 = vmatpush3.msra.mxu1 %v376_v8  ;;  %s6593_s30 = sld [smem:[#allocation31_spill]]  ;;  %s5544_s6 = smov 96   ;;  %vm574_vm4 = vcmask 254976   ;;  %vm470_vm5 = vcmask 261120   ;;  %vm686_vm6 = vcmask 257026   ;;  %vm916_vm7 = vcmask 261126  }
  0xa2   :  { %4659 = vmatprep.subr.mxu1 %v375_v9  ;;  %s6594_s29 = sld [smem:[#allocation36_spill]]  ;;  %vm801_vm8 = vcmask 259076   ;;  %vm2820_vm9 = vcmask 9216  }
  0xa3   :  { %4660 = vmatpush3.msra.mxu1 %v375_v9 }
  0xa4   :  { %4675 = vmatprep.subr.mxu1 %v5541_v4 }
  0xa5   :  { %v277_v1 = vld [vmem:[%s6591_s16] sm:$0xff]  ;;  %v278_v2 = vld [vmem:[%s6591_s16 + $0x8] sm:$0xff] }
  0xa6   :  { %4654 = vmatprep.mubr.msk.f32.mxu0 %vm287_vm1, %v277_v1  ;;  %v5722_v3 = vld [vmem:[%s6592_s4 + $0x18] sm:$0xff]  ;;  %v5728_v5 = vld [vmem:[%s6592_s4 + $0x10] sm:$0xff]  ;;  %v5737_v6 = vld [vmem:[%s6592_s4 + $0x8] sm:$0xff] }
  0xa7   :  { %4655 = vmatmul.mubr.msk.f32.vlgmr.msra.gmra.mxu0 %vm287_vm1, %v278_v2  ;;  %v5744_v7 = vld [vmem:[%s6592_s4] sm:$0xff] }
  0xa8   :  { %4665 = vmatpush3.msra.mxu0 %v5722_v3  ;;  %4672 = vmatprep.mubr.msk.f32.mxu0 %vm5542_vm2, %v5541_v4  ;;  %v4371_v10 = vld [vmem:[%s6593_s30] ss:$0 sm:$0xff] }
  0xa9   :  { %4666 = vmatprep.subr.mxu0 %v5541_v4 }
  0xaa   :  { %4667 = vmatpush3.msra.mxu0 %v5728_v5 }
  0xab   :  { %4668 = vmatprep.subr.mxu0 %v5541_v4 }
  0xac   :  { %4669 = vmatpush3.msra.mxu0 %v5737_v6 }
  0xad   :  { %4670 = vmatprep.subr.mxu0 %v5541_v4 }
  0xae   :  { %4671 = vmatpush3.msra.mxu0 %v5744_v7 }
  0xaf   :  { %4673 = vmatmul.mubr.f32.vlgmr.msra.gmra.mxu0 %v5541_v4  ;;  %4686 = vmatprep.subr.mxu0 %v5541_v4 }
  0xb0   :  { %4687 = vmatpush3.msra.mxu0 %v5722_v3  ;;  %4694 = vmatprep.mubr.msk.f32.mxu0 %vm5542_vm2, %v5541_v4 }
  0xb1   :  { %4688 = vmatprep.subr.mxu0 %v5541_v4 }
  0xb2   :  { %4689 = vmatpush3.msra.mxu0 %v5728_v5 }
  0xb3   :  { %4690 = vmatprep.subr.mxu0 %v5541_v4 }
  0xb4   :  { %4691 = vmatpush3.msra.mxu0 %v5737_v6 }
  0xb5   :  { %4692 = vmatprep.subr.mxu0 %v5541_v4 }
  0xb6   :  { %4693 = vmatpush3.msra.mxu0 %v5744_v7 }
  0xb7   :  { %4708 = vmatprep.subr.mxu0 %v5541_v4 }
 0x167   :  { %v4656_v11 = vpop.f32.mrf.mxu0 }
 0x168   :  { %v370_v12 = vadd.f32 %v4656_v11, %v4371_v10 }
 0x169   :  { %v364_v13 = vpop.f32.mrf.mxu0 }
 0x16a   :  { %v365_v14 = vadd.f32 %v4371_v10, %v364_v13 }
 0x16c   :  { %5117 = vtanh.f32 %v365_v14 }
 0x16d   :  { %5119 = vtanh.f32 %v370_v12 }
 0x16f   :  { %v540_v16 = vpop.f32.mrf.mxu0 }
 0x170   :  { %v541_v17 = vadd.f32 %v5765_v15, %v540_v16 }
 0x171   :  { %v4674_v18 = vpop.f32.mrf.mxu0 }
 0x172   :  { %552 = vrot.lane.b32.xlu0 %v541_v17, %s5543_s26 }
 0x179   :  { %v5118_v19 = vpop.eup %5117 }
 0x17a   :  { %v5120_v20 = vpop.eup %5119  ;;  %4661 = vmatprep.mubr.msk.f32.mxu1 %vm384_vm3, %v5118_v19 }
 0x17b   :  { %4662 = vmatmul.mubr.msk.f32.vlgmr.msra.gmra.mxu1 %vm384_vm3, %v5120_v20 }
 0x17c   :  { %4676 = vmatpush3.msra.mxu1 %v5722_v3  ;;  %4683 = vmatprep.mubr.msk.f32.mxu1 %vm5542_vm2, %v5541_v4 }
 0x17d   :  { %4677 = vmatprep.subr.mxu1 %v5541_v4 }
 0x17e   :  { %4678 = vmatpush3.msra.mxu1 %v5728_v5 }
 0x17f   :  { %4679 = vmatprep.subr.mxu1 %v5541_v4 }
 0x180   :  { %4680 = vmatpush3.msra.mxu1 %v5737_v6 }
 0x181   :  { %4681 = vmatprep.subr.mxu1 %v5541_v4 }
 0x182   :  { %4682 = vmatpush3.msra.mxu1 %v5744_v7 }
 0x183   :  { %4697 = vmatprep.subr.mxu1 %v5541_v4 }
 0x1e4   :  { %v553_v30 = vpop.permute.xlu0 %552 }
 0x23b   :  { %v4663_v22 = vpop.f32.mrf.mxu1 }
 0x23c   :  { %v5781_v23 = vadd.f32 %v4663_v22, %v4375_v21 }
 0x23d   :  { %v457_v24 = vpop.f32.mrf.mxu1 }
 0x23e   :  { %v5783_v25 = vadd.f32 %v4375_v21, %v457_v24 }
 0x240   :  { %v544_v26 = vadd.f32 %v541_v17, %v5783_v25 }
 0x242   :  { %v4378_v27 = vmul.f32 -1.442695, %v544_v26 }
 0x244   :  { %5121 = vpow2.f32 %v4378_v27 }
 0x251   :  { %v5122_v28 = vpop.eup %5121 }
 0x252   :  { %v548_v29 = vadd.f32 1.0, %v5122_v28 }
 0x254   :  { %5123 = vrcp.f32 %v548_v29 }
 0x261   :  { %v5124_v31 = vpop.eup %5123 }
 0x262   :  { %v555_v32 = vmul.f32 %v5124_v31, %v553_v30  ;;  %v562_v36 = vsub.f32 1.0, %v5124_v31  ;;  %v568_v38 = vmul.f32 0.0, %v5124_v31 }
 0x264   :  { %557 = vrot.lane.b32.xlu0 %v555_v32, %s5543_s26 }
 0x2d6   :  { %v558_v33 = vpop.permute.xlu0 %557 }
 0x2d7   :  { %v560_v34 = vadd.f32 %v558_v33, %v5783_v25 }
 0x2d9   :  { %5125 = vtanh.f32 %v560_v34 }
 0x2e6   :  { %v5126_v35 = vpop.eup %5125 }
 0x2e7   :  { %564 = vrot.lane.b32.xlu1 %v5126_v35, %s5544_s6 }
 0x359   :  { %v565_v37 = vpop.permute.xlu1 %564 }
 0x35a   :  { %v567_v39 = vmul.f32 %v565_v37, %v562_v36 }
 0x35c   :  { %v569_v40 = vadd.f32 %v568_v38, %v567_v39 }
 0x35e   :  { %571 = vrot.lane.b32.xlu1 %v569_v40, %s5544_s6  ;;  %v678_v56 = vrot.slane %v569_v40, 6 }
 0x3d0   :  { %v572_v41 = vpop.permute.xlu1 %571 }
 0x3d1   :  { %575 = vst.msk [vmem:[#allocation2] sm:$0x3] %vm574_vm4, %v572_v41  ;;  %4684 = vmatmul.mubr.msk.f32.vlgmr.msra.gmra.mxu1 %vm470_vm5, %v572_v41 }
 0x3d2   :  { %4698 = vmatpush3.msra.mxu1 %v5722_v3  ;;  %4705 = vmatprep.mubr.msk.f32.mxu1 %vm5542_vm2, %v5541_v4 }
 0x3d3   :  { %4699 = vmatprep.subr.mxu1 %v5541_v4 }
 0x3d4   :  { %4700 = vmatpush3.msra.mxu1 %v5728_v5 }
 0x3d5   :  { %4701 = vmatprep.subr.mxu1 %v5541_v4 }
 0x3d6   :  { %4702 = vmatpush3.msra.mxu1 %v5737_v6 }
 0x3d7   :  { %4703 = vmatprep.subr.mxu1 %v5541_v4 }
 0x3d8   :  { %4704 = vmatpush3.msra.mxu1 %v5744_v7 }
 0x3d9   :  { %4719 = vmatprep.subr.mxu1 %v5541_v4 }
 0x491   :  { %v648_v42 = vpop.f32.mrf.mxu1 }
 0x492   :  { %v649_v43 = vadd.f32 %v5765_v15, %v648_v42 }
 0x493   :  { %v4685_v44 = vpop.f32.mrf.mxu1 }
 0x494   :  { %v653_v45 = vrot.slane %v649_v43, 6 }
 0x496   :  { %662 = vrot.lane.b32.xlu0 %v653_v45, %s5543_s26  ;;  %v655_v46 = vadd.f32 %v653_v45, %v5783_v25 }
 0x498   :  { %v4380_v47 = vmul.f32 -1.442695, %v655_v46 }
 0x49a   :  { %5127 = vpow2.f32 %v4380_v47 }
 0x4a7   :  { %v5128_v48 = vpop.eup %5127 }
 0x4a8   :  { %v659_v49 = vadd.f32 1.0, %v5128_v48 }
 0x4aa   :  { %5129 = vrcp.f32 %v659_v49 }
 0x4b7   :  { %v5130_v50 = vpop.eup %5129 }
 0x4b8   :  { %v672_v57 = vsub.f32 1.0, %v5130_v50  ;;  %v680_v60 = vmul.f32 %v5130_v50, %v678_v56 }
 0x508   :  { %v663_v51 = vpop.permute.xlu0 %662 }
 0x509   :  { %v665_v52 = vmul.f32 %v5130_v50, %v663_v51 }
 0x50b   :  { %667 = vrot.lane.b32.xlu1 %v665_v52, %s5543_s26 }
 0x57d   :  { %v668_v53 = vpop.permute.xlu1 %667 }
 0x57e   :  { %v670_v54 = vadd.f32 %v668_v53, %v5783_v25 }
 0x580   :  { %5131 = vtanh.f32 %v670_v54 }
 0x58d   :  { %v5132_v55 = vpop.eup %5131 }
 0x58e   :  { %674 = vrot.lane.b32.xlu0 %v5132_v55, %s5544_s6 }
 0x600   :  { %v675_v58 = vpop.permute.xlu0 %674 }
 0x601   :  { %v677_v59 = vmul.f32 %v675_v58, %v672_v57 }
 0x603   :  { %v5808_v61 = vadd.f32 %v680_v60, %v677_v59 }
 0x605   :  { %v692_v62 = vrot.slane %v5808_v61, 2  ;;  %v793_v21 = vrot.slane %v5808_v61, 6 }
 0x607   :  { %693 = vrot.lane.b32.xlu1 %v692_v62, %s5544_s6 }
 0x679   :  { %v694_v63 = vpop.permute.xlu1 %693 }
 0x67a   :  { %4695 = vmatmul.mubr.msk.f32.vlgmr.msra.gmra.mxu0 %vm470_vm5, %v694_v63 }
 0x67b   :  { %4709 = vmatpush3.msra.mxu0 %v5722_v3  ;;  %4716 = vmatprep.mubr.msk.f32.mxu0 %vm5542_vm2, %v5541_v4 }
 0x67c   :  { %4710 = vmatprep.subr.mxu0 %v5541_v4 }
 0x67d   :  { %4711 = vmatpush3.msra.mxu0 %v5728_v5 }
 0x67e   :  { %4712 = vmatprep.subr.mxu0 %v5541_v4 }
 0x67f   :  { %4713 = vmatpush3.msra.mxu0 %v5737_v6 }
 0x680   :  { %4714 = vmatprep.subr.mxu0 %v5541_v4 }
 0x681   :  { %4715 = vmatpush3.msra.mxu0 %v5744_v7 }
 0x682   :  { %4730 = vmatprep.subr.mxu0 %v5541_v4 }
 0x73a   :  { %v763_v0 = vpop.f32.mrf.mxu0 }
 0x73b   :  { %v764_v1 = vadd.f32 %v5765_v15, %v763_v0 }
 0x73c   :  { %v4696_v2 = vpop.f32.mrf.mxu0 }
 0x73d   :  { %v768_v8 = vrot.slane %v764_v1, 4 }
 0x73f   :  { %777 = vrot.lane.b32.xlu0 %v768_v8, %s5543_s26  ;;  %v770_v9 = vadd.f32 %v768_v8, %v5783_v25 }
 0x741   :  { %v4382_v10 = vmul.f32 -1.442695, %v770_v9 }
 0x743   :  { %5133 = vpow2.f32 %v4382_v10 }
 0x750   :  { %v5134_v11 = vpop.eup %5133 }
 0x751   :  { %v774_v12 = vadd.f32 1.0, %v5134_v11 }
 0x753   :  { %5135 = vrcp.f32 %v774_v12 }
 0x760   :  { %v5136_v13 = vpop.eup %5135 }
 0x761   :  { %v787_v20 = vsub.f32 1.0, %v5136_v13  ;;  %v795_v24 = vmul.f32 %v5136_v13, %v793_v21 }
 0x7b1   :  { %v778_v14 = vpop.permute.xlu0 %777 }
 0x7b2   :  { %v780_v16 = vmul.f32 %v5136_v13, %v778_v14 }
 0x7b4   :  { %782 = vrot.lane.b32.xlu1 %v780_v16, %s5543_s26 }
 0x826   :  { %v783_v17 = vpop.permute.xlu1 %782 }
 0x827   :  { %v785_v18 = vadd.f32 %v783_v17, %v5783_v25 }
 0x829   :  { %5137 = vtanh.f32 %v785_v18 }
 0x836   :  { %v5138_v19 = vpop.eup %5137 }
 0x837   :  { %789 = vrot.lane.b32.xlu0 %v5138_v19, %s5544_s6 }
 0x8a9   :  { %v790_v22 = vpop.permute.xlu0 %789 }
 0x8aa   :  { %v792_v26 = vmul.f32 %v790_v22, %v787_v20 }
 0x8ac   :  { %v5830_v27 = vadd.f32 %v795_v24, %v792_v26 }
 0x8ae   :  { %v807_v28 = vrot.slane %v5830_v27, 4  ;;  %v908_v45 = vrot.slane %v5830_v27, 6 }
 0x8b0   :  { %808 = vrot.lane.b32.xlu1 %v807_v28, %s5544_s6 }
 0x922   :  { %v809_v29 = vpop.permute.xlu1 %808 }
 0x923   :  { %4706 = vmatmul.mubr.msk.f32.vlgmr.msra.gmra.mxu1 %vm470_vm5, %v809_v29 }
 0x924   :  { %4720 = vmatpush3.msra.mxu1 %v5722_v3  ;;  %4727 = vmatprep.mubr.msk.f32.mxu1 %vm5542_vm2, %v5541_v4 }
 0x925   :  { %4721 = vmatprep.subr.mxu1 %v5541_v4 }
 0x926   :  { %4722 = vmatpush3.msra.mxu1 %v5728_v5 }
 0x927   :  { %4723 = vmatprep.subr.mxu1 %v5541_v4 }
 0x928   :  { %4724 = vmatpush3.msra.mxu1 %v5737_v6 }
 0x929   :  { %4725 = vmatprep.subr.mxu1 %v5541_v4 }
 0x92a   :  { %4726 = vmatpush3.msra.mxu1 %v5744_v7 }
 0x92b   :  { %4741 = vmatprep.subr.mxu1 %v5541_v4 }
 0x9e3   :  { %v878_v30 = vpop.f32.mrf.mxu1 }
 0x9e4   :  { %v879_v31 = vadd.f32 %v5765_v15, %v878_v30 }
 0x9e5   :  { %v4707_v32 = vpop.f32.mrf.mxu1 }
 0x9e6   :  { %v883_v33 = vrot.slane %v879_v31, 2 }
 0x9e8   :  { %892 = vrot.lane.b32.xlu0 %v883_v33, %s5543_s26  ;;  %v885_v34 = vadd.f32 %v883_v33, %v5783_v25 }
 0x9ea   :  { %v4384_v35 = vmul.f32 -1.442695, %v885_v34 }
 0x9ec   :  { %5139 = vpow2.f32 %v4384_v35 }
 0x9f9   :  { %v5140_v36 = vpop.eup %5139 }
 0x9fa   :  { %v889_v37 = vadd.f32 1.0, %v5140_v36 }
 0x9fc   :  { %5141 = vrcp.f32 %v889_v37 }
 0xa09   :  { %v5142_v38 = vpop.eup %5141 }
 0xa0a   :  { %v902_v44 = vsub.f32 1.0, %v5142_v38  ;;  %v910_v47 = vmul.f32 %v5142_v38, %v908_v45 }
 0xa5a   :  { %v893_v39 = vpop.permute.xlu0 %892 }
 0xa5b   :  { %v895_v40 = vmul.f32 %v5142_v38, %v893_v39 }
 0xa5d   :  { %897 = vrot.lane.b32.xlu1 %v895_v40, %s5543_s26 }
 0xacf   :  { %v898_v41 = vpop.permute.xlu1 %897 }
 0xad0   :  { %v900_v42 = vadd.f32 %v898_v41, %v5783_v25 }
 0xad2   :  { %5143 = vtanh.f32 %v900_v42 }
 0xadf   :  { %v5144_v43 = vpop.eup %5143 }
 0xae0   :  { %904 = vrot.lane.b32.xlu0 %v5144_v43, %s5544_s6 }
 0xb52   :  { %v905_v46 = vpop.permute.xlu0 %904 }
 0xb53   :  { %v907_v48 = vmul.f32 %v905_v46, %v902_v44 }
 0xb55   :  { %v5852_v49 = vadd.f32 %v910_v47, %v907_v48 }
 0xb57   :  { %v922_v50 = vrot.slane %v5852_v49, 6 }
 0xb59   :  { %923 = vrot.lane.b32.xlu1 %v922_v50, %s5544_s6 }
 0xbcb   :  { %v924_v51 = vpop.permute.xlu1 %923 }
 0xbcc   :  { %4717 = vmatmul.mubr.msk.f32.vlgmr.msra.gmra.mxu0 %vm470_vm5, %v924_v51 }
 0xbcd   :  { %4731 = vmatpush3.msra.mxu0 %v5722_v3  ;;  %4738 = vmatprep.mubr.msk.f32.mxu0 %vm5542_vm2, %v5541_v4 }
 0xbce   :  { %4732 = vmatprep.subr.mxu0 %v5541_v4 }
 0xbcf   :  { %4733 = vmatpush3.msra.mxu0 %v5728_v5 }
 0xbd0   :  { %4734 = vmatprep.subr.mxu0 %v5541_v4 }
 0xbd1   :  { %4735 = vmatpush3.msra.mxu0 %v5737_v6 }
 0xbd2   :  { %4736 = vmatprep.subr.mxu0 %v5541_v4 }
 0xbd3   :  { %4737 = vmatpush3.msra.mxu0 %v5744_v7 }
 0xc8c   :  { %v993_v25 = vpop.f32.mrf.mxu0 }
 0xc8d   :  { %v994_v52 = vadd.f32 %v5765_v15, %v993_v25 }
 0xc8e   :  { %v4718_v53 = vpop.f32.mrf.mxu0 }
 0xc8f   :  { %1005 = vrot.lane.b32.xlu0 %v994_v52, %s5543_s26  ;;  %v997_v54 = vadd.f32 %v994_v52, %v5781_v23 }
 0xc91   :  { %v4386_v55 = vmul.f32 -1.442695, %v997_v54 }
 0xc93   :  { %5145 = vpow2.f32 %v4386_v55 }
 0xca0   :  { %v5146_v56 = vpop.eup %5145 }
 0xca1   :  { %v1001_v57 = vadd.f32 1.0, %v5146_v56 }
 0xca3   :  { %5147 = vrcp.f32 %v1001_v57 }
 0xcb0   :  { %v5148_v58 = vpop.eup %5147 }
 0xcb1   :  { %v1015_v1 = vsub.f32 1.0, %v5148_v58  ;;  %v1022_v8 = vmul.f32 %v5148_v58, %v922_v50 }
 0xd01   :  { %v1006_v59 = vpop.permute.xlu0 %1005 }
 0xd02   :  { %v1008_v60 = vmul.f32 %v5148_v58, %v1006_v59 }
 0xd04   :  { %1010 = vrot.lane.b32.xlu1 %v1008_v60, %s5543_s26 }
 0xd76   :  { %v1011_v62 = vpop.permute.xlu1 %1010 }
 0xd77   :  { %v1013_v63 = vadd.f32 %v1011_v62, %v5781_v23 }
 0xd79   :  { %5149 = vtanh.f32 %v1013_v63 }
 0xd86   :  { %v5150_v0 = vpop.eup %5149 }
 0xd87   :  { %1017 = vrot.lane.b32.xlu0 %v5150_v0, %s5544_s6 }
 0xdf9   :  { %v1018_v2 = vpop.permute.xlu0 %1017 }
 0xdfa   :  { %v1020_v9 = vmul.f32 %v1018_v2, %v1015_v1 }
 0xdfc   :  { %v1023_v10 = vadd.f32 %v1022_v8, %v1020_v9 }
 0xdfe   :  { %1025 = vrot.lane.b32.xlu1 %v1023_v10, %s5544_s6  ;;  %v1131_v24 = vrot.slane %v1023_v10, 6 }
 0xe70   :  { %v1026_v11 = vpop.permute.xlu1 %1025 }
 0xe71   :  { %1028 = vst.msk [vmem:[#allocation2 + $0x8] sm:$0x3] %vm574_vm4, %v1026_v11  ;;  %4728 = vmatmul.mubr.msk.f32.vlgmr.msra.gmra.mxu1 %vm470_vm5, %v1026_v11  ;;  %v5918_v11 = vld [vmem:[%s6561_s9 + $0x18] sm:$0xff] }
 0xe72   :  { %4742 = vmatpush3.msra.mxu1 %v5722_v3  ;;  %4749 = vmatprep.mubr.msk.f32.mxu1 %vm5542_vm2, %v5541_v4 }
 0xe73   :  { %4743 = vmatprep.subr.mxu1 %v5541_v4 }
 0xe74   :  { %4744 = vmatpush3.msra.mxu1 %v5728_v5 }
 0xe75   :  { %4745 = vmatprep.subr.mxu1 %v5541_v4 }
 0xe76   :  { %4746 = vmatpush3.msra.mxu1 %v5737_v6 }
 0xe77   :  { %4747 = vmatprep.subr.mxu1 %v5541_v4 }
 0xe78   :  { %4748 = vmatpush3.msra.mxu1 %v5744_v7 }
 0xe79   :  { %4763 = vmatprep.subr.mxu1 %v5541_v4 }
 0xf31   :  { %v1101_v12 = vpop.f32.mrf.mxu1 }
 0xf32   :  { %v1102_v3 = vadd.f32 %v5765_v15, %v1101_v12  ;;  %v5923_v12 = vld [vmem:[%s6561_s9 + $0x10] sm:$0xff] }
 0xf33   :  { %v4729_v13 = vpop.f32.mrf.mxu1 }
 0xf34   :  { %v1106_v14 = vrot.slane %v1102_v3, 6 }
 0xf36   :  { %1115 = vrot.lane.b32.xlu0 %v1106_v14, %s5543_s26  ;;  %v1108_v16 = vadd.f32 %v1106_v14, %v5781_v23 }
 0xf38   :  { %v4388_v5 = vmul.f32 -1.442695, %v1108_v16 }
 0xf3a   :  { %5151 = vpow2.f32 %v4388_v5 }
 0xf47   :  { %v5152_v17 = vpop.eup %5151 }
 0xf48   :  { %v1112_v18 = vadd.f32 1.0, %v5152_v17 }
 0xf4a   :  { %5153 = vrcp.f32 %v1112_v18 }
 0xf57   :  { %v5154_v6 = vpop.eup %5153 }
 0xf58   :  { %v1125_v26 = vsub.f32 1.0, %v5154_v6  ;;  %v1133_v30 = vmul.f32 %v5154_v6, %v1131_v24 }
 0xfa8   :  { %v1116_v19 = vpop.permute.xlu0 %1115 }
 0xfa9   :  { %v1118_v20 = vmul.f32 %v5154_v6, %v1116_v19  ;;  %v1373_v6 = vld [vmem:[%s6594_s29 + $0x18] sm:$0xff]  ;;  %v1372_v19 = vld [vmem:[%s6594_s29 + $0x10] sm:$0xff] }
 0xfaa   :  { %4752 = vmatprep.subr.mxu0 %v1373_v6 }
 0xfab   :  { %1120 = vrot.lane.b32.xlu1 %v1118_v20, %s5543_s26  ;;  %v1371_v20 = vld [vmem:[%s6594_s29 + $0x8] sm:$0xff] }
0x101d   :  { %v1121_v7 = vpop.permute.xlu1 %1120 }
0x101e   :  { %v1123_v21 = vadd.f32 %v1121_v7, %v5781_v23 }
0x1020   :  { %5155 = vtanh.f32 %v1123_v21  ;;  %v1370_v21 = vld [vmem:[%s6594_s29] sm:$0xff] }
0x102d   :  { %v5156_v22 = vpop.eup %5155 }
0x102e   :  { %1127 = vrot.lane.b32.xlu0 %v5156_v22, %s5544_s6 }
0x10a0   :  { %v1128_v28 = vpop.permute.xlu0 %1127 }
0x10a1   :  { %v1130_v29 = vmul.f32 %v1128_v28, %v1125_v26 }
0x10a3   :  { %v5891_v31 = vadd.f32 %v1133_v30, %v1130_v29 }
0x10a5   :  { %v1144_v32 = vrot.slane %v5891_v31, 2  ;;  %v1245_v50 = vrot.slane %v5891_v31, 6 }
0x10a7   :  { %1145 = vrot.lane.b32.xlu1 %v1144_v32, %s5544_s6 }
0x1119   :  { %v1146_v33 = vpop.permute.xlu1 %1145 }
0x111a   :  { %4739 = vmatmul.mubr.msk.f32.vlgmr.msra.gmra.mxu0 %vm470_vm5, %v1146_v33 }
0x111b   :  { %4753 = vmatpush3.msra.mxu0 %v1373_v6 }
0x111c   :  { %4754 = vmatprep.subr.mxu0 %v1372_v19 }
0x111d   :  { %4755 = vmatpush3.msra.mxu0 %v1372_v19 }
0x111e   :  { %4756 = vmatprep.subr.mxu0 %v1371_v20 }
0x111f   :  { %4757 = vmatpush3.msra.mxu0 %v1371_v20 }
0x1120   :  { %4758 = vmatprep.subr.mxu0 %v1370_v21 }
0x1121   :  { %4759 = vmatpush3.msra.mxu0 %v1370_v21 }
0x1122   :  { %4774 = vmatprep.subr.mxu0 %v5541_v4 }
0x11da   :  { %v1215_v34 = vpop.f32.mrf.mxu0 }
0x11db   :  { %v1216_v35 = vadd.f32 %v5765_v15, %v1215_v34 }
0x11dc   :  { %v4740_v36 = vpop.f32.mrf.mxu0 }
0x11dd   :  { %v1220_v37 = vrot.slane %v1216_v35, 4  ;;  %v4393_v35 = vld [vmem:[#allocation10] ss:$0 sm:$0xff] }
0x11df   :  { %1229 = vrot.lane.b32.xlu0 %v1220_v37, %s5543_s26  ;;  %v1222_v38 = vadd.f32 %v1220_v37, %v5781_v23 }
0x11e1   :  { %v4390_v39 = vmul.f32 -1.442695, %v1222_v38 }
0x11e3   :  { %5157 = vpow2.f32 %v4390_v39 }
0x11f0   :  { %v5158_v40 = vpop.eup %5157 }
0x11f1   :  { %v1226_v41 = vadd.f32 1.0, %v5158_v40 }
0x11f3   :  { %5159 = vrcp.f32 %v1226_v41 }
0x1200   :  { %v5160_v42 = vpop.eup %5159 }
0x1201   :  { %v1239_v48 = vsub.f32 1.0, %v5160_v42  ;;  %v1247_v25 = vmul.f32 %v5160_v42, %v1245_v50 }
0x1251   :  { %v1230_v43 = vpop.permute.xlu0 %1229 }
0x1252   :  { %v1232_v44 = vmul.f32 %v5160_v42, %v1230_v43 }
0x1254   :  { %1234 = vrot.lane.b32.xlu1 %v1232_v44, %s5543_s26 }
0x12c6   :  { %v1235_v45 = vpop.permute.xlu1 %1234 }
0x12c7   :  { %v1237_v46 = vadd.f32 %v1235_v45, %v5781_v23 }
0x12c9   :  { %5161 = vtanh.f32 %v1237_v46 }
0x12d6   :  { %v5162_v47 = vpop.eup %5161 }
0x12d7   :  { %1241 = vrot.lane.b32.xlu0 %v5162_v47, %s5544_s6 }
0x1349   :  { %v1242_v51 = vpop.permute.xlu0 %1241 }
0x134a   :  { %v1244_v52 = vmul.f32 %v1242_v51, %v1239_v48 }
0x134c   :  { %v1248_v53 = vadd.f32 %v1247_v25, %v1244_v52 }
0x134e   :  { %v1258_v54 = vrot.slane %v1248_v53, 4  ;;  %v1359_v3 = vrot.slane %v1248_v53, 6 }
0x1350   :  { %1259 = vrot.lane.b32.xlu1 %v1258_v54, %s5544_s6 }
0x13c2   :  { %v1260_v55 = vpop.permute.xlu1 %1259 }
0x13c3   :  { %4750 = vmatmul.mubr.msk.f32.vlgmr.msra.gmra.mxu1 %vm470_vm5, %v1260_v55 }
0x13c4   :  { %4771 = vmatprep.mubr.msk.f32.mxu1 %vm5542_vm2, %v5541_v4  ;;  %4764 = vmatpush3.msra.mxu1 %v5918_v11 }
0x13c5   :  { %4765 = vmatprep.subr.mxu1 %v5541_v4 }
0x13c6   :  { %4766 = vmatpush3.msra.mxu1 %v5923_v12 }
0x13c7   :  { %4767 = vmatprep.subr.mxu1 %v5541_v4 }
0x1483   :  { %v1329_v56 = vpop.f32.mrf.mxu1 }
0x1484   :  { %v1330_v57 = vadd.f32 %v5765_v15, %v1329_v56 }
0x1485   :  { %v4751_v58 = vpop.f32.mrf.mxu1 }
0x1486   :  { %v1334_v59 = vrot.slane %v1330_v57, 2 }
0x1488   :  { %1343 = vrot.lane.b32.xlu0 %v1334_v59, %s5543_s26  ;;  %v1336_v60 = vadd.f32 %v1334_v59, %v5781_v23 }
0x148a   :  { %v4392_v62 = vmul.f32 -1.442695, %v1336_v60 }
0x148c   :  { %5163 = vpow2.f32 %v4392_v62 }
0x1499   :  { %v5164_v63 = vpop.eup %5163 }
0x149a   :  { %v1340_v0 = vadd.f32 1.0, %v5164_v63 }
0x149c   :  { %5165 = vrcp.f32 %v1340_v0 }
0x14a9   :  { %v5166_v1 = vpop.eup %5165 }
0x14aa   :  { %v1361_v14 = vmul.f32 %v5166_v1, %v1359_v3 }
0x14fa   :  { %v1344_v2 = vpop.permute.xlu0 %1343 }
0x14fb   :  { %v1346_v8 = vmul.f32 %v5166_v1, %v1344_v2 }
0x14fd   :  { %1348 = vrot.lane.b32.xlu1 %v1346_v8, %s5543_s26 }
0x156f   :  { %v1349_v9 = vpop.permute.xlu1 %1348 }
0x1570   :  { %v1351_v10 = vadd.f32 %v1349_v9, %v5781_v23  ;;  %v5930_v23 = vld [vmem:[%s6561_s9 + $0x8] sm:$0xff] }
0x1571   :  { %4768 = vmatpush3.msra.mxu1 %v5930_v23 }
0x1572   :  { %5167 = vtanh.f32 %v1351_v10  ;;  %4769 = vmatprep.subr.mxu1 %v5541_v4 }
0x157f   :  { %v5168_v15 = vpop.eup %5167 }
0x1580   :  { %1355 = vrot.lane.b32.xlu0 %v5168_v15, %s5544_s6 }
0x1584   :  { %683 = vrot.lane.b32.xlu0 %v5808_v61, %s5544_s6  ;;  %v5939_v61 = vld [vmem:[%s6561_s9] sm:$0xff] }
0x1585   :  { %4770 = vmatpush3.msra.mxu1 %v5939_v61 }
0x1586   :  { %4785 = vmatprep.subr.mxu1 %v5541_v4 }
0x1588   :  { %913 = vrot.lane.b32.xlu0 %v5852_v49, %s5544_s6  ;;  %v1353_v49 = vsub.f32 1.0, %v5166_v1 }
0x158c   :  { %1250 = vrot.lane.b32.xlu0 %v1248_v53, %s5544_s6 }
0x15f2   :  { %v1356_v13 = vpop.permute.xlu0 %1355 }
0x15f3   :  { %v1358_v16 = vmul.f32 %v1356_v13, %v1353_v49 }
0x15f5   :  { %v5946_v5 = vadd.f32 %v1361_v14, %v1358_v16 }
0x15f6   :  { %v684_v17 = vpop.permute.xlu0 %683 }
0x15f7   :  { %687 = vst.msk [vmem:[#allocation2] sm:$0xc] %vm686_vm6, %v684_v17  ;;  %v1466_v18 = vrot.slane %v5946_v5, 6 }
0x15f9   :  { %1467 = vrot.lane.b32.xlu1 %v1466_v18, %s5544_s6 }
0x15fa   :  { %v914_v7 = vpop.permute.xlu0 %913 }
0x15fb   :  { %917 = vst.msk [vmem:[#allocation2] sm:$0xc0] %vm916_vm7, %v914_v7 }
0x15fd   :  { %798 = vrot.lane.b32.xlu1 %v5830_v27, %s5544_s6 }
0x15fe   :  { %v1251_v22 = vpop.permute.xlu0 %1250 }
0x15ff   :  { %1253 = vst.msk [vmem:[#allocation2 + $0x8] sm:$0x30] %vm801_vm8, %v1251_v22 }
0x1601   :  { %1136 = vrot.lane.b32.xlu1 %v5891_v31, %s5544_s6  ;;  %v6000_v31 = vld [vmem:[#allocation11] ss:$0 sm:$0xff] }
0x1605   :  { %1364 = vrot.lane.b32.xlu1 %v5946_v5, %s5544_s6 }
0x166b   :  { %v1468_v24 = vpop.permute.xlu1 %1467 }
0x166c   :  { %4772 = vmatmul.mubr.msk.f32.vlgmr.msra.gmra.mxu1 %vm470_vm5, %v1468_v24 }
0x166d   :  { %4786 = vmatpush3.msra.mxu1 %v5918_v11  ;;  %4793 = vmatprep.mubr.msk.f32.mxu1 %vm5542_vm2, %v5541_v4 }
0x166e   :  { %4787 = vmatprep.subr.mxu1 %v5541_v4 }
0x166f   :  { %v799_v27 = vpop.permute.xlu1 %798  ;;  %4788 = vmatpush3.msra.mxu1 %v5923_v12 }
0x1670   :  { %802 = vst.msk [vmem:[#allocation2] sm:$0x30] %vm801_vm8, %v799_v27  ;;  %4789 = vmatprep.subr.mxu1 %v5541_v4 }
0x1671   :  { %4790 = vmatpush3.msra.mxu1 %v5930_v23 }
0x1672   :  { %4791 = vmatprep.subr.mxu1 %v5541_v4 }
0x1673   :  { %v1137_v26 = vpop.permute.xlu1 %1136  ;;  %4792 = vmatpush3.msra.mxu1 %v5939_v61 }
0x1674   :  { %1139 = vst.msk [vmem:[#allocation2 + $0x8] sm:$0xc] %vm686_vm6, %v1137_v26  ;;  %4807 = vmatprep.subr.mxu1 %v5541_v4 }
0x1677   :  { %v1365_v28 = vpop.permute.xlu1 %1364  ;;  %v1368_v29 = vld [vmem:[#allocation2] sm:$0xff] }
0x1678   :  { %1367 = vst.msk [vmem:[#allocation2 + $0x8] sm:$0xc0] %vm916_vm7, %v1365_v28  ;;  %4760 = vmatprep.mubr.msk.f32.mxu0 %vm470_vm5, %v1368_v29 }
0x167f   :  { %v1369_v30 = vld [vmem:[#allocation2 + $0x8] sm:$0xff] }
0x1680   :  { %4761 = vmatmul.mubr.msk.f32.vlgmr.msra.gmra.mxu0 %vm470_vm5, %v1369_v30 }
0x1681   :  { %4775 = vmatpush3.msra.mxu0 %v5918_v11  ;;  %4782 = vmatprep.mubr.msk.f32.mxu0 %vm5542_vm2, %v5541_v4 }
0x1682   :  { %4776 = vmatprep.subr.mxu0 %v5541_v4 }
0x1683   :  { %4777 = vmatpush3.msra.mxu0 %v5923_v12 }
0x1684   :  { %4778 = vmatprep.subr.mxu0 %v5541_v4 }
0x1685   :  { %4779 = vmatpush3.msra.mxu0 %v5930_v23 }
0x1686   :  { %4780 = vmatprep.subr.mxu0 %v5541_v4 }
0x1687   :  { %4781 = vmatpush3.msra.mxu0 %v5939_v61 }
0x1688   :  { %4796 = vmatprep.subr.mxu0 %v5541_v4 }
0x172c   :  { %v1537_v32 = vpop.f32.mrf.mxu1 }
0x172d   :  { %v1538_v33 = vadd.f32 %v6000_v31, %v1537_v32 }
0x172e   :  { %v4773_v34 = vpop.f32.mrf.mxu1 }
0x172f   :  { %1549 = vrot.lane.b32.xlu0 %v1538_v33, %s5543_s26 }
0x1740   :  { %v4762_v36 = vpop.f32.mrf.mxu0 }
0x1741   :  { %v6004_v37 = vadd.f32 %v4762_v36, %v4393_v35 }
0x1742   :  { %v1453_v38 = vpop.f32.mrf.mxu0 }
0x1743   :  { %v6006_v39 = vadd.f32 %v4393_v35, %v1453_v38 }
0x1745   :  { %v1541_v40 = vadd.f32 %v1538_v33, %v6006_v39 }
0x1747   :  { %v4397_v41 = vmul.f32 -1.442695, %v1541_v40 }
0x1749   :  { %5169 = vpow2.f32 %v4397_v41 }
0x1756   :  { %v5170_v42 = vpop.eup %5169 }
0x1757   :  { %v1545_v43 = vadd.f32 1.0, %v5170_v42 }
0x1759   :  { %5171 = vrcp.f32 %v1545_v43 }
0x1766   :  { %v5172_v44 = vpop.eup %5171 }
0x1767   :  { %v1559_v51 = vsub.f32 1.0, %v5172_v44  ;;  %v1566_v52 = vmul.f32 %v5172_v44, %v1466_v18 }
0x17a1   :  { %v1550_v45 = vpop.permute.xlu0 %1549 }
0x17a2   :  { %v1552_v46 = vmul.f32 %v5172_v44, %v1550_v45 }
0x17a4   :  { %1554 = vrot.lane.b32.xlu1 %v1552_v46, %s5543_s26 }
0x1816   :  { %v1555_v47 = vpop.permute.xlu1 %1554 }
0x1817   :  { %v1557_v48 = vadd.f32 %v1555_v47, %v6006_v39 }
0x1819   :  { %5173 = vtanh.f32 %v1557_v48 }
0x1826   :  { %v5174_v50 = vpop.eup %5173 }
0x1827   :  { %1561 = vrot.lane.b32.xlu0 %v5174_v50, %s5544_s6 }
0x1899   :  { %v1562_v25 = vpop.permute.xlu0 %1561 }
0x189a   :  { %v1564_v53 = vmul.f32 %v1562_v25, %v1559_v51 }
0x189c   :  { %v1567_v54 = vadd.f32 %v1566_v52, %v1564_v53 }
0x189e   :  { %1569 = vrot.lane.b32.xlu1 %v1567_v54, %s5544_s6  ;;  %v1669_v49 = vrot.slane %v1567_v54, 6 }
0x1910   :  { %v1570_v55 = vpop.permute.xlu1 %1569 }
0x1911   :  { %4783 = vmatmul.mubr.msk.f32.vlgmr.msra.gmra.mxu0 %vm470_vm5, %v1570_v55 }
0x1912   :  { %4797 = vmatpush3.msra.mxu0 %v5918_v11  ;;  %4804 = vmatprep.mubr.msk.f32.mxu0 %vm5542_vm2, %v5541_v4 }
0x1913   :  { %4798 = vmatprep.subr.mxu0 %v5541_v4 }
0x1914   :  { %4799 = vmatpush3.msra.mxu0 %v5923_v12 }
0x1915   :  { %4800 = vmatprep.subr.mxu0 %v5541_v4 }
0x1916   :  { %4801 = vmatpush3.msra.mxu0 %v5930_v23 }
0x1917   :  { %4802 = vmatprep.subr.mxu0 %v5541_v4 }
0x1918   :  { %4803 = vmatpush3.msra.mxu0 %v5939_v61 }
0x1919   :  { %4818 = vmatprep.subr.mxu0 %v5541_v4 }
0x19d1   :  { %v1639_v56 = vpop.f32.mrf.mxu0 }
0x19d2   :  { %v1640_v57 = vadd.f32 %v6000_v31, %v1639_v56 }
0x19d3   :  { %v4784_v58 = vpop.f32.mrf.mxu0 }
0x19d4   :  { %v1644_v59 = vrot.slane %v1640_v57, 6 }
0x19d6   :  { %1653 = vrot.lane.b32.xlu0 %v1644_v59, %s5543_s26  ;;  %v1646_v60 = vadd.f32 %v1644_v59, %v6006_v39 }
0x19d8   :  { %v4399_v62 = vmul.f32 -1.442695, %v1646_v60 }
0x19da   :  { %5175 = vpow2.f32 %v4399_v62 }
0x19e7   :  { %v5176_v63 = vpop.eup %5175 }
0x19e8   :  { %v1650_v0 = vadd.f32 1.0, %v5176_v63 }
0x19ea   :  { %5177 = vrcp.f32 %v1650_v0 }
0x19f7   :  { %v5178_v1 = vpop.eup %5177 }
0x19f8   :  { %v1663_v3 = vsub.f32 1.0, %v5178_v1  ;;  %v1671_v16 = vmul.f32 %v5178_v1, %v1669_v49 }
0x1a48   :  { %v1654_v2 = vpop.permute.xlu0 %1653 }
0x1a49   :  { %v1656_v8 = vmul.f32 %v5178_v1, %v1654_v2 }
0x1a4b   :  { %1658 = vrot.lane.b32.xlu1 %v1656_v8, %s5543_s26 }
0x1abd   :  { %v1659_v9 = vpop.permute.xlu1 %1658 }
0x1abe   :  { %v1661_v10 = vadd.f32 %v1659_v9, %v6006_v39 }
0x1ac0   :  { %5179 = vtanh.f32 %v1661_v10 }
0x1acd   :  { %v5180_v15 = vpop.eup %5179 }
0x1ace   :  { %1665 = vrot.lane.b32.xlu0 %v5180_v15, %s5544_s6 }
0x1b40   :  { %v1666_v13 = vpop.permute.xlu0 %1665 }
0x1b41   :  { %v1668_v14 = vmul.f32 %v1666_v13, %v1663_v3 }
0x1b43   :  { %v1672_v5 = vadd.f32 %v1671_v16, %v1668_v14 }
0x1b45   :  { %v1674_v17 = vrot.slane %v1672_v5, 2  ;;  %v1775_v34 = vrot.slane %v1672_v5, 6 }
0x1b47   :  { %1675 = vrot.lane.b32.xlu1 %v1674_v17, %s5544_s6 }
0x1bb9   :  { %v1676_v18 = vpop.permute.xlu1 %1675 }
0x1bba   :  { %4794 = vmatmul.mubr.msk.f32.vlgmr.msra.gmra.mxu1 %vm470_vm5, %v1676_v18 }
0x1bbb   :  { %4808 = vmatpush3.msra.mxu1 %v5918_v11  ;;  %4815 = vmatprep.mubr.msk.f32.mxu1 %vm5542_vm2, %v5541_v4 }
0x1bbc   :  { %4809 = vmatprep.subr.mxu1 %v5541_v4 }
0x1bbd   :  { %4810 = vmatpush3.msra.mxu1 %v5923_v12 }
0x1bbe   :  { %4811 = vmatprep.subr.mxu1 %v5541_v4 }
0x1bbf   :  { %4812 = vmatpush3.msra.mxu1 %v5930_v23 }
0x1bc0   :  { %4813 = vmatprep.subr.mxu1 %v5541_v4 }
0x1bc1   :  { %4814 = vmatpush3.msra.mxu1 %v5939_v61 }
0x1bc2   :  { %4829 = vmatprep.subr.mxu1 %v5541_v4 }
0x1c7a   :  { %v1745_v6 = vpop.f32.mrf.mxu1 }
0x1c7b   :  { %v1746_v19 = vadd.f32 %v6000_v31, %v1745_v6 }
0x1c7c   :  { %v4795_v20 = vpop.f32.mrf.mxu1 }
0x1c7d   :  { %v1750_v7 = vrot.slane %v1746_v19, 4 }
0x1c7f   :  { %1759 = vrot.lane.b32.xlu0 %v1750_v7, %s5543_s26  ;;  %v1752_v21 = vadd.f32 %v1750_v7, %v6006_v39 }
0x1c81   :  { %v4401_v22 = vmul.f32 -1.442695, %v1752_v21 }
0x1c83   :  { %5181 = vpow2.f32 %v4401_v22 }
0x1c90   :  { %v5182_v24 = vpop.eup %5181 }
0x1c91   :  { %v1756_v27 = vadd.f32 1.0, %v5182_v24 }
0x1c93   :  { %5183 = vrcp.f32 %v1756_v27 }
0x1ca0   :  { %v5184_v26 = vpop.eup %5183 }
0x1ca1   :  { %v1769_v35 = vsub.f32 1.0, %v5184_v26  ;;  %v1777_v38 = vmul.f32 %v5184_v26, %v1775_v34 }
0x1cf1   :  { %v1760_v28 = vpop.permute.xlu0 %1759 }
0x1cf2   :  { %v1762_v29 = vmul.f32 %v5184_v26, %v1760_v28 }
0x1cf4   :  { %1764 = vrot.lane.b32.xlu1 %v1762_v29, %s5543_s26 }
0x1d66   :  { %v1765_v30 = vpop.permute.xlu1 %1764 }
0x1d67   :  { %v1767_v32 = vadd.f32 %v1765_v30, %v6006_v39 }
0x1d69   :  { %5185 = vtanh.f32 %v1767_v32 }
0x1d76   :  { %v5186_v33 = vpop.eup %5185 }
0x1d77   :  { %1771 = vrot.lane.b32.xlu0 %v5186_v33, %s5544_s6 }
0x1de9   :  { %v1772_v36 = vpop.permute.xlu0 %1771 }
0x1dea   :  { %v1774_v40 = vmul.f32 %v1772_v36, %v1769_v35 }
0x1dec   :  { %v1778_v41 = vadd.f32 %v1777_v38, %v1774_v40 }
0x1dee   :  { %v1780_v42 = vrot.slane %v1778_v41, 4  ;;  %v1881_v58 = vrot.slane %v1778_v41, 6 }
0x1df0   :  { %1781 = vrot.lane.b32.xlu1 %v1780_v42, %s5544_s6 }
0x1e62   :  { %v1782_v43 = vpop.permute.xlu1 %1781 }
0x1e63   :  { %4805 = vmatmul.mubr.msk.f32.vlgmr.msra.gmra.mxu0 %vm470_vm5, %v1782_v43 }
0x1e64   :  { %4819 = vmatpush3.msra.mxu0 %v5918_v11  ;;  %4826 = vmatprep.mubr.msk.f32.mxu0 %vm5542_vm2, %v5541_v4 }
0x1e65   :  { %4820 = vmatprep.subr.mxu0 %v5541_v4 }
0x1e66   :  { %4821 = vmatpush3.msra.mxu0 %v5923_v12 }
0x1e67   :  { %4822 = vmatprep.subr.mxu0 %v5541_v4 }
0x1e68   :  { %4823 = vmatpush3.msra.mxu0 %v5930_v23 }
0x1e69   :  { %4824 = vmatprep.subr.mxu0 %v5541_v4 }
0x1e6a   :  { %4825 = vmatpush3.msra.mxu0 %v5939_v61 }
0x1e6b   :  { %4840 = vmatprep.subr.mxu0 %v5541_v4 }
0x1f23   :  { %v1851_v44 = vpop.f32.mrf.mxu0 }
0x1f24   :  { %v1852_v45 = vadd.f32 %v6000_v31, %v1851_v44 }
0x1f25   :  { %v4806_v46 = vpop.f32.mrf.mxu0 }
0x1f26   :  { %v1856_v47 = vrot.slane %v1852_v45, 2 }
0x1f28   :  { %1865 = vrot.lane.b32.xlu0 %v1856_v47, %s5543_s26  ;;  %v1858_v48 = vadd.f32 %v1856_v47, %v6006_v39 }
0x1f2a   :  { %v4403_v50 = vmul.f32 -1.442695, %v1858_v48 }
0x1f2c   :  { %5187 = vpow2.f32 %v4403_v50 }
0x1f39   :  { %v5188_v51 = vpop.eup %5187 }
0x1f3a   :  { %v1862_v25 = vadd.f32 1.0, %v5188_v51 }
0x1f3c   :  { %5189 = vrcp.f32 %v1862_v25 }
0x1f49   :  { %v5190_v52 = vpop.eup %5189 }
0x1f4a   :  { %v1875_v59 = vsub.f32 1.0, %v5190_v52  ;;  %v1883_v62 = vmul.f32 %v5190_v52, %v1881_v58 }
0x1f9a   :  { %v1866_v53 = vpop.permute.xlu0 %1865 }
0x1f9b   :  { %v1868_v54 = vmul.f32 %v5190_v52, %v1866_v53 }
0x1f9d   :  { %1870 = vrot.lane.b32.xlu1 %v1868_v54, %s5543_s26 }
0x200f   :  { %v1871_v55 = vpop.permute.xlu1 %1870 }
0x2010   :  { %v1873_v56 = vadd.f32 %v1871_v55, %v6006_v39 }
0x2012   :  { %5191 = vtanh.f32 %v1873_v56 }
0x201f   :  { %v5192_v57 = vpop.eup %5191 }
0x2020   :  { %1877 = vrot.lane.b32.xlu0 %v5192_v57, %s5544_s6 }
0x2092   :  { %v1878_v60 = vpop.permute.xlu0 %1877 }
0x2093   :  { %v1880_v63 = vmul.f32 %v1878_v60, %v1875_v59  ;;  %v6116_v59 = vld [vmem:[%s6573_s21 + $0x18] sm:$0xff]  ;;  %v6121_v60 = vld [vmem:[%s6573_s21 + $0x10] sm:$0xff] }
0x2095   :  { %v1884_v0 = vadd.f32 %v1883_v62, %v1880_v63  ;;  %v6128_v62 = vld [vmem:[%s6573_s21 + $0x8] sm:$0xff]  ;;  %v6135_v63 = vld [vmem:[%s6573_s21] sm:$0xff] }
0x2097   :  { %v1886_v1 = vrot.slane %v1884_v0, 6 }
0x2099   :  { %1887 = vrot.lane.b32.xlu1 %v1886_v1, %s5544_s6 }
0x210b   :  { %v1888_v2 = vpop.permute.xlu1 %1887 }
0x210c   :  { %4816 = vmatmul.mubr.msk.f32.vlgmr.msra.gmra.mxu1 %vm470_vm5, %v1888_v2 }
0x210d   :  { %4830 = vmatpush3.msra.mxu1 %v5918_v11  ;;  %4837 = vmatprep.mubr.msk.f32.mxu1 %vm5542_vm2, %v5541_v4 }
0x210e   :  { %4831 = vmatprep.subr.mxu1 %v5541_v4 }
0x210f   :  { %4832 = vmatpush3.msra.mxu1 %v5923_v12 }
0x2110   :  { %4833 = vmatprep.subr.mxu1 %v5541_v4 }
0x2111   :  { %4834 = vmatpush3.msra.mxu1 %v5930_v23 }
0x2112   :  { %4835 = vmatprep.subr.mxu1 %v5541_v4 }
0x2113   :  { %4836 = vmatpush3.msra.mxu1 %v5939_v61 }
0x2114   :  { %4851 = vmatprep.subr.mxu1 %v5541_v4 }
0x21cc   :  { %v1957_v39 = vpop.f32.mrf.mxu1 }
0x21cd   :  { %v1958_v8 = vadd.f32 %v6000_v31, %v1957_v39 }
0x21ce   :  { %v4817_v9 = vpop.f32.mrf.mxu1 }
0x21cf   :  { %1969 = vrot.lane.b32.xlu0 %v1958_v8, %s5543_s26  ;;  %v1961_v10 = vadd.f32 %v1958_v8, %v6004_v37 }
0x21d1   :  { %v4405_v15 = vmul.f32 -1.442695, %v1961_v10 }
0x21d3   :  { %5193 = vpow2.f32 %v4405_v15 }
0x21e0   :  { %v5194_v49 = vpop.eup %5193 }
0x21e1   :  { %v1965_v3 = vadd.f32 1.0, %v5194_v49 }
0x21e3   :  { %5195 = vrcp.f32 %v1965_v3  ;;  %v6149_v3 = vld [vmem:[#allocation13 + $0x8] sm:$0xff] }
0x21f0   :  { %v5196_v13 = vpop.eup %5195 }
0x21f1   :  { %v1979_v6 = vsub.f32 1.0, %v5196_v13  ;;  %v1986_v20 = vmul.f32 %v5196_v13, %v1886_v1 }
0x2241   :  { %v1970_v14 = vpop.permute.xlu0 %1969 }
0x2242   :  { %v1972_v16 = vmul.f32 %v5196_v13, %v1970_v14  ;;  %v6153_v13 = vld [vmem:[#allocation13] sm:$0xff]  ;;  %v6160_v14 = vld [vmem:[%s6574_s22] ss:$0 sm:$0xff] }
0x2244   :  { %1974 = vrot.lane.b32.xlu1 %v1972_v16, %s5543_s26 }
0x22b6   :  { %v1975_v5 = vpop.permute.xlu1 %1974 }
0x22b7   :  { %v1977_v17 = vadd.f32 %v1975_v5, %v6004_v37 }
0x22b9   :  { %5197 = vtanh.f32 %v1977_v17 }
0x22c6   :  { %v5198_v18 = vpop.eup %5197 }
0x22c7   :  { %1981 = vrot.lane.b32.xlu0 %v5198_v18, %s5544_s6 }
0x2339   :  { %v1982_v19 = vpop.permute.xlu0 %1981 }
0x233a   :  { %v1984_v7 = vmul.f32 %v1982_v19, %v1979_v6 }
0x233c   :  { %v1987_v21 = vadd.f32 %v1986_v20, %v1984_v7 }
0x233e   :  { %1989 = vrot.lane.b32.xlu1 %v1987_v21, %s5544_s6  ;;  %v2089_v36 = vrot.slane %v1987_v21, 6 }
0x23b0   :  { %v1990_v22 = vpop.permute.xlu1 %1989 }
0x23b1   :  { %4827 = vmatmul.mubr.msk.f32.vlgmr.msra.gmra.mxu0 %vm470_vm5, %v1990_v22 }
0x23b2   :  { %4841 = vmatpush3.msra.mxu0 %v5918_v11  ;;  %4848 = vmatprep.mubr.msk.f32.mxu0 %vm5542_vm2, %v5541_v4 }
0x23b3   :  { %4842 = vmatprep.subr.mxu0 %v5541_v4 }
0x23b4   :  { %4843 = vmatpush3.msra.mxu0 %v5923_v12 }
0x23b5   :  { %4844 = vmatprep.subr.mxu0 %v5541_v4 }
0x23b6   :  { %4845 = vmatpush3.msra.mxu0 %v5930_v23 }
0x23b7   :  { %4846 = vmatprep.subr.mxu0 %v5541_v4 }
0x23b8   :  { %4847 = vmatpush3.msra.mxu0 %v5939_v61 }
0x23b9   :  { %4862 = vmatprep.subr.mxu0 %v5541_v4 }
0x2471   :  { %v2059_v24 = vpop.f32.mrf.mxu0 }
0x2472   :  { %v2060_v11 = vadd.f32 %v6000_v31, %v2059_v24 }
0x2473   :  { %v4828_v27 = vpop.f32.mrf.mxu0 }
0x2474   :  { %v2064_v26 = vrot.slane %v2060_v11, 6 }
0x2476   :  { %2073 = vrot.lane.b32.xlu0 %v2064_v26, %s5543_s26  ;;  %v2066_v28 = vadd.f32 %v2064_v26, %v6004_v37 }
0x2478   :  { %v4407_v12 = vmul.f32 -1.442695, %v2066_v28 }
0x247a   :  { %5199 = vpow2.f32 %v4407_v12 }
0x2487   :  { %v5200_v29 = vpop.eup %5199 }
0x2488   :  { %v2070_v30 = vadd.f32 1.0, %v5200_v29 }
0x248a   :  { %5201 = vrcp.f32 %v2070_v30 }
0x2497   :  { %v5202_v23 = vpop.eup %5201 }
0x2498   :  { %v2083_v38 = vsub.f32 1.0, %v5202_v23  ;;  %v2091_v42 = vmul.f32 %v5202_v23, %v2089_v36 }
0x24e8   :  { %v2074_v32 = vpop.permute.xlu0 %2073 }
0x24e9   :  { %v2076_v33 = vmul.f32 %v5202_v23, %v2074_v32  ;;  %v6171_v23 = vld [vmem:[#allocation16 + $0x18] sm:$0xff]  ;;  %v6173_v32 = vld [vmem:[#allocation16 + $0x10] sm:$0xff] }
0x24eb   :  { %2078 = vrot.lane.b32.xlu1 %v2076_v33, %s5543_s26  ;;  %v6177_v33 = vld [vmem:[#allocation16 + $0x8] sm:$0xff] }
0x255d   :  { %v2079_v61 = vpop.permute.xlu1 %2078 }
0x255e   :  { %v2081_v34 = vadd.f32 %v2079_v61, %v6004_v37  ;;  %v6181_v61 = vld [vmem:[#allocation16] sm:$0xff] }
0x2560   :  { %5203 = vtanh.f32 %v2081_v34 }
0x256d   :  { %v5204_v35 = vpop.eup %5203 }
0x256e   :  { %2085 = vrot.lane.b32.xlu0 %v5204_v35, %s5544_s6 }
0x25e0   :  { %v2086_v40 = vpop.permute.xlu0 %2085 }
0x25e1   :  { %v2088_v41 = vmul.f32 %v2086_v40, %v2083_v38 }
0x25e3   :  { %v2092_v43 = vadd.f32 %v2091_v42, %v2088_v41 }
0x25e5   :  { %v2094_v44 = vrot.slane %v2092_v43, 2  ;;  %v2195_v1 = vrot.slane %v2092_v43, 6 }
0x25e7   :  { %2095 = vrot.lane.b32.xlu1 %v2094_v44, %s5544_s6  ;;  %v6192_v44 = vld [vmem:[#allocation17] ss:$0 sm:$0xff] }
0x2659   :  { %v2096_v45 = vpop.permute.xlu1 %2095 }
0x265a   :  { %4838 = vmatmul.mubr.msk.f32.vlgmr.msra.gmra.mxu1 %vm470_vm5, %v2096_v45 }
0x265b   :  { %4859 = vmatprep.mubr.msk.f32.mxu1 %vm5542_vm2, %v5541_v4  ;;  %4852 = vmatpush3.msra.mxu1 %v6116_v59 }
0x265c   :  { %4853 = vmatprep.subr.mxu1 %v5541_v4 }
0x265d   :  { %4854 = vmatpush3.msra.mxu1 %v6121_v60 }
0x265e   :  { %4855 = vmatprep.subr.mxu1 %v5541_v4 }
0x265f   :  { %4856 = vmatpush3.msra.mxu1 %v6128_v62 }
0x2660   :  { %4857 = vmatprep.subr.mxu1 %v5541_v4 }
0x2661   :  { %4858 = vmatpush3.msra.mxu1 %v6135_v63 }
0x2662   :  { %4869 = vmatprep.subr.mxu1 %v5541_v4 }
0x271a   :  { %v2165_v46 = vpop.f32.mrf.mxu1 }
0x271b   :  { %v2166_v47 = vadd.f32 %v6000_v31, %v2165_v46 }
0x271c   :  { %v4839_v48 = vpop.f32.mrf.mxu1 }
0x271d   :  { %v2170_v50 = vrot.slane %v2166_v47, 4  ;;  %v6196_v48 = vld [vmem:[#allocation14] ss:$0 sm:$0xff] }
0x271f   :  { %2179 = vrot.lane.b32.xlu0 %v2170_v50, %s5543_s26  ;;  %v2172_v51 = vadd.f32 %v2170_v50, %v6004_v37 }
0x2721   :  { %v4409_v25 = vmul.f32 -1.442695, %v2172_v51 }
0x2723   :  { %5205 = vpow2.f32 %v4409_v25 }
0x2730   :  { %v5206_v52 = vpop.eup %5205 }
0x2731   :  { %v2176_v53 = vadd.f32 1.0, %v5206_v52 }
0x2733   :  { %5207 = vrcp.f32 %v2176_v53 }
0x2740   :  { %v5208_v54 = vpop.eup %5207 }
0x2741   :  { %v2189_v2 = vsub.f32 1.0, %v5208_v54  ;;  %v2197_v8 = vmul.f32 %v5208_v54, %v2195_v1  ;;  %v6205_v1 = vld [vmem:[%s6569_s17 + $0x18] sm:$0xff] }
0x2791   :  { %v2180_v55 = vpop.permute.xlu0 %2179 }
0x2792   :  { %v2182_v56 = vmul.f32 %v5208_v54, %v2180_v55 }
0x2794   :  { %2184 = vrot.lane.b32.xlu1 %v2182_v56, %s5543_s26 }
0x2806   :  { %v2185_v57 = vpop.permute.xlu1 %2184 }
0x2807   :  { %v2187_v58 = vadd.f32 %v2185_v57, %v6004_v37 }
0x2809   :  { %5209 = vtanh.f32 %v2187_v58 }
0x2816   :  { %v5210_v0 = vpop.eup %5209 }
0x2817   :  { %2191 = vrot.lane.b32.xlu0 %v5210_v0, %s5544_s6  ;;  %v6200_v0 = vld [vmem:[#allocation19 + $0x18] sm:$0xff] }
0x2889   :  { %v2192_v39 = vpop.permute.xlu0 %2191 }
0x288a   :  { %v2194_v9 = vmul.f32 %v2192_v39, %v2189_v2  ;;  %v6207_v2 = vld [vmem:[#allocation19 + $0x10] sm:$0xff] }
0x288b   :  { %v6214_v39 = vld [vmem:[%s6569_s17 + $0x10] sm:$0xff] }
0x288c   :  { %v2198_v10 = vadd.f32 %v2197_v8, %v2194_v9  ;;  %v6218_v8 = vld [vmem:[#allocation19 + $0x8] sm:$0xff] }
0x288d   :  { %v6223_v9 = vld [vmem:[%s6569_s17 + $0x8] sm:$0xff] }
0x288e   :  { %v2200_v15 = vrot.slane %v2198_v10, 4  ;;  %v2301_v34 = vrot.slane %v2198_v10, 6  ;;  %v6229_v10 = vld [vmem:[#allocation19] sm:$0xff] }
0x2890   :  { %2201 = vrot.lane.b32.xlu1 %v2200_v15, %s5544_s6  ;;  %v6234_v15 = vld [vmem:[%s6569_s17] sm:$0xff] }
0x2902   :  { %v2202_v49 = vpop.permute.xlu1 %2201 }
0x2903   :  { %4849 = vmatmul.mubr.msk.f32.vlgmr.msra.gmra.mxu0 %vm470_vm5, %v2202_v49  ;;  %4860 = vmatmul.mubr.msk.f32.vlgmr.msra.gmra.mxu1 %vm470_vm5, %v2202_v49 }
0x2904   :  { %4866 = vmatprep.mubr.msk.f32.mxu0 %vm5542_vm2, %v5541_v4  ;;  %4877 = vmatprep.mubr.msk.f32.mxu1 %vm5542_vm2, %v5541_v4 }
0x2905   :  { %4863 = vmatpush3.msra.mxu0 %v6149_v3  ;;  %4870 = vmatpush3.msra.mxu1 %v6171_v23 }
0x2906   :  { %4864 = vmatprep.subr.mxu0 %v5541_v4  ;;  %4871 = vmatprep.subr.mxu1 %v5541_v4 }
0x2907   :  { %4865 = vmatpush3.msra.mxu0 %v6153_v13  ;;  %4872 = vmatpush3.msra.mxu1 %v6173_v32 }
0x2908   :  { %4880 = vmatprep.subr.mxu0 %v5541_v4  ;;  %4873 = vmatprep.subr.mxu1 %v5541_v4 }
0x2909   :  { %4874 = vmatpush3.msra.mxu1 %v6177_v33 }
0x290a   :  { %4875 = vmatprep.subr.mxu1 %v5541_v4 }
0x290b   :  { %4876 = vmatpush3.msra.mxu1 %v6181_v61 }
0x290c   :  { %4891 = vmatprep.subr.mxu1 %v5541_v4 }
0x29c3   :  { %v2271_v16 = vpop.f32.mrf.mxu0  ;;  %v2375_v5 = vpop.f32.mrf.mxu1 }
0x29c4   :  { %v2272_v17 = vadd.f32 %v6000_v31, %v2271_v16  ;;  %v2376_v18 = vadd.f32 %v6160_v14, %v2375_v5 }
0x29c5   :  { %v4850_v6 = vpop.f32.mrf.mxu0  ;;  %v4861_v19 = vpop.f32.mrf.mxu1 }
0x29c6   :  { %v2276_v20 = vrot.slane %v2272_v17, 2  ;;  %5211 = vtanh.f32 %v2376_v18 }
0x29c8   :  { %2285 = vrot.lane.b32.xlu0 %v2276_v20, %s5543_s26  ;;  %v2278_v21 = vadd.f32 %v2276_v20, %v6004_v37  ;;  %v6263_v20 = vld [vmem:[%s6570_s18] ss:$0 sm:$0xff] }
0x29ca   :  { %v4411_v22 = vmul.f32 -1.442695, %v2278_v21 }
0x29cc   :  { %5213 = vpow2.f32 %v4411_v22 }
0x29d3   :  { %v5212_v7 = vpop.eup %5211 }
0x29d4   :  { %4867 = vmatmul.mubr.msk.f32.vlgmr.msra.gmra.mxu0 %vm384_vm3, %v5212_v7 }
0x29d5   :  { %4888 = vmatprep.mubr.msk.f32.mxu0 %vm5542_vm2, %v5541_v4  ;;  %4881 = vmatpush3.msra.mxu0 %v6200_v0 }
0x29d6   :  { %4882 = vmatprep.subr.mxu0 %v5541_v4 }
0x29d7   :  { %4883 = vmatpush3.msra.mxu0 %v6207_v2 }
0x29d8   :  { %4884 = vmatprep.subr.mxu0 %v5541_v4 }
0x29d9   :  { %v5214_v24 = vpop.eup %5213  ;;  %4885 = vmatpush3.msra.mxu0 %v6218_v8 }
0x29da   :  { %v2282_v31 = vadd.f32 1.0, %v5214_v24  ;;  %4886 = vmatprep.subr.mxu0 %v5541_v4 }
0x29db   :  { %4887 = vmatpush3.msra.mxu0 %v6229_v10 }
0x29dc   :  { %5215 = vrcp.f32 %v2282_v31  ;;  %4902 = vmatprep.subr.mxu0 %v5541_v4 }
0x29e9   :  { %v5216_v11 = vpop.eup %5215 }
0x29ea   :  { %v2295_v35 = vsub.f32 1.0, %v5216_v11  ;;  %v2303_v38 = vmul.f32 %v5216_v11, %v2301_v34 }
0x2a3a   :  { %v2286_v27 = vpop.permute.xlu0 %2285 }
0x2a3b   :  { %v2288_v26 = vmul.f32 %v5216_v11, %v2286_v27  ;;  %v6267_v11 = vld [vmem:[#allocation20] ss:$0 sm:$0xff] }
0x2a3d   :  { %2290 = vrot.lane.b32.xlu1 %v2288_v26, %s5543_s26 }
0x2a94   :  { %v2451_v28 = vpop.f32.mrf.mxu0 }
0x2a95   :  { %v2452_v50 = vadd.f32 %v6196_v48, %v2451_v28 }
0x2a96   :  { %v4868_v12 = vpop.f32.mrf.mxu0 }
0x2aaf   :  { %v2291_v29 = vpop.permute.xlu1 %2290 }
0x2ab0   :  { %v2293_v30 = vadd.f32 %v2291_v29, %v6004_v37 }
0x2ab2   :  { %5217 = vtanh.f32 %v2293_v30 }
0x2abf   :  { %v5218_v37 = vpop.eup %5217 }
0x2ac0   :  { %2297 = vrot.lane.b32.xlu0 %v5218_v37, %s5544_s6 }
0x2b32   :  { %v2298_v36 = vpop.permute.xlu0 %2297 }
0x2b33   :  { %v2300_v40 = vmul.f32 %v2298_v36, %v2295_v35 }
0x2b35   :  { %v2304_v41 = vadd.f32 %v2303_v38, %v2300_v40  ;;  %v6274_v38 = vld [vmem:[%s6571_s19 + $0x18] sm:$0xff]  ;;  %v6279_v40 = vld [vmem:[%s6571_s19 + $0x10] sm:$0xff] }
0x2b37   :  { %v2460_v42 = vrot.slane %v2304_v41, 6  ;;  %v6286_v41 = vld [vmem:[%s6571_s19 + $0x8] sm:$0xff] }
0x2b39   :  { %2461 = vrot.lane.b32.xlu1 %v2460_v42, %s5544_s6 }
0x2bab   :  { %v2462_v43 = vpop.permute.xlu1 %2461 }
0x2bac   :  { %4878 = vmatmul.mubr.msk.f32.vlgmr.msra.gmra.mxu1 %vm470_vm5, %v2462_v43 }
0x2bad   :  { %4899 = vmatprep.mubr.msk.f32.mxu1 %vm5542_vm2, %v5541_v4  ;;  %4892 = vmatpush3.msra.mxu1 %v6205_v1 }
0x2bae   :  { %4893 = vmatprep.subr.mxu1 %v5541_v4 }
0x2baf   :  { %4894 = vmatpush3.msra.mxu1 %v6214_v39 }
0x2bb0   :  { %4895 = vmatprep.subr.mxu1 %v5541_v4 }
0x2bb1   :  { %4896 = vmatpush3.msra.mxu1 %v6223_v9 }
0x2bb2   :  { %4897 = vmatprep.subr.mxu1 %v5541_v4 }
0x2bb3   :  { %4898 = vmatpush3.msra.mxu1 %v6234_v15 }
0x2bb4   :  { %4913 = vmatprep.subr.mxu1 %v5541_v4 }
0x2c6c   :  { %v2531_v45 = vpop.f32.mrf.mxu1 }
0x2c6d   :  { %v2532_v46 = vadd.f32 %v6192_v44, %v2531_v45 }
0x2c6e   :  { %v4879_v47 = vpop.f32.mrf.mxu1 }
0x2c6f   :  { %2543 = vrot.lane.b32.xlu0 %v2532_v46, %s5543_s26  ;;  %v2535_v51 = vadd.f32 %v2532_v46, %v2452_v50 }
0x2c71   :  { %v4415_v25 = vmul.f32 -1.442695, %v2535_v51 }
0x2c73   :  { %5219 = vpow2.f32 %v4415_v25 }
0x2c80   :  { %v5220_v52 = vpop.eup %5219 }
0x2c81   :  { %v2539_v53 = vadd.f32 1.0, %v5220_v52  ;;  %v6325_v52 = vld [vmem:[%s6572_s20] ss:$0 sm:$0xff] }
0x2c83   :  { %5221 = vrcp.f32 %v2539_v53 }
0x2c90   :  { %v5222_v54 = vpop.eup %5221 }
0x2c91   :  { %v2553_v16 = vsub.f32 1.0, %v5222_v54  ;;  %v2560_v17 = vmul.f32 %v5222_v54, %v2460_v42  ;;  %v6293_v42 = vld [vmem:[%s6571_s19] sm:$0xff] }
0x2ce1   :  { %v2544_v55 = vpop.permute.xlu0 %2543 }
0x2ce2   :  { %v2546_v56 = vmul.f32 %v5222_v54, %v2544_v55 }
0x2ce4   :  { %2548 = vrot.lane.b32.xlu1 %v2546_v56, %s5543_s26 }
0x2d56   :  { %v2549_v57 = vpop.permute.xlu1 %2548 }
0x2d57   :  { %v2551_v58 = vadd.f32 %v2549_v57, %v2452_v50 }
0x2d59   :  { %5223 = vtanh.f32 %v2551_v58 }
0x2d66   :  { %v5224_v49 = vpop.eup %5223 }
0x2d67   :  { %2555 = vrot.lane.b32.xlu0 %v5224_v49, %s5544_s6 }
0x2dd9   :  { %v2556_v5 = vpop.permute.xlu0 %2555 }
0x2dda   :  { %v2558_v18 = vmul.f32 %v2556_v5, %v2553_v16 }
0x2ddc   :  { %v2561_v6 = vadd.f32 %v2560_v17, %v2558_v18 }
0x2dde   :  { %2567 = vrot.lane.b32.xlu1 %v2561_v6, %s5544_s6 }
0x2e50   :  { %v2568_v19 = vpop.permute.xlu1 %2567 }
0x2e51   :  { %4889 = vmatmul.mubr.msk.f32.vlgmr.msra.gmra.mxu0 %vm470_vm5, %v2568_v19  ;;  %4900 = vmatmul.mubr.msk.f32.vlgmr.msra.gmra.mxu1 %vm470_vm5, %v2568_v19 }
0x2e52   :  { %4914 = vmatpush3.msra.mxu1 %v6116_v59  ;;  %4910 = vmatprep.mubr.msk.f32.mxu0 %vm5542_vm2, %v5541_v4 }
0x2e53   :  { %4915 = vmatprep.subr.mxu1 %v5541_v4  ;;  %4921 = vmatprep.mubr.msk.f32.mxu1 %vm5542_vm2, %v5541_v4 }
0x2e54   :  { %4916 = vmatpush3.msra.mxu1 %v6121_v60  ;;  %4903 = vmatpush3.msra.mxu0 %v6274_v38 }
0x2e55   :  { %4917 = vmatprep.subr.mxu1 %v5541_v4  ;;  %4904 = vmatprep.subr.mxu0 %v5541_v4 }
0x2e56   :  { %4918 = vmatpush3.msra.mxu1 %v6128_v62  ;;  %4905 = vmatpush3.msra.mxu0 %v6279_v40 }
0x2e57   :  { %4919 = vmatprep.subr.mxu1 %v5541_v4  ;;  %4906 = vmatprep.subr.mxu0 %v5541_v4 }
0x2e58   :  { %4920 = vmatpush3.msra.mxu1 %v6135_v63  ;;  %4907 = vmatpush3.msra.mxu0 %v6286_v41 }
0x2e59   :  { %4942 = vmatprep.subr.mxu1 %v5541_v4  ;;  %4908 = vmatprep.subr.mxu0 %v5541_v4 }
0x2e5a   :  { %4909 = vmatpush3.msra.mxu0 %v6293_v42 }
0x2e5b   :  { %4924 = vmatprep.subr.mxu0 %v5541_v4 }
0x2f11   :  { %v2637_v7 = vpop.f32.mrf.mxu0  ;;  %v2711_v21 = vpop.f32.mrf.mxu1 }
0x2f12   :  { %v2712_v22 = vadd.f32 %v6263_v20, %v2711_v21  ;;  %v2638_v27 = vadd.f32 %v6267_v11, %v2637_v7 }
0x2f13   :  { %v4890_v24 = vpop.f32.mrf.mxu0  ;;  %v4901_v31 = vpop.f32.mrf.mxu1 }
0x2f14   :  { %2723 = vrot.lane.b32.xlu0 %v2712_v22, %s5543_s26  ;;  %v2715_v26 = vadd.f32 %v2712_v22, %v2638_v27 }
0x2f16   :  { %v4418_v28 = vmul.f32 -1.442695, %v2715_v26 }
0x2f18   :  { %5225 = vpow2.f32 %v4418_v28 }
0x2f25   :  { %v5226_v12 = vpop.eup %5225 }
0x2f26   :  { %v2719_v29 = vadd.f32 1.0, %v5226_v12 }
0x2f28   :  { %5227 = vrcp.f32 %v2719_v29 }
0x2f35   :  { %v5228_v30 = vpop.eup %5227 }
0x2f36   :  { %v2733_v45 = vsub.f32 1.0, %v5228_v30  ;;  %v2739_v47 = vmul.f32 %v5228_v30, %v2561_v6 }
0x2f86   :  { %v2724_v37 = vpop.permute.xlu0 %2723 }
0x2f87   :  { %v2726_v34 = vmul.f32 %v5228_v30, %v2724_v37 }
0x2f89   :  { %2728 = vrot.lane.b32.xlu1 %v2726_v34, %s5543_s26 }
0x2ffb   :  { %v2729_v35 = vpop.permute.xlu1 %2728 }
0x2ffc   :  { %v2731_v36 = vadd.f32 %v2729_v35, %v2638_v27 }
0x2ffe   :  { %5229 = vtanh.f32 %v2731_v36 }
0x300b   :  { %v5230_v43 = vpop.eup %5229 }
0x300c   :  { %2735 = vrot.lane.b32.xlu0 %v5230_v43, %s5544_s6 }
0x307e   :  { %v2736_v46 = vpop.permute.xlu0 %2735 }
0x307f   :  { %v2738_v50 = vmul.f32 %v2736_v46, %v2733_v45 }
0x3081   :  { %v6300_v51 = vadd.f32 %v2739_v47, %v2738_v50 }
0x3083   :  { %2746 = vrot.lane.b32.xlu1 %v6300_v51, %s5544_s6 }
0x30f5   :  { %v2747_v25 = vpop.permute.xlu1 %2746 }
0x30f6   :  { %4911 = vmatmul.mubr.msk.f32.vlgmr.msra.gmra.mxu0 %vm470_vm5, %v2747_v25  ;;  %4922 = vmatmul.mubr.msk.f32.vlgmr.msra.gmra.mxu1 %vm470_vm5, %v2747_v25 }
0x30f7   :  { %4925 = vmatpush3.msra.mxu0 %v6149_v3  ;;  %4928 = vmatprep.mubr.msk.f32.mxu0 %vm5542_vm2, %v5541_v4 }
0x30f8   :  { %4926 = vmatprep.subr.mxu0 %v5541_v4  ;;  %4943 = vmatpush3.msra.mxu1 %v6200_v0 }
0x30f9   :  { %4927 = vmatpush3.msra.mxu0 %v6153_v13  ;;  %4944 = vmatprep.subr.mxu1 %v5541_v4 }
0x30fa   :  { %4931 = vmatprep.subr.mxu0 %v5541_v4  ;;  %4945 = vmatpush3.msra.mxu1 %v6207_v2 }
0x30fb   :  { %4946 = vmatprep.subr.mxu1 %v5541_v4  ;;  %4950 = vmatprep.mubr.msk.f32.mxu1 %vm5542_vm2, %v5541_v4 }
0x30fc   :  { %4947 = vmatpush3.msra.mxu1 %v6218_v8 }
0x30fd   :  { %4948 = vmatprep.subr.mxu1 %v5541_v4 }
0x30fe   :  { %4949 = vmatpush3.msra.mxu1 %v6229_v10 }
0x30ff   :  { %4964 = vmatprep.subr.mxu1 %v5541_v4 }
0x31b6   :  { %v2816_v53 = vpop.f32.mrf.mxu0  ;;  %v2892_v54 = vpop.f32.mrf.mxu1 }
0x31b7   :  { %v2817_v55 = vadd.f32 %v6325_v52, %v2816_v53  ;;  %v2893_v56 = vadd.f32 %v6160_v14, %v2892_v54 }
0x31b8   :  { %v4912_v57 = vpop.f32.mrf.mxu0  ;;  %v4923_v58 = vpop.f32.mrf.mxu1 }
0x31b9   :  { %2821 = vst.msk [vmem:[%s6575_s23] sm:$0x3] %vm2820_vm9, %v2817_v55  ;;  %5231 = vtanh.f32 %v2893_v56 }
0x31c6   :  { %v5232_v49 = vpop.eup %5231 }
0x31c7   :  { %4929 = vmatmul.mubr.msk.f32.vlgmr.msra.gmra.mxu0 %vm384_vm3, %v5232_v49 }
0x31c8   :  { %4932 = vmatpush3.msra.mxu0 %v6171_v23  ;;  %4939 = vmatprep.mubr.msk.f32.mxu0 %vm5542_vm2, %v5541_v4 }
0x31c9   :  { %4933 = vmatprep.subr.mxu0 %v5541_v4 }
0x31ca   :  { %4934 = vmatpush3.msra.mxu0 %v6173_v32 }
0x31cb   :  { %4935 = vmatprep.subr.mxu0 %v5541_v4 }
0x31cc   :  { %4936 = vmatpush3.msra.mxu0 %v6177_v33 }
0x31cd   :  { %4937 = vmatprep.subr.mxu0 %v5541_v4 }
0x31ce   :  { %4938 = vmatpush3.msra.mxu0 %v6181_v61 }
0x31cf   :  { %4940 = vmatmul.mubr.msk.f32.vlgmr.msra.gmra.mxu0 %vm470_vm5, %v2747_v25  ;;  %4953 = vmatprep.subr.mxu0 %v5541_v4 }
0x31d0   :  { %4954 = vmatpush3.msra.mxu0 %v6205_v1  ;;  %4961 = vmatprep.mubr.msk.f32.mxu0 %vm5542_vm2, %v5541_v4 }
0x31d1   :  { %4955 = vmatprep.subr.mxu0 %v5541_v4 }
0x31d2   :  { %4956 = vmatpush3.msra.mxu0 %v6214_v39 }
0x31d3   :  { %4957 = vmatprep.subr.mxu0 %v5541_v4 }
0x31d4   :  { %4958 = vmatpush3.msra.mxu0 %v6223_v9 }
0x31d5   :  { %4959 = vmatprep.subr.mxu0 %v5541_v4 }
0x31d6   :  { %4960 = vmatpush3.msra.mxu0 %v6234_v15 }
0x31d7   :  { %4975 = vmatprep.subr.mxu0 %v5541_v4 }
0x3287   :  { %v2968_v16 = vpop.f32.mrf.mxu0 }
0x3288   :  { %v2969_v19 = vadd.f32 %v6196_v48, %v2968_v16 }
0x3289   :  { %v4930_v5 = vpop.f32.mrf.mxu0 }
0x328f   :  { %v3042_v17 = vpop.f32.mrf.mxu0 }
0x3290   :  { %v3043_v18 = vadd.f32 %v6192_v44, %v3042_v17 }
0x3291   :  { %v4941_v6 = vpop.f32.mrf.mxu0 }
0x3292   :  { %3054 = vrot.lane.b32.xlu0 %v3043_v18, %s5543_s26  ;;  %v3046_v7 = vadd.f32 %v3043_v18, %v2969_v19 }
0x3294   :  { %v4423_v21 = vmul.f32 -1.442695, %v3046_v7 }
0x3296   :  { %5233 = vpow2.f32 %v4423_v21 }
0x32a3   :  { %v5234_v22 = vpop.eup %5233 }
0x32a4   :  { %v3050_v24 = vadd.f32 1.0, %v5234_v22 }
0x32a6   :  { %5235 = vrcp.f32 %v3050_v24 }
0x32b3   :  { %v5236_v31 = vpop.eup %5235 }
0x32b4   :  { %v3064_v30 = vsub.f32 1.0, %v5236_v31  ;;  %v3070_v34 = vmul.f32 %v5236_v31, %v6300_v51 }
0x3304   :  { %v3055_v27 = vpop.permute.xlu0 %3054 }
0x3305   :  { %v3057_v26 = vmul.f32 %v5236_v31, %v3055_v27 }
0x3307   :  { %3059 = vrot.lane.b32.xlu1 %v3057_v26, %s5543_s26 }
0x3379   :  { %v3060_v28 = vpop.permute.xlu1 %3059 }
0x337a   :  { %v3062_v12 = vadd.f32 %v3060_v28, %v2969_v19 }
0x337c   :  { %5237 = vtanh.f32 %v3062_v12 }
0x3389   :  { %v5238_v29 = vpop.eup %5237 }
0x338a   :  { %3066 = vrot.lane.b32.xlu0 %v5238_v29, %s5544_s6 }
0x33fc   :  { %v3067_v37 = vpop.permute.xlu0 %3066 }
0x33fd   :  { %v3069_v35 = vmul.f32 %v3067_v37, %v3064_v30 }
0x33ff   :  { %v3071_v36 = vadd.f32 %v3070_v34, %v3069_v35 }
0x3401   :  { %3077 = vrot.lane.b32.xlu1 %v3071_v36, %s5544_s6 }
0x3473   :  { %v3078_v43 = vpop.permute.xlu1 %3077 }
0x3474   :  { %4951 = vmatmul.mubr.msk.f32.vlgmr.msra.gmra.mxu1 %vm470_vm5, %v3078_v43  ;;  %4962 = vmatmul.mubr.msk.f32.vlgmr.msra.gmra.mxu0 %vm470_vm5, %v3078_v43 }
0x3475   :  { %4965 = vmatpush3.msra.mxu1 %v6274_v38  ;;  %4976 = vmatpush3.msra.mxu0 %v6116_v59 }
0x3476   :  { %4966 = vmatprep.subr.mxu1 %v5541_v4  ;;  %4977 = vmatprep.subr.mxu0 %v5541_v4 }
0x3477   :  { %4967 = vmatpush3.msra.mxu1 %v6279_v40  ;;  %4978 = vmatpush3.msra.mxu0 %v6121_v60 }
0x3478   :  { %4968 = vmatprep.subr.mxu1 %v5541_v4  ;;  %4979 = vmatprep.subr.mxu0 %v5541_v4 }
0x3479   :  { %4969 = vmatpush3.msra.mxu1 %v6286_v41  ;;  %4980 = vmatpush3.msra.mxu0 %v6128_v62 }
0x347a   :  { %4970 = vmatprep.subr.mxu1 %v5541_v4  ;;  %4981 = vmatprep.subr.mxu0 %v5541_v4 }
0x347b   :  { %4971 = vmatpush3.msra.mxu1 %v6293_v42  ;;  %4972 = vmatprep.mubr.msk.f32.mxu1 %vm5542_vm2, %v5541_v4 }
0x347c   :  { %4982 = vmatpush3.msra.mxu0 %v6135_v63  ;;  %4983 = vmatprep.mubr.msk.f32.mxu0 %vm5542_vm2, %v5541_v4 }
0x347d   :  { %4986 = vmatprep.subr.mxu1 %v5541_v4  ;;  %5004 = vmatprep.subr.mxu0 %v5541_v4 }
0x3534   :  { %v3147_v45 = vpop.f32.mrf.mxu1  ;;  %v3221_v46 = vpop.f32.mrf.mxu0 }
0x3535   :  { %v3222_v47 = vadd.f32 %v6263_v20, %v3221_v46  ;;  %v3148_v25 = vadd.f32 %v6267_v11, %v3147_v45 }
0x3536   :  { %v4952_v50 = vpop.f32.mrf.mxu1  ;;  %v4963_v51 = vpop.f32.mrf.mxu0 }
0x3537   :  { %3233 = vrot.lane.b32.xlu0 %v3222_v47, %s5543_s26  ;;  %v3225_v53 = vadd.f32 %v3222_v47, %v3148_v25 }
0x3539   :  { %v4426_v54 = vmul.f32 -1.442695, %v3225_v53 }
0x353b   :  { %5239 = vpow2.f32 %v4426_v54 }
0x3548   :  { %v5240_v55 = vpop.eup %5239 }
0x3549   :  { %v3229_v56 = vadd.f32 1.0, %v5240_v55 }
0x354b   :  { %5241 = vrcp.f32 %v3229_v56 }
0x3558   :  { %v5242_v57 = vpop.eup %5241 }
0x3559   :  { %v3243_v18 = vsub.f32 1.0, %v5242_v57  ;;  %v3249_v19 = vmul.f32 %v5242_v57, %v3071_v36 }
0x35a9   :  { %v3234_v58 = vpop.permute.xlu0 %3233 }
0x35aa   :  { %v3236_v49 = vmul.f32 %v5242_v57, %v3234_v58 }
0x35ac   :  { %3238 = vrot.lane.b32.xlu1 %v3236_v49, %s5543_s26 }
0x361e   :  { %v3239_v16 = vpop.permute.xlu1 %3238 }
0x361f   :  { %v3241_v5 = vadd.f32 %v3239_v16, %v3148_v25 }
0x3621   :  { %5243 = vtanh.f32 %v3241_v5 }
0x362e   :  { %v5244_v17 = vpop.eup %5243 }
0x362f   :  { %3245 = vrot.lane.b32.xlu0 %v5244_v17, %s5544_s6 }
0x36a1   :  { %v3246_v6 = vpop.permute.xlu0 %3245 }
0x36a2   :  { %v3248_v7 = vmul.f32 %v3246_v6, %v3243_v18 }
0x36a4   :  { %v6389_v21 = vadd.f32 %v3249_v19, %v3248_v7 }
0x36a6   :  { %3256 = vrot.lane.b32.xlu1 %v6389_v21, %s5544_s6 }
0x3718   :  { %v3257_v22 = vpop.permute.xlu1 %3256 }
0x3719   :  { %4973 = vmatmul.mubr.msk.f32.vlgmr.msra.gmra.mxu1 %vm470_vm5, %v3257_v22  ;;  %4984 = vmatmul.mubr.msk.f32.vlgmr.msra.gmra.mxu0 %vm470_vm5, %v3257_v22 }
0x371a   :  { %4987 = vmatpush3.msra.mxu1 %v6149_v3  ;;  %4990 = vmatprep.mubr.msk.f32.mxu1 %vm5542_vm2, %v5541_v4 }
0x371b   :  { %4988 = vmatprep.subr.mxu1 %v5541_v4  ;;  %5005 = vmatpush3.msra.mxu0 %v6200_v0 }
0x371c   :  { %4989 = vmatpush3.msra.mxu1 %v6153_v13  ;;  %5006 = vmatprep.subr.mxu0 %v5541_v4 }
0x371d   :  { %4993 = vmatprep.subr.mxu1 %v5541_v4  ;;  %5007 = vmatpush3.msra.mxu0 %v6207_v2 }
0x371e   :  { %5008 = vmatprep.subr.mxu0 %v5541_v4  ;;  %5012 = vmatprep.mubr.msk.f32.mxu0 %vm5542_vm2, %v5541_v4 }
0x371f   :  { %5009 = vmatpush3.msra.mxu0 %v6218_v8 }
0x3720   :  { %5010 = vmatprep.subr.mxu0 %v5541_v4 }
0x3721   :  { %5011 = vmatpush3.msra.mxu0 %v6229_v10 }
0x3722   :  { %5026 = vmatprep.subr.mxu0 %v5541_v4 }
0x37d9   :  { %v3326_v24 = vpop.f32.mrf.mxu1  ;;  %v3402_v31 = vpop.f32.mrf.mxu0 }
0x37da   :  { %v3327_v27 = vadd.f32 %v6325_v52, %v3326_v24  ;;  %v3403_v26 = vadd.f32 %v6160_v14, %v3402_v31 }
0x37db   :  { %v4974_v28 = vpop.f32.mrf.mxu1  ;;  %v4985_v12 = vpop.f32.mrf.mxu0 }
0x37dc   :  { %4428 = vst.msk [vmem:[%s6575_s23 + $0x2] sm:$0x3] %vm2820_vm9, %v3327_v27  ;;  %5245 = vtanh.f32 %v3403_v26 }
0x37e9   :  { %v5246_v29 = vpop.eup %5245 }
0x37ea   :  { %4991 = vmatmul.mubr.msk.f32.vlgmr.msra.gmra.mxu1 %vm384_vm3, %v5246_v29 }
0x37eb   :  { %4994 = vmatpush3.msra.mxu1 %v6171_v23  ;;  %5001 = vmatprep.mubr.msk.f32.mxu1 %vm5542_vm2, %v5541_v4 }
0x37ec   :  { %4995 = vmatprep.subr.mxu1 %v5541_v4 }
0x37ed   :  { %4996 = vmatpush3.msra.mxu1 %v6173_v32 }
0x37ee   :  { %4997 = vmatprep.subr.mxu1 %v5541_v4 }
0x37ef   :  { %4998 = vmatpush3.msra.mxu1 %v6177_v33 }
0x37f0   :  { %4999 = vmatprep.subr.mxu1 %v5541_v4 }
0x37f1   :  { %5000 = vmatpush3.msra.mxu1 %v6181_v61 }
0x37f2   :  { %5002 = vmatmul.mubr.msk.f32.vlgmr.msra.gmra.mxu1 %vm470_vm5, %v3257_v22  ;;  %5015 = vmatprep.subr.mxu1 %v5541_v4 }
0x37f3   :  { %5016 = vmatpush3.msra.mxu1 %v6205_v1  ;;  %5023 = vmatprep.mubr.msk.f32.mxu1 %vm5542_vm2, %v5541_v4 }
0x37f4   :  { %5017 = vmatprep.subr.mxu1 %v5541_v4 }
0x37f5   :  { %5018 = vmatpush3.msra.mxu1 %v6214_v39 }
0x37f6   :  { %5019 = vmatprep.subr.mxu1 %v5541_v4 }
0x37f7   :  { %5020 = vmatpush3.msra.mxu1 %v6223_v9 }
0x37f8   :  { %5021 = vmatprep.subr.mxu1 %v5541_v4 }
0x37f9   :  { %5022 = vmatpush3.msra.mxu1 %v6234_v15 }
0x37fa   :  { %5037 = vmatprep.subr.mxu1 %v5541_v4 }
0x38aa   :  { %v3478_v30 = vpop.f32.mrf.mxu1 }
0x38ab   :  { %v3479_v43 = vadd.f32 %v6196_v48, %v3478_v30 }
0x38ac   :  { %v4992_v37 = vpop.f32.mrf.mxu1 }
0x38b2   :  { %v3552_v34 = vpop.f32.mrf.mxu1 }
0x38b3   :  { %v3553_v35 = vadd.f32 %v6192_v44, %v3552_v34 }
0x38b4   :  { %v5003_v36 = vpop.f32.mrf.mxu1 }
0x38b5   :  { %3564 = vrot.lane.b32.xlu0 %v3553_v35, %s5543_s26  ;;  %v3556_v45 = vadd.f32 %v3553_v35, %v3479_v43 }
0x38b7   :  { %v4432_v46 = vmul.f32 -1.442695, %v3556_v45 }
0x38b9   :  { %5247 = vpow2.f32 %v4432_v46 }
0x38c6   :  { %v5248_v47 = vpop.eup %5247 }
0x38c7   :  { %v3560_v50 = vadd.f32 1.0, %v5248_v47 }
0x38c9   :  { %5249 = vrcp.f32 %v3560_v50 }
0x38d6   :  { %v5250_v51 = vpop.eup %5249 }
0x38d7   :  { %v3574_v57 = vsub.f32 1.0, %v5250_v51  ;;  %v3580_v49 = vmul.f32 %v5250_v51, %v6389_v21 }
0x3927   :  { %v3565_v25 = vpop.permute.xlu0 %3564 }
0x3928   :  { %v3567_v53 = vmul.f32 %v5250_v51, %v3565_v25 }
0x392a   :  { %3569 = vrot.lane.b32.xlu1 %v3567_v53, %s5543_s26 }
0x399c   :  { %v3570_v54 = vpop.permute.xlu1 %3569 }
0x399d   :  { %v3572_v55 = vadd.f32 %v3570_v54, %v3479_v43 }
0x399f   :  { %5251 = vtanh.f32 %v3572_v55 }
0x39ac   :  { %v5252_v56 = vpop.eup %5251 }
0x39ad   :  { %3576 = vrot.lane.b32.xlu0 %v5252_v56, %s5544_s6 }
0x3a1f   :  { %v3577_v58 = vpop.permute.xlu0 %3576 }
0x3a20   :  { %v3579_v16 = vmul.f32 %v3577_v58, %v3574_v57 }
0x3a22   :  { %v3581_v5 = vadd.f32 %v3580_v49, %v3579_v16 }
0x3a24   :  { %3587 = vrot.lane.b32.xlu1 %v3581_v5, %s5544_s6 }
0x3a96   :  { %v3588_v17 = vpop.permute.xlu1 %3587 }
0x3a97   :  { %5013 = vmatmul.mubr.msk.f32.vlgmr.msra.gmra.mxu0 %vm470_vm5, %v3588_v17  ;;  %5024 = vmatmul.mubr.msk.f32.vlgmr.msra.gmra.mxu1 %vm470_vm5, %v3588_v17 }
0x3a98   :  { %5027 = vmatpush3.msra.mxu0 %v6274_v38  ;;  %5038 = vmatpush3.msra.mxu1 %v6116_v59 }
0x3a99   :  { %5028 = vmatprep.subr.mxu0 %v5541_v4  ;;  %5039 = vmatprep.subr.mxu1 %v5541_v4 }
0x3a9a   :  { %5029 = vmatpush3.msra.mxu0 %v6279_v40  ;;  %5040 = vmatpush3.msra.mxu1 %v6121_v60 }
0x3a9b   :  { %5030 = vmatprep.subr.mxu0 %v5541_v4  ;;  %5041 = vmatprep.subr.mxu1 %v5541_v4 }
0x3a9c   :  { %5031 = vmatpush3.msra.mxu0 %v6286_v41  ;;  %5042 = vmatpush3.msra.mxu1 %v6128_v62 }
0x3a9d   :  { %5032 = vmatprep.subr.mxu0 %v5541_v4  ;;  %5043 = vmatprep.subr.mxu1 %v5541_v4 }
0x3a9e   :  { %5033 = vmatpush3.msra.mxu0 %v6293_v42  ;;  %5034 = vmatprep.mubr.msk.f32.mxu0 %vm5542_vm2, %v5541_v4 }
0x3a9f   :  { %5044 = vmatpush3.msra.mxu1 %v6135_v63  ;;  %5045 = vmatprep.mubr.msk.f32.mxu1 %vm5542_vm2, %v5541_v4 }
0x3aa0   :  { %5048 = vmatprep.subr.mxu0 %v5541_v4  ;;  %5066 = vmatprep.subr.mxu1 %v5541_v4 }
0x3b57   :  { %v3657_v59 = vpop.f32.mrf.mxu0  ;;  %v3731_v60 = vpop.f32.mrf.mxu1 }
0x3b58   :  { %v3732_v62 = vadd.f32 %v6263_v20, %v3731_v60  ;;  %v3658_v19 = vadd.f32 %v6267_v11, %v3657_v59 }
0x3b59   :  { %v5014_v18 = vpop.f32.mrf.mxu0  ;;  %v5025_v6 = vpop.f32.mrf.mxu1 }
0x3b5a   :  { %3743 = vrot.lane.b32.xlu0 %v3732_v62, %s5543_s26  ;;  %v3735_v7 = vadd.f32 %v3732_v62, %v3658_v19 }
0x3b5c   :  { %v4435_v21 = vmul.f32 -1.442695, %v3735_v7 }
0x3b5e   :  { %5253 = vpow2.f32 %v4435_v21 }
0x3b6b   :  { %v5254_v63 = vpop.eup %5253 }
0x3b6c   :  { %v3739_v22 = vadd.f32 1.0, %v5254_v63 }
0x3b6e   :  { %5255 = vrcp.f32 %v3739_v22 }
0x3b7b   :  { %v5256_v24 = vpop.eup %5255 }
0x3b7c   :  { %v3753_v29 = vsub.f32 1.0, %v5256_v24  ;;  %v3759_v37 = vmul.f32 %v5256_v24, %v3581_v5 }
0x3bcc   :  { %v3744_v31 = vpop.permute.xlu0 %3743 }
0x3bcd   :  { %v3746_v27 = vmul.f32 %v5256_v24, %v3744_v31 }
0x3bcf   :  { %3748 = vrot.lane.b32.xlu1 %v3746_v27, %s5543_s26 }
0x3c41   :  { %v3749_v26 = vpop.permute.xlu1 %3748 }
0x3c42   :  { %v3751_v28 = vadd.f32 %v3749_v26, %v3658_v19 }
0x3c44   :  { %5257 = vtanh.f32 %v3751_v28 }
0x3c51   :  { %v5258_v12 = vpop.eup %5257 }
0x3c52   :  { %3755 = vrot.lane.b32.xlu0 %v5258_v12, %s5544_s6 }
0x3cc4   :  { %v3756_v30 = vpop.permute.xlu0 %3755 }
0x3cc5   :  { %v3758_v34 = vmul.f32 %v3756_v30, %v3753_v29 }
0x3cc7   :  { %v6473_v35 = vadd.f32 %v3759_v37, %v3758_v34 }
0x3cc9   :  { %3766 = vrot.lane.b32.xlu1 %v6473_v35, %s5544_s6 }
0x3d3b   :  { %v3767_v36 = vpop.permute.xlu1 %3766 }
0x3d3c   :  { %5035 = vmatmul.mubr.msk.f32.vlgmr.msra.gmra.mxu0 %vm470_vm5, %v3767_v36  ;;  %5046 = vmatmul.mubr.msk.f32.vlgmr.msra.gmra.mxu1 %vm470_vm5, %v3767_v36 }
0x3d3d   :  { %5049 = vmatpush3.msra.mxu0 %v6149_v3  ;;  %5052 = vmatprep.mubr.msk.f32.mxu0 %vm5542_vm2, %v5541_v4 }
0x3d3e   :  { %5050 = vmatprep.subr.mxu0 %v5541_v4  ;;  %5067 = vmatpush3.msra.mxu1 %v6200_v0 }
0x3d3f   :  { %5051 = vmatpush3.msra.mxu0 %v6153_v13  ;;  %5068 = vmatprep.subr.mxu1 %v5541_v4 }
0x3d40   :  { %5055 = vmatprep.subr.mxu0 %v5541_v4  ;;  %5069 = vmatpush3.msra.mxu1 %v6207_v2 }
0x3d41   :  { %5070 = vmatprep.subr.mxu1 %v5541_v4  ;;  %5074 = vmatprep.mubr.msk.f32.mxu1 %vm5542_vm2, %v5541_v4 }
0x3d42   :  { %5071 = vmatpush3.msra.mxu1 %v6218_v8 }
0x3d43   :  { %5072 = vmatprep.subr.mxu1 %v5541_v4 }
0x3d44   :  { %5073 = vmatpush3.msra.mxu1 %v6229_v10 }
0x3d45   :  { %5088 = vmatprep.subr.mxu1 %v5541_v4 }
0x3dfc   :  { %v3836_v3 = vpop.f32.mrf.mxu0  ;;  %v3912_v13 = vpop.f32.mrf.mxu1 }
0x3dfd   :  { %v3837_v0 = vadd.f32 %v6325_v52, %v3836_v3  ;;  %v3913_v43 = vadd.f32 %v6160_v14, %v3912_v13 }
0x3dfe   :  { %v5036_v2 = vpop.f32.mrf.mxu0  ;;  %v5047_v45 = vpop.f32.mrf.mxu1 }
0x3dff   :  { %4437 = vst.msk [vmem:[%s6575_s23 + $0x4] sm:$0x3] %vm2820_vm9, %v3837_v0  ;;  %5259 = vtanh.f32 %v3913_v43 }
0x3e0c   :  { %v5260_v8 = vpop.eup %5259 }
0x3e0d   :  { %5053 = vmatmul.mubr.msk.f32.vlgmr.msra.gmra.mxu0 %vm384_vm3, %v5260_v8 }
0x3e0e   :  { %5056 = vmatpush3.msra.mxu0 %v6171_v23  ;;  %5063 = vmatprep.mubr.msk.f32.mxu0 %vm5542_vm2, %v5541_v4 }
0x3e0f   :  { %5057 = vmatprep.subr.mxu0 %v5541_v4 }
0x3e10   :  { %5058 = vmatpush3.msra.mxu0 %v6173_v32 }
0x3e11   :  { %5059 = vmatprep.subr.mxu0 %v5541_v4 }
0x3e12   :  { %5060 = vmatpush3.msra.mxu0 %v6177_v33 }
0x3e13   :  { %5061 = vmatprep.subr.mxu0 %v5541_v4 }
0x3e14   :  { %5062 = vmatpush3.msra.mxu0 %v6181_v61 }
0x3e15   :  { %5064 = vmatmul.mubr.msk.f32.vlgmr.msra.gmra.mxu0 %vm470_vm5, %v3767_v36  ;;  %5077 = vmatprep.subr.mxu0 %v5541_v4 }
0x3e16   :  { %5078 = vmatpush3.msra.mxu0 %v6205_v1  ;;  %5085 = vmatprep.mubr.msk.f32.mxu0 %vm5542_vm2, %v5541_v4 }
0x3e17   :  { %5079 = vmatprep.subr.mxu0 %v5541_v4 }
0x3e18   :  { %5080 = vmatpush3.msra.mxu0 %v6214_v39 }
0x3e19   :  { %5081 = vmatprep.subr.mxu0 %v5541_v4 }
0x3e1a   :  { %5082 = vmatpush3.msra.mxu0 %v6223_v9 }
0x3e1b   :  { %5083 = vmatprep.subr.mxu0 %v5541_v4 }
0x3e1c   :  { %5084 = vmatpush3.msra.mxu0 %v6234_v15 }
0x3ecd   :  { %v3988_v14 = vpop.f32.mrf.mxu0 }
0x3ece   :  { %v3989_v1 = vadd.f32 %v6196_v48, %v3988_v14 }
0x3ecf   :  { %v5054_v23 = vpop.f32.mrf.mxu0 }
0x3ed5   :  { %v4062_v32 = vpop.f32.mrf.mxu0 }
0x3ed6   :  { %v4063_v33 = vadd.f32 %v6192_v44, %v4062_v32 }
0x3ed7   :  { %v5065_v61 = vpop.f32.mrf.mxu0 }
0x3ed8   :  { %4074 = vrot.lane.b32.xlu0 %v4063_v33, %s5543_s26  ;;  %v4066_v10 = vadd.f32 %v4063_v33, %v3989_v1 }
0x3eda   :  { %v4441_v39 = vmul.f32 -1.442695, %v4066_v10 }
0x3edc   :  { %5261 = vpow2.f32 %v4441_v39 }
0x3ee9   :  { %v5262_v46 = vpop.eup %5261 }
0x3eea   :  { %v4070_v47 = vadd.f32 1.0, %v5262_v46 }
0x3eec   :  { %5263 = vrcp.f32 %v4070_v47 }
0x3ef9   :  { %v5264_v9 = vpop.eup %5263 }
0x3efa   :  { %v4084_v53 = vsub.f32 1.0, %v5264_v9  ;;  %v4090_v48 = vmul.f32 %v5264_v9, %v6473_v35 }
0x3f4a   :  { %v4075_v50 = vpop.permute.xlu0 %4074 }
0x3f4b   :  { %v4077_v51 = vmul.f32 %v5264_v9, %v4075_v50 }
0x3f4d   :  { %4079 = vrot.lane.b32.xlu1 %v4077_v51, %s5543_s26 }
0x3fbf   :  { %v4080_v15 = vpop.permute.xlu1 %4079 }
0x3fc0   :  { %v4082_v25 = vadd.f32 %v4080_v15, %v3989_v1 }
0x3fc2   :  { %5265 = vtanh.f32 %v4082_v25 }
0x3fcf   :  { %v5266_v44 = vpop.eup %5265 }
0x3fd0   :  { %4086 = vrot.lane.b32.xlu0 %v5266_v44, %s5544_s6 }
0x4042   :  { %v4087_v54 = vpop.permute.xlu0 %4086 }
0x4043   :  { %v4089_v55 = vmul.f32 %v4087_v54, %v4084_v53 }
0x4045   :  { %v4091_v56 = vadd.f32 %v4090_v48, %v4089_v55 }
0x4047   :  { %4097 = vrot.lane.b32.xlu1 %v4091_v56, %s5544_s6 }
0x40b9   :  { %v4098_v57 = vpop.permute.xlu1 %4097 }
0x40ba   :  { %5075 = vmatmul.mubr.msk.f32.vlgmr.msra.gmra.mxu1 %vm470_vm5, %v4098_v57  ;;  %5086 = vmatmul.mubr.msk.f32.vlgmr.msra.gmra.mxu0 %vm470_vm5, %v4098_v57 }
0x40bb   :  { %5089 = vmatpush3.msra.mxu1 %v6274_v38  ;;  %5096 = vmatprep.mubr.msk.f32.mxu1 %vm5542_vm2, %v5541_v4 }
0x40bc   :  { %5090 = vmatprep.subr.mxu1 %v5541_v4 }
0x40bd   :  { %5091 = vmatpush3.msra.mxu1 %v6279_v40 }
0x40be   :  { %5092 = vmatprep.subr.mxu1 %v5541_v4 }
0x40bf   :  { %5093 = vmatpush3.msra.mxu1 %v6286_v41 }
0x40c0   :  { %5094 = vmatprep.subr.mxu1 %v5541_v4 }
0x40c1   :  { %5095 = vmatpush3.msra.mxu1 %v6293_v42 }
0x417a   :  { %v4167_v58 = vpop.f32.mrf.mxu1  ;;  %v4241_v49 = vpop.f32.mrf.mxu0 }
0x417b   :  { %v4242_v16 = vadd.f32 %v6263_v20, %v4241_v49  ;;  %v4168_v17 = vadd.f32 %v6267_v11, %v4167_v58 }
0x417c   :  { %v5076_v38 = vpop.f32.mrf.mxu1  ;;  %v5087_v5 = vpop.f32.mrf.mxu0 }
0x417d   :  { %4253 = vrot.lane.b32.xlu0 %v4242_v16, %s5543_s26  ;;  %v4245_v59 = vadd.f32 %v4242_v16, %v4168_v17 }
0x417f   :  { %v4444_v40 = vmul.f32 -1.442695, %v4245_v59 }
0x4181   :  { %5267 = vpow2.f32 %v4444_v40 }
0x418e   :  { %v5268_v60 = vpop.eup %5267 }
0x418f   :  { %v4249_v62 = vadd.f32 1.0, %v5268_v60 }
0x4191   :  { %5269 = vrcp.f32 %v4249_v62 }
0x419e   :  { %v5270_v41 = vpop.eup %5269 }
0x419f   :  { %v4263_v19 = vsub.f32 1.0, %v5270_v41  ;;  %v4269_v11 = vmul.f32 %v5270_v41, %v4091_v56 }
0x41ef   :  { %v4254_v4 = vpop.permute.xlu0 %4253 }
0x41f0   :  { %v4256_v18 = vmul.f32 %v5270_v41, %v4254_v4 }
0x41f2   :  { %4258 = vrot.lane.b32.xlu1 %v4256_v18, %s5543_s26 }
0x4264   :  { %v4259_v42 = vpop.permute.xlu1 %4258 }
0x4265   :  { %v4261_v6 = vadd.f32 %v4259_v42, %v4168_v17 }
0x4267   :  { %5271 = vtanh.f32 %v4261_v6 }
0x4274   :  { %v5272_v20 = vpop.eup %5271 }
0x4275   :  { %4265 = vrot.lane.b32.xlu0 %v5272_v20, %s5544_s6 }
0x42e7   :  { %v4266_v7 = vpop.permute.xlu0 %4265 }
0x42e8   :  { %v4268_v21 = vmul.f32 %v4266_v7, %v4263_v19 }
0x42ea   :  { %v4270_v63 = vadd.f32 %v4269_v11, %v4268_v21 }
0x42ec   :  { %4276 = vrot.lane.b32.xlu1 %v4270_v63, %s5544_s6 }
0x435e   :  { %v4277_v22 = vpop.permute.xlu1 %4276 }
0x435f   :  { %5097 = vmatmul.mubr.msk.f32.vlgmr.msra.gmra.mxu1 %vm470_vm5, %v4277_v22 }
0x441f   :  { %v4346_v24 = vpop.f32.mrf.mxu1 }
0x4420   :  { %v4347_v31 = vadd.f32 %v6325_v52, %v4346_v24 }
0x4421   :  { %v5098_v27 = vpop.f32.mrf.mxu1 }
0x4422   :  { %4446 = vst.msk [vmem:[%s6575_s23 + $0x6] sm:$0x3] %vm2820_vm9, %v4347_v31 }
0x4423   :  { %4356 = vsyncpa [#allocation4], 1 }
0x4424   :  { %4357 = vsyncpa [#allocation6], 1 }
0x4425   :  { %4358 = vsyncpa [#allocation9], 1 }
0x4426   :  { %4359 = vsyncpa [#allocation12], 1 }
0x4427   :  { %4360 = vsyncpa [#allocation15], 1 }
0x4428   :  { %4361 = vsyncpa [#allocation18], 1 }
0x4429   :  { %4362 = vsyncpa [#allocation21], 1 }

</bundles_post_ra>
